<compile_context>
chip_gen: v7x
topology: tpu7x:2x2x1
jax: 0.10.0
libtpu: 0.0.40
codegen_flags: <defaults>
</compile_context>

<pallas_src>
import numpy as np
import jax
import jax.numpy as jnp
from jax.experimental import pallas as pl
from jax.experimental.pallas import tpu as pltpu

# Small, module-consistent sizes.
LATENT = 8
HEIGHT = 4                 # H
WIDE = 32                  # final width; unflatten width = WIDE - 27 = 5
BATCH = 2
K = 10                     # transposed-conv taps along the width axis
EPS = 1e-5

W0, C0 = WIDE - 27, 32     # 5, 32   (unflatten)
W1, C1 = W0 + K - 1, 16    # 14, 16  (after convT1)
W2, C2 = W1 + K - 1, 8     # 23, 8   (after convT2)
W3, C3 = W2 + K - 1, 1     # 32, 1   (after convT3)


def _vmem():
    # Whole-array single block resident in VMEM (all operands are tiny).
    return pl.BlockSpec(memory_space=pltpu.MemorySpace.VMEM)


# ------------------------------ fused kernel --------------------------------

def decoder_kernel(x_ref, w1_ref, b1_ref, w2_ref, b2_ref,
                   wb1_ref, bb1_ref, gamma_ref, beta_ref, g_ref, gt_ref,
                   wb2_ref, bb2_ref, wb3_ref, bb3_ref, o_ref):
    f32 = jnp.float32

    # decoder_lin.  The second linear's columns were pre-permuted host-side so its
    # output is already laid out as (h, w, c) along the lane axis (640 lanes).
    h = jnp.maximum(
        jnp.dot(x_ref[...], w1_ref[...], preferred_element_type=f32) + b1_ref[...], 0.0)
    h = jnp.maximum(
        jnp.dot(h, w2_ref[...], preferred_element_type=f32) + b2_ref[...], 0.0)

    # ConvTranspose1d(32,16,(10,1)) as one banded block-diag matmul: (B,640)@(640,896).
    y = jnp.dot(h, wb1_ref[...], preferred_element_type=f32) + bb1_ref[...]

    # BatchNorm2d(16) in training mode: per-channel mean / biased variance over
    # (B, W, H).  Columns of y are (h, w, c); g (896,16) sums columns by channel,
    # gt (16,896) expands per-channel scalars back to the band layout.
    n_per_ch = y.shape[0] * (y.shape[1] // gamma_ref.shape[-1])      # B*H*W1 = 112
    inv_n = 1.0 / float(n_per_ch)
    colsum = jnp.sum(y, axis=0, keepdims=True)                                 # (1,896)
    mean_c = jnp.dot(colsum, g_ref[...], preferred_element_type=f32) * inv_n   # (1,16)
    centered = y - jnp.dot(mean_c, gt_ref[...], preferred_element_type=f32)    # (B,896)
    var_c = jnp.dot(jnp.sum(centered * centered, axis=0, keepdims=True),
                    g_ref[...], preferred_element_type=f32) * inv_n            # (1,16)
    scale_c = gamma_ref[...] * jax.lax.rsqrt(var_c + EPS)                      # (1,16)
    scale_b = jnp.dot(scale_c, gt_ref[...], preferred_element_type=f32)        # (1,896)
    shift_b = jnp.dot(beta_ref[...], gt_ref[...], preferred_element_type=f32)  # (1,896)
    a = jnp.maximum(centered * scale_b + shift_b, 0.0)   # BN affine + ReLU (one FMA+max)

    # ConvTranspose2d(16,8,(10,1)) + ReLU, then ConvTranspose1d(8,1,(10,1)).
    a = jnp.maximum(
        jnp.dot(a, wb2_ref[...], preferred_element_type=f32) + bb2_ref[...], 0.0)
    # Single lane-dense store (B, H*W3) = (B, 128): the only write of the kernel.
    o_ref[...] = jnp.dot(a, wb3_ref[...], preferred_element_type=f32) + bb3_ref[...]


# --------------------------- host-side packing -------------------------------

def pack_params(p):
    """One-time weight packing: transposes, column permutation, banded conv matrices.

    Runs once outside the jitted forward so no per-forward transposes remain.
    """
    Hh = HEIGHT

    # Permute linear-2 output columns from torch unflatten order (c, w, h) to the
    # kernel's (h, w, c) lane order:  perm[new] = old,  old = c*(W0*Hh) + w*Hh + h.
    hh, ww, cc = np.meshgrid(np.arange(Hh), np.arange(W0), np.arange(C0), indexing="ij")
    perm = (cc * (W0 * Hh) + ww * Hh + hh).reshape(-1)
    w2 = np.asarray(p["w2"]).T[:, perm]               # (128, 640)
    b2 = np.asarray(p["b2"])[perm]

    def banded_blockdiag(w_t, win):
        # torch ConvTranspose weight (Cin, Cout, K, 1) -> block-diag-over-H banded
        # matrix mapping (h, i, ci) columns -> (h, j, co) columns with j = i + k.
        w = np.asarray(w_t)[..., 0]                   # (Cin, Cout, K)
        cin, cout, kk = w.shape
        wout = win + kk - 1
        band = np.zeros((win * cin, wout * cout), np.float32)
        for i in range(win):
            for k in range(kk):
                band[i * cin:(i + 1) * cin, (i + k) * cout:(i + k + 1) * cout] = w[:, :, k]
        full = np.zeros((Hh * win * cin, Hh * wout * cout), np.float32)
        for h_ in range(Hh):
            full[h_ * win * cin:(h_ + 1) * win * cin,
                 h_ * wout * cout:(h_ + 1) * wout * cout] = band
        return full, wout, cout

    wb1, w1_, c1_ = banded_blockdiag(p["cw1"], W0)    # (640, 896)
    wb2, w2_, c2_ = banded_blockdiag(p["cw2"], w1_)   # (896, 736)
    wb3, w3_, c3_ = banded_blockdiag(p["cw3"], w2_)   # (736, 128)

    def band_bias(b, wout):
        return np.tile(np.asarray(b, np.float32), Hh * wout)[None, :]

    # Channel-grouping matrix for the BN statistics (column = (h, j, co); co = col % C1).
    g = (np.arange(Hh * w1_ * c1_)[:, None] % c1_ == np.arange(c1_)[None, :]).astype(np.float32)

    pk = dict(
        w1=np.asarray(p["w1"]).T, b1=np.asarray(p["b1"])[None, :],
        w2=w2, b2=b2[None, :],
        wb1=wb1, bb1=band_bias(p["cb1"], w1_),
        gamma=np.asarray(p["gamma"])[None, :], beta=np.asarray(p["beta"])[None, :],
        g=g, gt=np.ascontiguousarray(g.T),
        wb2=wb2, bb2=band_bias(p["cb2"], w2_),
        wb3=wb3, bb3=band_bias(p["cb3"], w3_),
    )
    return {k: jnp.asarray(v, jnp.float32) for k, v in pk.items()}


@jax.jit
def decoder_forward(x, pk):
    B = x.shape[0]
    # Single fused kernel; no grid (BatchNorm couples the batch and everything fits
    # VMEM).  TODO(synk): if B grows, shard a batch grid axis ("parallel") for the
    # second v7x TensorCore — requires a cross-program BN reduction.
    o = pl.pallas_call(
        decoder_kernel,
        out_shape=jax.ShapeDtypeStruct((B, HEIGHT * WIDE), jnp.float32),
        in_specs=[_vmem()] * 15,
        out_specs=_vmem(),
    )(x, pk["w1"], pk["b1"], pk["w2"], pk["b2"],
      pk["wb1"], pk["bb1"], pk["gamma"], pk["beta"], pk["g"], pk["gt"],
      pk["wb2"], pk["bb2"], pk["wb3"], pk["bb3"])
    # Kernel output columns are (h, w); final NCHW glue -> (B, 1, WIDE, HEIGHT).
    return o.reshape(B, HEIGHT, WIDE).transpose(0, 2, 1)[:, None, :, :]


# --------------------------- params & pure-JAX ref ---------------------------

def init_params(key):
    ks = jax.random.split(key, 12)
    n = lambda k, s, sc=0.1: sc * jax.random.normal(k, s, jnp.float32)
    hidden = 32 * (WIDE - 27) * HEIGHT
    return dict(
        w1=n(ks[0], (128, LATENT)), b1=n(ks[1], (128,)),
        w2=n(ks[2], (hidden, 128)), b2=n(ks[3], (hidden,)),
        cw1=n(ks[4], (32, 16, K, 1)), cb1=n(ks[5], (16,)),
        gamma=1.0 + n(ks[6], (16,)), beta=n(ks[7], (16,)),
        cw2=n(ks[8], (16, 8, K, 1)), cb2=n(ks[9], (8,)),
        cw3=n(ks[10], (8, 1, K, 1)), cb3=n(ks[11], (1,)),
    )


def ref_forward(x, p):
    hp = jax.lax.Precision.HIGHEST
    h = jnp.maximum(jnp.dot(x, p["w1"].T, precision=hp) + p["b1"], 0.0)
    h = jnp.maximum(jnp.dot(h, p["w2"].T, precision=hp) + p["b2"], 0.0)
    B = x.shape[0]
    h = h.reshape(B, 32, WIDE - 27, HEIGHT)  # NCHW

    def convt(a, w, b):  # a: (B, Cin, W, H), w: (Cin, Cout, K, 1)
        Bc, Cin, Wn, Hn = a.shape
        Cout, Kk = w.shape[1], w.shape[2]
        out = jnp.zeros((Bc, Cout, Wn + Kk - 1, Hn), jnp.float32)
        for k in range(Kk):
            out = out.at[:, :, k:k + Wn, :].add(
                jnp.einsum("bcwh,cd->bdwh", a, w[:, :, k, 0], precision=hp))
        return out + b[None, :, None, None]

    y = convt(h, p["cw1"], p["cb1"])
    mean = y.mean(axis=(0, 2, 3), keepdims=True)
    var = ((y - mean) ** 2).mean(axis=(0, 2, 3), keepdims=True)
    y = (y - mean) / jnp.sqrt(var + EPS)
    y = y * p["gamma"][None, :, None, None] + p["beta"][None, :, None, None]
    y = jnp.maximum(y, 0.0)
    y = jnp.maximum(convt(y, p["cw2"], p["cb2"]), 0.0)
    y = convt(y, p["cw3"], p["cb3"])
    return y


if __name__ == "__main__":
    key = jax.random.PRNGKey(0)
    pkey, xkey = jax.random.split(key)
    params = init_params(pkey)
    x = jax.random.normal(xkey, (BATCH, LATENT), jnp.float32)

    packed = pack_params(params)            # one-time weight packing (not per-forward)
    out = jax.block_until_ready(decoder_forward(x, packed))
    ref = jax.block_until_ready(ref_forward(x, params))

    assert out.shape == (BATCH, 1, WIDE, HEIGHT), out.shape
    rel_err = float(jnp.max(jnp.abs(out - ref)) / (jnp.max(jnp.abs(ref)) + 1e-6))
    # Tightened vs the previous 5e-2; headroom only covers MXU f32 multi-pass rounding
    # modes — any layout / accumulation / permutation bug produces O(1) errors.
    assert rel_err < 2e-2, f"relative error too high: {rel_err}"
    print("KERNEL_OK")
</pallas_src>

<mosaic_0001>
module attributes {stable_mosaic.version = 11 : i64} {
  func.func @decoder_kernel(%arg0: memref<2x8xf32, #tpu.memory_space<vmem>>, %arg1: memref<8x128xf32, #tpu.memory_space<vmem>>, %arg2: memref<1x128xf32, #tpu.memory_space<vmem>>, %arg3: memref<128x640xf32, #tpu.memory_space<vmem>>, %arg4: memref<1x640xf32, #tpu.memory_space<vmem>>, %arg5: memref<640x896xf32, #tpu.memory_space<vmem>>, %arg6: memref<1x896xf32, #tpu.memory_space<vmem>>, %arg7: memref<1x16xf32, #tpu.memory_space<vmem>>, %arg8: memref<1x16xf32, #tpu.memory_space<vmem>>, %arg9: memref<896x16xf32, #tpu.memory_space<vmem>>, %arg10: memref<16x896xf32, #tpu.memory_space<vmem>>, %arg11: memref<896x736xf32, #tpu.memory_space<vmem>>, %arg12: memref<1x736xf32, #tpu.memory_space<vmem>>, %arg13: memref<736x128xf32, #tpu.memory_space<vmem>>, %arg14: memref<1x128xf32, #tpu.memory_space<vmem>>, %arg15: memref<2x128xf32, #tpu.memory_space<vmem>>) attributes {dimension_semantics = [], scalar_prefetch = 0 : i64, scratch_operands = 0 : i64, tpu.core_type = #tpu.core_type<tc>} {
    %c0 = arith.constant 0 : index
    %c0_0 = arith.constant 0 : index
    %0 = vector.load %arg0[%c0, %c0_0] : memref<2x8xf32, #tpu.memory_space<vmem>>, vector<2x8xf32>
    %c0_1 = arith.constant 0 : index
    %c0_2 = arith.constant 0 : index
    %1 = vector.load %arg1[%c0_1, %c0_2] : memref<8x128xf32, #tpu.memory_space<vmem>>, vector<8x128xf32>
    %cst = arith.constant dense<0.000000e+00> : vector<2x128xf32>
    %2 = tpu.matmul %0, %1, %cst {dimension_numbers = #tpu.dot_dimension_numbers<[1], [0], [0], [1], [0, 0, 1, 1], [], []>} : vector<2x8xf32>, vector<8x128xf32>, vector<2x128xf32> -> vector<2x128xf32>
    %c0_3 = arith.constant 0 : index
    %c0_4 = arith.constant 0 : index
    %3 = vector.load %arg2[%c0_3, %c0_4] : memref<1x128xf32, #tpu.memory_space<vmem>>, vector<1x128xf32>
    %4 = vector.broadcast %3 : vector<1x128xf32> to vector<2x128xf32>
    %5 = arith.addf %2, %4 : vector<2x128xf32>
    %cst_5 = arith.constant 0.000000e+00 : f32
    %6 = vector.broadcast %cst_5 : f32 to vector<2x128xf32>
    %7 = arith.maximumf %5, %6 : vector<2x128xf32>
    %c0_6 = arith.constant 0 : index
    %c0_7 = arith.constant 0 : index
    %8 = vector.load %arg3[%c0_6, %c0_7] : memref<128x640xf32, #tpu.memory_space<vmem>>, vector<128x640xf32>
    %cst_8 = arith.constant dense<0.000000e+00> : vector<2x640xf32>
    %9 = tpu.matmul %7, %8, %cst_8 {dimension_numbers = #tpu.dot_dimension_numbers<[1], [0], [0], [1], [0, 0, 1, 1], [], []>} : vector<2x128xf32>, vector<128x640xf32>, vector<2x640xf32> -> vector<2x640xf32>
    %c0_9 = arith.constant 0 : index
    %c0_10 = arith.constant 0 : index
    %10 = vector.load %arg4[%c0_9, %c0_10] : memref<1x640xf32, #tpu.memory_space<vmem>>, vector<1x640xf32>
    %11 = vector.broadcast %10 : vector<1x640xf32> to vector<2x640xf32>
    %12 = arith.addf %9, %11 : vector<2x640xf32>
    %cst_11 = arith.constant 0.000000e+00 : f32
    %13 = vector.broadcast %cst_11 : f32 to vector<2x640xf32>
    %14 = arith.maximumf %12, %13 : vector<2x640xf32>
    %c0_12 = arith.constant 0 : index
    %c0_13 = arith.constant 0 : index
    %15 = vector.load %arg5[%c0_12, %c0_13] : memref<640x896xf32, #tpu.memory_space<vmem>>, vector<640x896xf32>
    %cst_14 = arith.constant dense<0.000000e+00> : vector<2x896xf32>
    %16 = tpu.matmul %14, %15, %cst_14 {dimension_numbers = #tpu.dot_dimension_numbers<[1], [0], [0], [1], [0, 0, 1, 1], [], []>} : vector<2x640xf32>, vector<640x896xf32>, vector<2x896xf32> -> vector<2x896xf32>
    %c0_15 = arith.constant 0 : index
    %c0_16 = arith.constant 0 : index
    %17 = vector.load %arg6[%c0_15, %c0_16] : memref<1x896xf32, #tpu.memory_space<vmem>>, vector<1x896xf32>
    %18 = vector.broadcast %17 : vector<1x896xf32> to vector<2x896xf32>
    %19 = arith.addf %16, %18 : vector<2x896xf32>
    %cst_17 = arith.constant dense<0.000000e+00> : vector<896xf32>
    %20 = vector.multi_reduction <add>, %19, %cst_17 [0] : vector<2x896xf32> to vector<896xf32>
    %21 = vector.shape_cast %20 : vector<896xf32> to vector<1x896xf32>
    %c0_18 = arith.constant 0 : index
    %c0_19 = arith.constant 0 : index
    %22 = vector.load %arg9[%c0_18, %c0_19] : memref<896x16xf32, #tpu.memory_space<vmem>>, vector<896x16xf32>
    %cst_20 = arith.constant dense<0.000000e+00> : vector<1x16xf32>
    %23 = tpu.matmul %21, %22, %cst_20 {dimension_numbers = #tpu.dot_dimension_numbers<[1], [0], [0], [1], [0, 0, 1, 1], [], []>} : vector<1x896xf32>, vector<896x16xf32>, vector<1x16xf32> -> vector<1x16xf32>
    %cst_21 = arith.constant 0.00892857183 : f32
    %24 = vector.broadcast %cst_21 : f32 to vector<1x16xf32>
    %25 = arith.mulf %23, %24 : vector<1x16xf32>
    %c0_22 = arith.constant 0 : index
    %c0_23 = arith.constant 0 : index
    %26 = vector.load %arg10[%c0_22, %c0_23] : memref<16x896xf32, #tpu.memory_space<vmem>>, vector<16x896xf32>
    %cst_24 = arith.constant dense<0.000000e+00> : vector<1x896xf32>
    %27 = tpu.matmul %25, %26, %cst_24 {dimension_numbers = #tpu.dot_dimension_numbers<[1], [0], [0], [1], [0, 0, 1, 1], [], []>} : vector<1x16xf32>, vector<16x896xf32>, vector<1x896xf32> -> vector<1x896xf32>
    %28 = vector.broadcast %27 : vector<1x896xf32> to vector<2x896xf32>
    %29 = arith.subf %19, %28 : vector<2x896xf32>
    %30 = arith.mulf %29, %29 : vector<2x896xf32>
    %cst_25 = arith.constant dense<0.000000e+00> : vector<896xf32>
    %31 = vector.multi_reduction <add>, %30, %cst_25 [0] : vector<2x896xf32> to vector<896xf32>
    %32 = vector.shape_cast %31 : vector<896xf32> to vector<1x896xf32>
    %c0_26 = arith.constant 0 : index
    %c0_27 = arith.constant 0 : index
    %33 = vector.load %arg9[%c0_26, %c0_27] : memref<896x16xf32, #tpu.memory_space<vmem>>, vector<896x16xf32>
    %cst_28 = arith.constant dense<0.000000e+00> : vector<1x16xf32>
    %34 = tpu.matmul %32, %33, %cst_28 {dimension_numbers = #tpu.dot_dimension_numbers<[1], [0], [0], [1], [0, 0, 1, 1], [], []>} : vector<1x896xf32>, vector<896x16xf32>, vector<1x16xf32> -> vector<1x16xf32>
    %cst_29 = arith.constant 0.00892857183 : f32
    %35 = vector.broadcast %cst_29 : f32 to vector<1x16xf32>
    %36 = arith.mulf %34, %35 : vector<1x16xf32>
    %c0_30 = arith.constant 0 : index
    %c0_31 = arith.constant 0 : index
    %37 = vector.load %arg7[%c0_30, %c0_31] : memref<1x16xf32, #tpu.memory_space<vmem>>, vector<1x16xf32>
    %cst_32 = arith.constant 9.99999974E-6 : f32
    %38 = vector.broadcast %cst_32 : f32 to vector<1x16xf32>
    %39 = arith.addf %36, %38 : vector<1x16xf32>
    %40 = math.rsqrt %39 : vector<1x16xf32>
    %41 = arith.mulf %37, %40 : vector<1x16xf32>
    %c0_33 = arith.constant 0 : index
    %c0_34 = arith.constant 0 : index
    %42 = vector.load %arg10[%c0_33, %c0_34] : memref<16x896xf32, #tpu.memory_space<vmem>>, vector<16x896xf32>
    %cst_35 = arith.constant dense<0.000000e+00> : vector<1x896xf32>
    %43 = tpu.matmul %41, %42, %cst_35 {dimension_numbers = #tpu.dot_dimension_numbers<[1], [0], [0], [1], [0, 0, 1, 1], [], []>} : vector<1x16xf32>, vector<16x896xf32>, vector<1x896xf32> -> vector<1x896xf32>
    %c0_36 = arith.constant 0 : index
    %c0_37 = arith.constant 0 : index
    %44 = vector.load %arg8[%c0_36, %c0_37] : memref<1x16xf32, #tpu.memory_space<vmem>>, vector<1x16xf32>
    %c0_38 = arith.constant 0 : index
    %c0_39 = arith.constant 0 : index
    %45 = vector.load %arg10[%c0_38, %c0_39] : memref<16x896xf32, #tpu.memory_space<vmem>>, vector<16x896xf32>
    %cst_40 = arith.constant dense<0.000000e+00> : vector<1x896xf32>
    %46 = tpu.matmul %44, %45, %cst_40 {dimension_numbers = #tpu.dot_dimension_numbers<[1], [0], [0], [1], [0, 0, 1, 1], [], []>} : vector<1x16xf32>, vector<16x896xf32>, vector<1x896xf32> -> vector<1x896xf32>
    %47 = vector.broadcast %43 : vector<1x896xf32> to vector<2x896xf32>
    %48 = arith.mulf %29, %47 : vector<2x896xf32>
    %49 = vector.broadcast %46 : vector<1x896xf32> to vector<2x896xf32>
    %50 = arith.addf %48, %49 : vector<2x896xf32>
    %cst_41 = arith.constant 0.000000e+00 : f32
    %51 = vector.broadcast %cst_41 : f32 to vector<2x896xf32>
    %52 = arith.maximumf %50, %51 : vector<2x896xf32>
    %c0_42 = arith.constant 0 : index
    %c0_43 = arith.constant 0 : index
    %53 = vector.load %arg11[%c0_42, %c0_43] : memref<896x736xf32, #tpu.memory_space<vmem>>, vector<896x736xf32>
    %cst_44 = arith.constant dense<0.000000e+00> : vector<2x736xf32>
    %54 = tpu.matmul %52, %53, %cst_44 {dimension_numbers = #tpu.dot_dimension_numbers<[1], [0], [0], [1], [0, 0, 1, 1], [], []>} : vector<2x896xf32>, vector<896x736xf32>, vector<2x736xf32> -> vector<2x736xf32>
    %c0_45 = arith.constant 0 : index
    %c0_46 = arith.constant 0 : index
    %55 = vector.load %arg12[%c0_45, %c0_46] : memref<1x736xf32, #tpu.memory_space<vmem>>, vector<1x736xf32>
    %56 = vector.broadcast %55 : vector<1x736xf32> to vector<2x736xf32>
    %57 = arith.addf %54, %56 : vector<2x736xf32>
    %cst_47 = arith.constant 0.000000e+00 : f32
    %58 = vector.broadcast %cst_47 : f32 to vector<2x736xf32>
    %59 = arith.maximumf %57, %58 : vector<2x736xf32>
    %c0_48 = arith.constant 0 : index
    %c0_49 = arith.constant 0 : index
    %60 = vector.load %arg13[%c0_48, %c0_49] : memref<736x128xf32, #tpu.memory_space<vmem>>, vector<736x128xf32>
    %cst_50 = arith.constant dense<0.000000e+00> : vector<2x128xf32>
    %61 = tpu.matmul %59, %60, %cst_50 {dimension_numbers = #tpu.dot_dimension_numbers<[1], [0], [0], [1], [0, 0, 1, 1], [], []>} : vector<2x736xf32>, vector<736x128xf32>, vector<2x128xf32> -> vector<2x128xf32>
    %c0_51 = arith.constant 0 : index
    %c0_52 = arith.constant 0 : index
    %62 = vector.load %arg14[%c0_51, %c0_52] : memref<1x128xf32, #tpu.memory_space<vmem>>, vector<1x128xf32>
    %63 = vector.broadcast %62 : vector<1x128xf32> to vector<2x128xf32>
    %64 = arith.addf %61, %63 : vector<2x128xf32>
    %c0_53 = arith.constant 0 : index
    %c0_54 = arith.constant 0 : index
    %65 = vector.load %arg15[%c0_53, %c0_54] : memref<2x128xf32, #tpu.memory_space<vmem>>, vector<2x128xf32>
    tpu.vector_store %arg15[%c0_53, %c0_54], %64 {strides = array<i32>} : memref<2x128xf32, #tpu.memory_space<vmem>>, vector<2x128xf32>,
    return
  }
}

</mosaic_0001>

<bundles_post_ra>
// kernel: decoder_forward.1
= control target key start
LH: loop header
LB: loop body
LE: loop exit
PB: predicated region body
PF: predicated region fallthrough
CT: control target
= control target key end

     0   :  { %vm59_vm0 = vcmask 64512   ;;  %v13284_v0 = vmov 0.0   ;;  %vm7932_vm1 = vmmov 0   ;;  %vm1904_vm2 = vcmask 1041408   ;;  %s13266_s1 = inlined_call_operand.vmem [shape: f32[8,128], index: 1, kind: input, shape index: {}]   ;;  %s13267_s0 = inlined_call_operand.vmem [shape: f32[2,8], index: 0, kind: input, shape index: {}]   ;;  %s13268_s3 = inlined_call_operand.vmem [shape: f32[128,640], index: 3, kind: input, shape index: {}]   ;;  %s13269_s5 = inlined_call_operand.vmem [shape: f32[640,896], index: 5, kind: input, shape index: {}]   ;;  %s13270_s2 = inlined_call_operand.vmem [shape: f32[1,128], index: 2, kind: input, shape index: {}]   ;;  %s13271_s4 = inlined_call_operand.vmem [shape: f32[1,640], index: 4, kind: input, shape index: {}]   ;;  %s13272_s9 = inlined_call_operand.vmem [shape: f32[896,16], index: 9, kind: input, shape index: {}]   ;;  %s13273_s6 = inlined_call_operand.vmem [shape: f32[1,896], index: 6, kind: input, shape index: {}]   ;;  %s13274_s10 = inlined_call_operand.vmem [shape: f32[16,896], index: 10, kind: input, shape index: {}]   ;;  %s13275_s8 = inlined_call_operand.vmem [shape: f32[1,16], index: 8, kind: input, shape index: {}]   ;;  %s13276_s11 = inlined_call_operand.vmem [shape: f32[896,736], index: 11, kind: input, shape index: {}]   ;;  %s13277_s7 = inlined_call_operand.vmem [shape: f32[1,16], index: 7, kind: input, shape index: {}]   ;;  %s13278_s13 = inlined_call_operand.vmem [shape: f32[736,128], index: 13, kind: input, shape index: {}]   ;;  %s13279_s12 = inlined_call_operand.vmem [shape: f32[1,736], index: 12, kind: input, shape index: {}]   ;;  %s13280_s14 = inlined_call_operand.vmem [shape: f32[1,128], index: 14, kind: input, shape index: {}]   ;;  %s13281_s15 = inlined_call_operand.vmem [shape: f32[2,128], index: 15, kind: output, shape index: {}]  }
   0x1   :  { %5999 = vmatprep.subr.mxu0 %v13284_v0  ;;  %v51_v1 = vld [vmem:[%s13266_s1] sm:$0xff]  ;;  %6001 = vmatprep.mubr.msk.f32.mxu0 %vm7932_vm1, %v13284_v0  ;;  %v135_v3 = vld [vmem:[%s13268_s3 + $0x8] sm:$0xff]  ;;  %v140_v4 = vld [vmem:[%s13268_s3 + $0x30] sm:$0xff]  ;;  %vm2361_vm3 = vcmask 130048   ;;  %vm5335_vm4 = vcmask 785408  }
   0x2   :  { %v50_v2 = vld [vmem:[%s13267_s0] sm:$0x3]  ;;  %6000 = vmatpush3.msra.mxu0 %v51_v1  ;;  %v139_v6 = vld [vmem:[%s13268_s3 + $0x28] sm:$0xff]  ;;  %305 = vmatprep.mubr.f32.mxu1 %v13284_v0  ;;  %v6165_v7 = vpack.c.bf16 %v140_v4, %v135_v3  ;;  %v137_v9 = vld [vmem:[%s13268_s3 + $0x18] sm:$0xff] }
   0x3   :  { %v134_v5 = vld [vmem:[%s13268_s3] sm:$0xff]  ;;  %6002 = vmatmul.mubr.msk.f32.vlgmr.msra.gmra.mrb[0].mxu0 %vm59_vm0, %v50_v2  ;;  %v136_v11 = vld [vmem:[%s13268_s3 + $0x10] sm:$0xff]  ;;  %v141_v13 = vld [vmem:[%s13268_s3 + $0x38] sm:$0xff] }
   0x4   :  { %v6167_v8 = vpack.c.bf16 %v139_v6, %v134_v5  ;;  %v142_v10 = vld [vmem:[%s13268_s3 + $0x40] sm:$0xff]  ;;  %v145_v14 = vld [vmem:[%s13268_s3 + $0x58] sm:$0xff]  ;;  %376 = vmatprep.mubr.f32.mxu0 %v13284_v0  ;;  %6166 = vmatprep.subr.bf16.mxu1 %v6165_v7  ;;  %v6199_v16 = vpack.c.bf16 %v141_v13, %v136_v11  ;;  %v144_v18 = vld [vmem:[%s13268_s3 + $0x50] sm:$0xff] }
   0x5   :  { %v6197_v12 = vpack.c.bf16 %v142_v10, %v137_v9  ;;  %v150_v15 = vld [vmem:[%s13268_s3 + $0x80] sm:$0xff]  ;;  %v149_v19 = vld [vmem:[%s13268_s3 + $0x78] sm:$0xff]  ;;  %v147_v20 = vld [vmem:[%s13268_s3 + $0x68] sm:$0xff] }
   0x6   :  { %v6169_v17 = vpack.c.bf16 %v150_v15, %v145_v14  ;;  %6168 = vmatpush1.bf16.msra.mxu1 %v6167_v8  ;;  %v6171_v21 = vpack.c.bf16 %v149_v19, %v144_v18  ;;  %v152_v22 = vld [vmem:[%s13268_s3 + $0x90] sm:$0xff]  ;;  %v146_v23 = vld [vmem:[%s13268_s3 + $0x60] sm:$0xff]  ;;  %v151_v24 = vld [vmem:[%s13268_s3 + $0x88] sm:$0xff] }
   0x7   :  { %6198 = vmatprep.subr.bf16.mxu0 %v6197_v12  ;;  %v6201_v25 = vpack.c.bf16 %v152_v22, %v147_v20  ;;  %v6203_v26 = vpack.c.bf16 %v151_v24, %v146_v23  ;;  %v155_v27 = vld [vmem:[%s13268_s3 + $0xa8] sm:$0xff]  ;;  %v160_v28 = vld [vmem:[%s13268_s3 + $0xd0] sm:$0xff]  ;;  %v154_v29 = vld [vmem:[%s13268_s3 + $0xa0] sm:$0xff] }
   0x8   :  { %6200 = vmatpush1.bf16.msra.mxu0 %v6199_v16  ;;  %6170 = vmatprep.subr.bf16.mxu1 %v6169_v17  ;;  %v6173_v30 = vpack.c.bf16 %v160_v28, %v155_v27  ;;  %v159_v31 = vld [vmem:[%s13268_s3 + $0xc8] sm:$0xff]  ;;  %v157_v32 = vld [vmem:[%s13268_s3 + $0xb8] sm:$0xff]  ;;  %v162_v33 = vld [vmem:[%s13268_s3 + $0xe0] sm:$0xff] }
   0x9   :  { %6202 = vmatprep.subr.bf16.mxu0 %v6201_v25  ;;  %v6205_v34 = vpack.c.bf16 %v162_v33, %v157_v32  ;;  %v156_v35 = vld [vmem:[%s13268_s3 + $0xb0] sm:$0xff]  ;;  %v161_v36 = vld [vmem:[%s13268_s3 + $0xd8] sm:$0xff]  ;;  %v6175_v38 = vpack.c.bf16 %v159_v31, %v154_v29  ;;  %v170_v39 = vld [vmem:[%s13268_s3 + $0x120] sm:$0xff] }
   0xa   :  { %v165_v37 = vld [vmem:[%s13268_s3 + $0xf8] sm:$0xff]  ;;  %6172 = vmatpush1.bf16.msra.mxu1 %v6171_v21  ;;  %v164_v40 = vld [vmem:[%s13268_s3 + $0xf0] sm:$0xff]  ;;  %v6207_v42 = vpack.c.bf16 %v161_v36, %v156_v35  ;;  %v167_v44 = vld [vmem:[%s13268_s3 + $0x108] sm:$0xff]  ;;  %v13282_v36 = vmov 0.0|0.0  }
   0xb   :  { %v169_v41 = vld [vmem:[%s13268_s3 + $0x118] sm:$0xff]  ;;  %6174 = vmatprep.subr.bf16.mxu1 %v6173_v30  ;;  %v6177_v43 = vpack.c.bf16 %v170_v39, %v165_v37  ;;  %v172_v45 = vld [vmem:[%s13268_s3 + $0x130] sm:$0xff]  ;;  %v166_v46 = vld [vmem:[%s13268_s3 + $0x100] sm:$0xff] }
   0xc   :  { %6204 = vmatpush1.bf16.msra.mxu0 %v6203_v26  ;;  %v6209_v47 = vpack.c.bf16 %v172_v45, %v167_v44  ;;  %v171_v48 = vld [vmem:[%s13268_s3 + $0x128] sm:$0xff]  ;;  %v180_v50 = vld [vmem:[%s13268_s3 + $0x170] sm:$0xff]  ;;  %v177_v51 = vld [vmem:[%s13268_s3 + $0x158] sm:$0xff]  ;;  %v6179_v52 = vpack.c.bf16 %v169_v41, %v164_v40 }
   0xd   :  { %6206 = vmatprep.subr.bf16.mxu0 %v6205_v34  ;;  %v175_v49 = vld [vmem:[%s13268_s3 + $0x148] sm:$0xff]  ;;  %v182_v53 = vld [vmem:[%s13268_s3 + $0x180] sm:$0xff]  ;;  %v6211_v54 = vpack.c.bf16 %v171_v48, %v166_v46  ;;  %v176_v58 = vld [vmem:[%s13268_s3 + $0x150] sm:$0xff] }
   0xe   :  { %6176 = vmatpush1.bf16.msra.mxu1 %v6175_v38  ;;  %v6181_v55 = vpack.c.bf16 %v180_v50, %v175_v49  ;;  %v174_v56 = vld [vmem:[%s13268_s3 + $0x140] sm:$0xff]  ;;  %v179_v57 = vld [vmem:[%s13268_s3 + $0x168] sm:$0xff]  ;;  %v6213_v59 = vpack.c.bf16 %v182_v53, %v177_v51  ;;  %v181_v60 = vld [vmem:[%s13268_s3 + $0x178] sm:$0xff] }
   0xf   :  { %6178 = vmatprep.subr.bf16.mxu1 %v6177_v43  ;;  %v185_v61 = vld [vmem:[%s13268_s3 + $0x198] sm:$0xff]  ;;  %v190_v62 = vld [vmem:[%s13268_s3 + $0x1c0] sm:$0xff]  ;;  %v187_v63 = vld [vmem:[%s13268_s3 + $0x1a8] sm:$0xff]  ;;  %v6183_v2 = vpack.c.bf16 %v179_v57, %v174_v56  ;;  %v6215_v3 = vpack.c.bf16 %v181_v60, %v176_v58 }
  0x10   :  { %6208 = vmatpush1.bf16.msra.mxu0 %v6207_v42  ;;  %v192_v1 = vld [vmem:[%s13268_s3 + $0x1d0] sm:$0xff]  ;;  %v6185_v4 = vpack.c.bf16 %v190_v62, %v185_v61  ;;  %v189_v6 = vld [vmem:[%s13268_s3 + $0x1b8] sm:$0xff]  ;;  %v186_v7 = vld [vmem:[%s13268_s3 + $0x1a0] sm:$0xff] }
  0x11   :  { %6210 = vmatprep.subr.bf16.mxu0 %v6209_v47  ;;  %v184_v5 = vld [vmem:[%s13268_s3 + $0x190] sm:$0xff]  ;;  %v6217_v8 = vpack.c.bf16 %v192_v1, %v187_v63  ;;  %v191_v9 = vld [vmem:[%s13268_s3 + $0x1c8] sm:$0xff]  ;;  %v197_v12 = vld [vmem:[%s13268_s3 + $0x1f8] sm:$0xff] }
  0x12   :  { %6180 = vmatpush1.bf16.msra.mxu1 %v6179_v52  ;;  %v195_v10 = vld [vmem:[%s13268_s3 + $0x1e8] sm:$0xff]  ;;  %v200_v11 = vld [vmem:[%s13268_s3 + $0x210] sm:$0xff]  ;;  %v202_v13 = vld [vmem:[%s13268_s3 + $0x220] sm:$0xff]  ;;  %v6187_v14 = vpack.c.bf16 %v189_v6, %v184_v5  ;;  %v6219_v15 = vpack.c.bf16 %v191_v9, %v186_v7 }
  0x13   :  { %6182 = vmatprep.subr.bf16.mxu1 %v6181_v55  ;;  %v6189_v16 = vpack.c.bf16 %v200_v11, %v195_v10  ;;  %v194_v17 = vld [vmem:[%s13268_s3 + $0x1e0] sm:$0xff]  ;;  %v199_v18 = vld [vmem:[%s13268_s3 + $0x208] sm:$0xff]  ;;  %v6221_v19 = vpack.c.bf16 %v202_v13, %v197_v12  ;;  %v196_v20 = vld [vmem:[%s13268_s3 + $0x1f0] sm:$0xff] }
  0x14   :  { %6212 = vmatpush1.bf16.msra.mxu0 %v6211_v54  ;;  %v201_v21 = vld [vmem:[%s13268_s3 + $0x218] sm:$0xff]  ;;  %v6191_v22 = vpack.c.bf16 %v199_v18, %v194_v17  ;;  %v210_v25 = vld [vmem:[%s13268_s3 + $0x260] sm:$0xff]  ;;  %v204_v27 = vld [vmem:[%s13268_s3 + $0x230] sm:$0xff] }
  0x15   :  { %6214 = vmatprep.subr.bf16.mxu0 %v6213_v59  ;;  %v6223_v23 = vpack.c.bf16 %v201_v21, %v196_v20  ;;  %v205_v24 = vld [vmem:[%s13268_s3 + $0x238] sm:$0xff]  ;;  %v207_v29 = vld [vmem:[%s13268_s3 + $0x248] sm:$0xff]  ;;  %v212_v31 = vld [vmem:[%s13268_s3 + $0x270] sm:$0xff] }
  0x16   :  { %6184 = vmatpush1.bf16.msra.mxu1 %v6183_v2  ;;  %v6193_v26 = vpack.c.bf16 %v210_v25, %v205_v24  ;;  %v209_v28 = vld [vmem:[%s13268_s3 + $0x258] sm:$0xff]  ;;  %v206_v32 = vld [vmem:[%s13268_s3 + $0x240] sm:$0xff]  ;;  %v211_v33 = vld [vmem:[%s13268_s3 + $0x268] sm:$0xff]  ;;  %v6225_v34 = vpack.c.bf16 %v212_v31, %v207_v29 }
  0x17   :  { %6186 = vmatprep.subr.bf16.mxu1 %v6185_v4  ;;  %v6195_v30 = vpack.c.bf16 %v209_v28, %v204_v27  ;;  %v6227_v35 = vpack.c.bf16 %v211_v33, %v206_v32  ;;  %v459_v37 = vld [vmem:[%s13269_s5 + $0x8] sm:$0xff]  ;;  %v466_v38 = vld [vmem:[%s13269_s5 + $0x40] sm:$0xff]  ;;  %v465_v45 = vld [vmem:[%s13269_s5 + $0x38] sm:$0xff] }
  0x18   :  { %6216 = vmatpush1.bf16.msra.mxu0 %v6215_v3  ;;  %v6253_v39 = vpack.c.bf16 %v466_v38, %v459_v37  ;;  %v5554_v40 = vld [vmem:[%s13270_s2] ss:$0 sm:$0xff]  ;;  %v143_v42 = vld [vmem:[%s13268_s3 + $0x48] sm:$0xff]  ;;  %v473_v48 = vld [vmem:[%s13269_s5 + $0x78] sm:$0xff] }
  0x19   :  { %6218 = vmatprep.subr.bf16.mxu0 %v6217_v8  ;;  %v138_v41 = vld [vmem:[%s13268_s3 + $0x20] sm:$0xff]  ;;  %v480_v49 = vld [vmem:[%s13269_s5 + $0xb0] sm:$0xff]  ;;  %v153_v53 = vld [vmem:[%s13268_s3 + $0x98] sm:$0xff] }
  0x1a   :  { %6188 = vmatpush1.bf16.msra.mxu1 %v6187_v14  ;;  %v458_v44 = vld [vmem:[%s13269_s5] sm:$0xff]  ;;  %v6230_v50 = vpack.c.bf16 %v143_v42, %v138_v41  ;;  %v148_v52 = vld [vmem:[%s13268_s3 + $0x70] sm:$0xff]  ;;  %v6257_v55 = vpack.c.bf16 %v480_v49, %v473_v48  ;;  %v479_v57 = vld [vmem:[%s13269_s5 + $0xa8] sm:$0xff] }
  0x1b   :  { %6190 = vmatprep.subr.bf16.mxu1 %v6189_v16  ;;  %v6255_v54 = vpack.c.bf16 %v465_v45, %v458_v44  ;;  %v472_v56 = vld [vmem:[%s13269_s5 + $0x70] sm:$0xff]  ;;  %v487_v58 = vld [vmem:[%s13269_s5 + $0xe8] sm:$0xff]  ;;  %v494_v59 = vld [vmem:[%s13269_s5 + $0x120] sm:$0xff]  ;;  %v6233_v60 = vpack.c.bf16 %v153_v53, %v148_v52 }
  0x1c   :  { %6220 = vmatpush1.bf16.msra.mxu0 %v6219_v15  ;;  %v158_v61 = vld [vmem:[%s13268_s3 + $0xc0] sm:$0xff]  ;;  %v163_v62 = vld [vmem:[%s13268_s3 + $0xe8] sm:$0xff]  ;;  %v6259_v63 = vpack.c.bf16 %v479_v57, %v472_v56  ;;  %v6261_v1 = vpack.c.bf16 %v494_v59, %v487_v58  ;;  %v493_v3 = vld [vmem:[%s13269_s5 + $0x118] sm:$0xff] }
  0x1d   :  { %6222 = vmatprep.subr.bf16.mxu0 %v6221_v19  ;;  %v486_v2 = vld [vmem:[%s13269_s5 + $0xe0] sm:$0xff]  ;;  %v501_v4 = vld [vmem:[%s13269_s5 + $0x158] sm:$0xff]  ;;  %v508_v5 = vld [vmem:[%s13269_s5 + $0x190] sm:$0xff]  ;;  %v6236_v6 = vpack.c.bf16 %v163_v62, %v158_v61 }
  0x1e   :  { %6192 = vmatpush1.bf16.msra.mxu1 %v6191_v22  ;;  %v168_v7 = vld [vmem:[%s13268_s3 + $0x110] sm:$0xff]  ;;  %v173_v8 = vld [vmem:[%s13268_s3 + $0x138] sm:$0xff]  ;;  %v6263_v9 = vpack.c.bf16 %v493_v3, %v486_v2  ;;  %v6265_v10 = vpack.c.bf16 %v508_v5, %v501_v4  ;;  %v507_v12 = vld [vmem:[%s13269_s5 + $0x188] sm:$0xff] }
  0x1f   :  { %6194 = vmatprep.subr.bf16.mxu1 %v6193_v26  ;;  %v500_v11 = vld [vmem:[%s13269_s5 + $0x150] sm:$0xff]  ;;  %v515_v13 = vld [vmem:[%s13269_s5 + $0x1c8] sm:$0xff]  ;;  %v522_v14 = vld [vmem:[%s13269_s5 + $0x200] sm:$0xff]  ;;  %v6239_v15 = vpack.c.bf16 %v173_v8, %v168_v7 }
  0x20   :  { %6224 = vmatpush1.bf16.msra.mxu0 %v6223_v23  ;;  %v178_v16 = vld [vmem:[%s13268_s3 + $0x160] sm:$0xff]  ;;  %v183_v17 = vld [vmem:[%s13268_s3 + $0x188] sm:$0xff]  ;;  %v6267_v18 = vpack.c.bf16 %v507_v12, %v500_v11  ;;  %v6269_v19 = vpack.c.bf16 %v522_v14, %v515_v13  ;;  %v521_v21 = vld [vmem:[%s13269_s5 + $0x1f8] sm:$0xff] }
  0x21   :  { %6226 = vmatprep.subr.bf16.mxu0 %v6225_v34  ;;  %v514_v20 = vld [vmem:[%s13269_s5 + $0x1c0] sm:$0xff]  ;;  %v529_v22 = vld [vmem:[%s13269_s5 + $0x238] sm:$0xff]  ;;  %v536_v23 = vld [vmem:[%s13269_s5 + $0x270] sm:$0xff]  ;;  %v6242_v24 = vpack.c.bf16 %v183_v17, %v178_v16 }
  0x22   :  { %6196 = vmatpush1.bf16.msra.mxu1 %v6195_v30  ;;  %v188_v25 = vld [vmem:[%s13268_s3 + $0x1b0] sm:$0xff]  ;;  %v193_v26 = vld [vmem:[%s13268_s3 + $0x1d8] sm:$0xff]  ;;  %v6271_v27 = vpack.c.bf16 %v521_v21, %v514_v20  ;;  %v6273_v28 = vpack.c.bf16 %v536_v23, %v529_v22  ;;  %v535_v30 = vld [vmem:[%s13269_s5 + $0x268] sm:$0xff] }
  0x23   :  { %6229 = vmatprep.subr.bf16.mxu1 %v13282_v36  ;;  %v528_v29 = vld [vmem:[%s13269_s5 + $0x230] sm:$0xff]  ;;  %v543_v31 = vld [vmem:[%s13269_s5 + $0x2a8] sm:$0xff]  ;;  %v550_v32 = vld [vmem:[%s13269_s5 + $0x2e0] sm:$0xff]  ;;  %v6245_v33 = vpack.c.bf16 %v193_v26, %v188_v25 }
  0x24   :  { %6228 = vmatpush1.bf16.msra.mxu0 %v6227_v35  ;;  %v198_v34 = vld [vmem:[%s13268_s3 + $0x200] sm:$0xff]  ;;  %v203_v35 = vld [vmem:[%s13268_s3 + $0x228] sm:$0xff]  ;;  %v6275_v37 = vpack.c.bf16 %v535_v30, %v528_v29  ;;  %v6277_v38 = vpack.c.bf16 %v550_v32, %v543_v31  ;;  %v557_v41 = vld [vmem:[%s13269_s5 + $0x318] sm:$0xff] }
  0x25   :  { %6254 = vmatprep.subr.bf16.mxu0 %v6253_v39  ;;  %v542_v39 = vld [vmem:[%s13269_s5 + $0x2a0] sm:$0xff]  ;;  %v564_v42 = vld [vmem:[%s13269_s5 + $0x350] sm:$0xff]  ;;  %v213_v45 = vld [vmem:[%s13268_s3 + $0x278] sm:$0xff] }
  0x26   :  { %v208_v44 = vld [vmem:[%s13268_s3 + $0x250] sm:$0xff]  ;;  %v6281_v49 = vpack.c.bf16 %v564_v42, %v557_v41  ;;  %v563_v52 = vld [vmem:[%s13269_s5 + $0x348] sm:$0xff]  ;;  %v706_v61 = vld [vmem:[%s13269_s5 + $0x7c0] sm:$0xff] }
  0x27   :  { %v692_v48 = vld [vmem:[%s13269_s5 + $0x750] sm:$0xff]  ;;  %v571_v53 = vld [vmem:[%s13269_s5 + $0x388] sm:$0xff]  ;;  %v585_v2 = vld [vmem:[%s13269_s5 + $0x3f8] sm:$0xff] }
  0x28   :  { %v684_v57 = vld [vmem:[%s13269_s5 + $0x710] sm:$0xff]  ;;  %v691_v58 = vld [vmem:[%s13269_s5 + $0x748] sm:$0xff]  ;;  %v705_v7 = vld [vmem:[%s13269_s5 + $0x7b8] sm:$0xff] }
  0x29   :  { %v699_v59 = vld [vmem:[%s13269_s5 + $0x788] sm:$0xff]  ;;  %v592_v3 = vld [vmem:[%s13269_s5 + $0x430] sm:$0xff]  ;;  %v6479_v4 = vpack.c.bf16 %v691_v58, %v684_v57  ;;  %v713_v8 = vld [vmem:[%s13269_s5 + $0x7f8] sm:$0xff] }
  0x2a   :  { %v6481_v5 = vpack.c.bf16 %v706_v61, %v699_v59  ;;  %v6289_v11 = vpack.c.bf16 %v592_v3, %v585_v2  ;;  %v584_v12 = vld [vmem:[%s13269_s5 + $0x3f0] sm:$0xff]  ;;  %v591_v13 = vld [vmem:[%s13269_s5 + $0x428] sm:$0xff]  ;;  %v734_v21 = vld [vmem:[%s13269_s5 + $0x8a0] sm:$0xff] }
  0x2b   :  { %v599_v14 = vld [vmem:[%s13269_s5 + $0x468] sm:$0xff]  ;;  %v6291_v20 = vpack.c.bf16 %v591_v13, %v584_v12  ;;  %v598_v23 = vld [vmem:[%s13269_s5 + $0x460] sm:$0xff]  ;;  %v613_v25 = vld [vmem:[%s13269_s5 + $0x4d8] sm:$0xff] }
  0x2c   :  { %v620_v26 = vld [vmem:[%s13269_s5 + $0x510] sm:$0xff]  ;;  %v726_v29 = vld [vmem:[%s13269_s5 + $0x860] sm:$0xff]  ;;  %v733_v30 = vld [vmem:[%s13269_s5 + $0x898] sm:$0xff] }
  0x2d   :  { %v741_v31 = vld [vmem:[%s13269_s5 + $0x8d8] sm:$0xff]  ;;  %v740_v42 = vld [vmem:[%s13269_s5 + $0x8d0] sm:$0xff] }
  0x2e   :  { %v769_v57 = vld [vmem:[%s13269_s5 + $0x9b8] sm:$0xff]  ;;  %v776_v59 = vld [vmem:[%s13269_s5 + $0x9f0] sm:$0xff] }
  0x2f   :  { %v640_v61 = vld [vmem:[%s13269_s5 + $0x5b0] sm:$0xff]  ;;  %v6501_v3 = vpack.c.bf16 %v776_v59, %v769_v57  ;;  %v887_v59 = vld [vmem:[%s13269_s5 + $0xd68] sm:$0xff] }
  0xd6   :  { %v129_v43 = vpop.f32.mrb[0].mxu0 }
  0xd7   :  { %v130_v46 = vadd.f32 %v5554_v40, %v129_v43  ;;  %v6003_v47 = vpop.f32.mrb[1].mxu0  ;;  %v549_v40 = vld [vmem:[%s13269_s5 + $0x2d8] sm:$0xff]  ;;  %v6248_v43 = vpack.c.bf16 %v203_v35, %v198_v34  ;;  %v6297_v34 = vpack.c.bf16 %v620_v26, %v613_v25  ;;  %v612_v35 = vld [vmem:[%s13269_s5 + $0x4d0] sm:$0xff]  ;;  %v810_v26 = vld [vmem:[%s13269_s5 + $0xb00] sm:$0xff] }
  0xd8   :  { %v6279_v47 = vpack.c.bf16 %v549_v40, %v542_v39  ;;  %v634_v39 = vld [vmem:[%s13269_s5 + $0x580] sm:$0xff]  ;;  %v6491_v40 = vpack.c.bf16 %v733_v30, %v726_v29  ;;  %v832_v29 = vld [vmem:[%s13269_s5 + $0xbb0] sm:$0xff] }
  0xd9   :  { %v8245_v51 = vmax.f32 %v130_v46, 0.0  ;;  %v685_v46 = vld [vmem:[%s13269_s5 + $0x718] sm:$0xff] }
  0xda   :  { %v6477_v56 = vpack.c.bf16 %v692_v48, %v685_v46  ;;  %v762_v46 = vld [vmem:[%s13269_s5 + $0x980] sm:$0xff] }
  0xdb   :  { %306 = vmatmul.mubr.f32.vlgmr.msra.gmra.mrb[0].mxu1 %v8245_v51  ;;  %377 = vmatmul.mubr.f32.vlgmr.msra.gmra.mrb[2].mxu0 %v8245_v51  ;;  %v626_v48 = vld [vmem:[%s13269_s5 + $0x540] sm:$0xff] }
  0xdc   :  { %6231 = vmatpush3.bf16.msra.mxu1 %v6230_v50  ;;  %6036 = vmatprep.mubr.msk.f32.mxu1 %vm7932_vm1, %v13284_v0  ;;  %v556_v50 = vld [vmem:[%s13269_s5 + $0x310] sm:$0xff] }
  0xdd   :  { %6232 = vmatprep.subr.bf16.mxu1 %v13282_v36  ;;  %6256 = vmatpush1.bf16.msra.mxu0 %v6255_v54  ;;  %v578_v54 = vld [vmem:[%s13269_s5 + $0x3c0] sm:$0xff] }
  0xde   :  { %6258 = vmatprep.subr.bf16.mxu0 %v6257_v55  ;;  %v6251_v55 = vpack.c.bf16 %v213_v45, %v208_v44  ;;  %v6285_v62 = vpack.c.bf16 %v578_v54, %v571_v53  ;;  %v755_v44 = vld [vmem:[%s13269_s5 + $0x948] sm:$0xff] }
  0xdf   :  { %v6497_v54 = vpack.c.bf16 %v762_v46, %v755_v44  ;;  %v859_v46 = vld [vmem:[%s13269_s5 + $0xc88] sm:$0xff] }
  0xe0   :  { %6234 = vmatpush3.bf16.msra.mxu1 %v6233_v60  ;;  %v6283_v60 = vpack.c.bf16 %v563_v52, %v556_v50  ;;  %v641_v50 = vld [vmem:[%s13269_s5 + $0x5b8] sm:$0xff]  ;;  %v648_v52 = vld [vmem:[%s13269_s5 + $0x5f0] sm:$0xff] }
  0xe1   :  { %6235 = vmatprep.subr.bf16.mxu1 %v13282_v36  ;;  %6260 = vmatpush1.bf16.msra.mxu0 %v6259_v63  ;;  %v570_v63 = vld [vmem:[%s13269_s5 + $0x380] sm:$0xff] }
  0xe2   :  { %6262 = vmatprep.subr.bf16.mxu0 %v6261_v1  ;;  %v577_v1 = vld [vmem:[%s13269_s5 + $0x3b8] sm:$0xff] }
  0xe4   :  { %6237 = vmatpush3.bf16.msra.mxu1 %v6236_v6  ;;  %v698_v6 = vld [vmem:[%s13269_s5 + $0x780] sm:$0xff] }
  0xe5   :  { %6238 = vmatprep.subr.bf16.mxu1 %v13282_v36  ;;  %6264 = vmatpush1.bf16.msra.mxu0 %v6263_v9  ;;  %v6287_v9 = vpack.c.bf16 %v577_v1, %v570_v63  ;;  %v6483_v16 = vpack.c.bf16 %v705_v7, %v698_v6  ;;  %v655_v63 = vld [vmem:[%s13269_s5 + $0x628] sm:$0xff]  ;;  %v662_v1 = vld [vmem:[%s13269_s5 + $0x660] sm:$0xff] }
  0xe6   :  { %6266 = vmatprep.subr.bf16.mxu0 %v6265_v10  ;;  %v720_v10 = vld [vmem:[%s13269_s5 + $0x830] sm:$0xff]  ;;  %v783_v6 = vld [vmem:[%s13269_s5 + $0xa28] sm:$0xff] }
  0xe7   :  { %v6485_v17 = vpack.c.bf16 %v720_v10, %v713_v8  ;;  %v790_v8 = vld [vmem:[%s13269_s5 + $0xa60] sm:$0xff] }
  0xe8   :  { %6240 = vmatpush3.bf16.msra.mxu1 %v6239_v15  ;;  %v606_v15 = vld [vmem:[%s13269_s5 + $0x4a0] sm:$0xff]  ;;  %v6505_v13 = vpack.c.bf16 %v790_v8, %v783_v6  ;;  %v901_v8 = vld [vmem:[%s13269_s5 + $0xdd8] sm:$0xff] }
  0xe9   :  { %6241 = vmatprep.subr.bf16.mxu1 %v13282_v36  ;;  %6268 = vmatpush1.bf16.msra.mxu0 %v6267_v18  ;;  %v712_v18 = vld [vmem:[%s13269_s5 + $0x7f0] sm:$0xff]  ;;  %v6293_v22 = vpack.c.bf16 %v606_v15, %v599_v14  ;;  %v654_v10 = vld [vmem:[%s13269_s5 + $0x620] sm:$0xff]  ;;  %v789_v15 = vld [vmem:[%s13269_s5 + $0xa58] sm:$0xff] }
  0xea   :  { %6270 = vmatprep.subr.bf16.mxu0 %v6269_v19  ;;  %v727_v19 = vld [vmem:[%s13269_s5 + $0x868] sm:$0xff]  ;;  %v782_v14 = vld [vmem:[%s13269_s5 + $0xa20] sm:$0xff] }
  0xec   :  { %6243 = vmatpush3.bf16.msra.mxu1 %v6242_v24  ;;  %v605_v24 = vld [vmem:[%s13269_s5 + $0x498] sm:$0xff] }
  0xed   :  { %6244 = vmatprep.subr.bf16.mxu1 %v13282_v36  ;;  %6272 = vmatpush1.bf16.msra.mxu0 %v6271_v27  ;;  %v6295_v32 = vpack.c.bf16 %v605_v24, %v598_v23  ;;  %v818_v23 = vld [vmem:[%s13269_s5 + $0xb40] sm:$0xff] }
  0xee   :  { %6274 = vmatprep.subr.bf16.mxu0 %v6273_v28  ;;  %v6489_v28 = vpack.c.bf16 %v734_v21, %v727_v19  ;;  %v803_v21 = vld [vmem:[%s13269_s5 + $0xac8] sm:$0xff] }
  0xf0   :  { %6246 = vmatpush3.bf16.msra.mxu1 %v6245_v33  ;;  %v748_v33 = vld [vmem:[%s13269_s5 + $0x910] sm:$0xff] }
  0xf1   :  { %6247 = vmatprep.subr.bf16.mxu1 %v13282_v36  ;;  %6276 = vmatpush1.bf16.msra.mxu0 %v6275_v37  ;;  %v619_v37 = vld [vmem:[%s13269_s5 + $0x508] sm:$0xff]  ;;  %v6493_v41 = vpack.c.bf16 %v748_v33, %v741_v31 }
  0xf2   :  { %6278 = vmatprep.subr.bf16.mxu0 %v6277_v38  ;;  %v627_v38 = vld [vmem:[%s13269_s5 + $0x548] sm:$0xff]  ;;  %v6299_v45 = vpack.c.bf16 %v619_v37, %v612_v35  ;;  %v846_v35 = vld [vmem:[%s13269_s5 + $0xc20] sm:$0xff] }
  0xf3   :  { %v831_v33 = vld [vmem:[%s13269_s5 + $0xba8] sm:$0xff] }
  0xf4   :  { %6249 = vmatpush3.bf16.msra.mxu1 %v6248_v43  ;;  %v747_v43 = vld [vmem:[%s13269_s5 + $0x908] sm:$0xff] }
  0xf5   :  { %6250 = vmatprep.subr.bf16.mxu1 %v13282_v36  ;;  %6280 = vmatpush1.bf16.msra.mxu0 %v6279_v47  ;;  %v6301_v47 = vpack.c.bf16 %v634_v39, %v627_v38  ;;  %v6495_v53 = vpack.c.bf16 %v747_v43, %v740_v42  ;;  %v838_v39 = vld [vmem:[%s13269_s5 + $0xbe0] sm:$0xff]  ;;  %v860_v42 = vld [vmem:[%s13269_s5 + $0xc90] sm:$0xff] }
  0xf6   :  { %6282 = vmatprep.subr.bf16.mxu0 %v6281_v49  ;;  %v633_v49 = vld [vmem:[%s13269_s5 + $0x578] sm:$0xff] }
  0xf7   :  { %v6303_v58 = vpack.c.bf16 %v633_v49, %v626_v48  ;;  %v874_v48 = vld [vmem:[%s13269_s5 + $0xd00] sm:$0xff] }
  0xf8   :  { %6252 = vmatpush3.bf16.msra.mxu1 %v6251_v55  ;;  %v754_v55 = vld [vmem:[%s13269_s5 + $0x940] sm:$0xff] }
  0xf9   :  { %6478 = vmatprep.subr.bf16.mxu1 %v6477_v56  ;;  %6284 = vmatpush1.bf16.msra.mxu0 %v6283_v60  ;;  %v761_v56 = vld [vmem:[%s13269_s5 + $0x978] sm:$0xff]  ;;  %v6305_v60 = vpack.c.bf16 %v648_v52, %v641_v50  ;;  %v866_v52 = vld [vmem:[%s13269_s5 + $0xcc0] sm:$0xff] }
  0xfa   :  { %6286 = vmatprep.subr.bf16.mxu0 %v6285_v62  ;;  %v647_v62 = vld [vmem:[%s13269_s5 + $0x5e8] sm:$0xff]  ;;  %v6499_v2 = vpack.c.bf16 %v761_v56, %v754_v55  ;;  %v888_v55 = vld [vmem:[%s13269_s5 + $0xd70] sm:$0xff] }
  0xfb   :  { %6037 = vmatmul.mubr.f32.vlgmr.msra.gmra.mrb[2].mxu1 %v8245_v51  ;;  %v719_v51 = vld [vmem:[%s13269_s5 + $0x828] sm:$0xff]  ;;  %v6307_v7 = vpack.c.bf16 %v647_v62, %v640_v61  ;;  %v676_v61 = vld [vmem:[%s13269_s5 + $0x6d0] sm:$0xff] }
  0xfc   :  { %6480 = vmatpush1.bf16.msra.mxu1 %v6479_v4  ;;  %v6487_v27 = vpack.c.bf16 %v719_v51, %v712_v18  ;;  %v768_v4 = vld [vmem:[%s13269_s5 + $0x9b0] sm:$0xff]  ;;  %v6507_v51 = vpack.c.bf16 %v789_v15, %v782_v14  ;;  %v895_v62 = vld [vmem:[%s13269_s5 + $0xda8] sm:$0xff] }
  0xfd   :  { %6482 = vmatprep.subr.bf16.mxu1 %v6481_v5  ;;  %6288 = vmatpush1.bf16.msra.mxu0 %v6287_v9  ;;  %v775_v5 = vld [vmem:[%s13269_s5 + $0x9e8] sm:$0xff]  ;;  %v6309_v9 = vpack.c.bf16 %v662_v1, %v655_v63  ;;  %v804_v18 = vld [vmem:[%s13269_s5 + $0xad0] sm:$0xff]  ;;  %v902_v1 = vld [vmem:[%s13269_s5 + $0xde0] sm:$0xff] }
  0xfe   :  { %6290 = vmatprep.subr.bf16.mxu0 %v6289_v11  ;;  %v661_v11 = vld [vmem:[%s13269_s5 + $0x658] sm:$0xff]  ;;  %v6503_v12 = vpack.c.bf16 %v775_v5, %v768_v4  ;;  %v6537_v6 = vpack.c.bf16 %v902_v1, %v895_v62  ;;  %v710_v62 = vld [vmem:[%s13269_s5 + $0x7e0] sm:$0xff] }
 0x100   :  { %6484 = vmatpush1.bf16.msra.mxu1 %v6483_v16  ;;  %v6311_v16 = vpack.c.bf16 %v661_v11, %v654_v10  ;;  %v690_v10 = vld [vmem:[%s13269_s5 + $0x740] sm:$0xff]  ;;  %v909_v11 = vld [vmem:[%s13269_s5 + $0xe18] sm:$0xff] }
 0x101   :  { %6486 = vmatprep.subr.bf16.mxu1 %v6485_v17  ;;  %6292 = vmatpush1.bf16.msra.mxu0 %v6291_v20  ;;  %v797_v17 = vld [vmem:[%s13269_s5 + $0xa98] sm:$0xff]  ;;  %v796_v20 = vld [vmem:[%s13269_s5 + $0xa90] sm:$0xff] }
 0x102   :  { %6294 = vmatprep.subr.bf16.mxu0 %v6293_v22  ;;  %v6509_v19 = vpack.c.bf16 %v804_v18, %v797_v17  ;;  %v811_v22 = vld [vmem:[%s13269_s5 + $0xb08] sm:$0xff]  ;;  %v6511_v24 = vpack.c.bf16 %v803_v21, %v796_v20 }
 0x103   :  { %v6513_v25 = vpack.c.bf16 %v818_v23, %v811_v22 }
 0x104   :  { %6488 = vmatpush1.bf16.msra.mxu1 %v6487_v27  ;;  %v817_v27 = vld [vmem:[%s13269_s5 + $0xb38] sm:$0xff] }
 0x105   :  { %6490 = vmatprep.subr.bf16.mxu1 %v6489_v28  ;;  %6296 = vmatpush1.bf16.msra.mxu0 %v6295_v32  ;;  %v825_v28 = vld [vmem:[%s13269_s5 + $0xb78] sm:$0xff]  ;;  %v6515_v30 = vpack.c.bf16 %v817_v27, %v810_v26  ;;  %v824_v32 = vld [vmem:[%s13269_s5 + $0xb70] sm:$0xff] }
 0x106   :  { %6298 = vmatprep.subr.bf16.mxu0 %v6297_v34  ;;  %v6517_v31 = vpack.c.bf16 %v832_v29, %v825_v28  ;;  %v839_v34 = vld [vmem:[%s13269_s5 + $0xbe8] sm:$0xff]  ;;  %v6519_v37 = vpack.c.bf16 %v831_v33, %v824_v32  ;;  %v682_v28 = vld [vmem:[%s13269_s5 + $0x700] sm:$0xff]  ;;  %v689_v33 = vld [vmem:[%s13269_s5 + $0x738] sm:$0xff] }
 0x107   :  { %v6521_v38 = vpack.c.bf16 %v846_v35, %v839_v34  ;;  %v908_v34 = vld [vmem:[%s13269_s5 + $0xe10] sm:$0xff]  ;;  %v915_v35 = vld [vmem:[%s13269_s5 + $0xe48] sm:$0xff] }
 0x108   :  { %6492 = vmatpush1.bf16.msra.mxu1 %v6491_v40  ;;  %v845_v40 = vld [vmem:[%s13269_s5 + $0xc18] sm:$0xff] }
 0x109   :  { %6494 = vmatprep.subr.bf16.mxu1 %v6493_v41  ;;  %6300 = vmatpush1.bf16.msra.mxu0 %v6299_v45  ;;  %v853_v41 = vld [vmem:[%s13269_s5 + $0xc58] sm:$0xff]  ;;  %v6523_v43 = vpack.c.bf16 %v845_v40, %v838_v39  ;;  %v852_v45 = vld [vmem:[%s13269_s5 + $0xc50] sm:$0xff] }
 0x10a   :  { %6302 = vmatprep.subr.bf16.mxu0 %v6301_v47  ;;  %v6525_v44 = vpack.c.bf16 %v860_v42, %v853_v41  ;;  %v867_v47 = vld [vmem:[%s13269_s5 + $0xcc8] sm:$0xff]  ;;  %v6527_v49 = vpack.c.bf16 %v859_v46, %v852_v45  ;;  %v697_v39 = vld [vmem:[%s13269_s5 + $0x778] sm:$0xff]  ;;  %v704_v40 = vld [vmem:[%s13269_s5 + $0x7b0] sm:$0xff]  ;;  %v6319_v45 = vpack.c.bf16 %v689_v33, %v682_v28  ;;  %v6543_v46 = vpack.c.bf16 %v915_v35, %v908_v34 }
 0x10b   :  { %v6529_v50 = vpack.c.bf16 %v874_v48, %v867_v47  ;;  %v923_v41 = vld [vmem:[%s13269_s5 + $0xe88] sm:$0xff]  ;;  %v930_v42 = vld [vmem:[%s13269_s5 + $0xec0] sm:$0xff]  ;;  %v696_v47 = vld [vmem:[%s13269_s5 + $0x770] sm:$0xff] }
 0x10c   :  { %6496 = vmatpush1.bf16.msra.mxu1 %v6495_v53  ;;  %v873_v53 = vld [vmem:[%s13269_s5 + $0xcf8] sm:$0xff]  ;;  %v703_v48 = vld [vmem:[%s13269_s5 + $0x7a8] sm:$0xff]  ;;  %v738_v28 = vld [vmem:[%s13269_s5 + $0x8c0] sm:$0xff] }
 0x10d   :  { %6498 = vmatprep.subr.bf16.mxu1 %v6497_v54  ;;  %6304 = vmatpush1.bf16.msra.mxu0 %v6303_v58  ;;  %v881_v54 = vld [vmem:[%s13269_s5 + $0xd38] sm:$0xff]  ;;  %v6531_v56 = vpack.c.bf16 %v873_v53, %v866_v52  ;;  %v880_v58 = vld [vmem:[%s13269_s5 + $0xd30] sm:$0xff]  ;;  %v6321_v52 = vpack.c.bf16 %v704_v40, %v697_v39  ;;  %v922_v53 = vld [vmem:[%s13269_s5 + $0xe80] sm:$0xff] }
 0x10e   :  { %6306 = vmatprep.subr.bf16.mxu0 %v6305_v60  ;;  %v6533_v57 = vpack.c.bf16 %v888_v55, %v881_v54  ;;  %v669_v60 = vld [vmem:[%s13269_s5 + $0x698] sm:$0xff]  ;;  %v6535_v4 = vpack.c.bf16 %v887_v59, %v880_v58  ;;  %v711_v55 = vld [vmem:[%s13269_s5 + $0x7e8] sm:$0xff]  ;;  %v944_v59 = vld [vmem:[%s13269_s5 + $0xf30] sm:$0xff] }
 0x10f   :  { %v6313_v63 = vpack.c.bf16 %v676_v61, %v669_v60  ;;  %v929_v54 = vld [vmem:[%s13269_s5 + $0xeb8] sm:$0xff]  ;;  %v6323_v60 = vpack.c.bf16 %v703_v48, %v696_v47  ;;  %v971_v33 = vld [vmem:[%s13269_s5 + $0x1008] sm:$0xff]  ;;  %v760_v35 = vld [vmem:[%s13269_s5 + $0x970] sm:$0xff] }
 0x110   :  { %6500 = vmatpush1.bf16.msra.mxu1 %v6499_v2  ;;  %v668_v2 = vld [vmem:[%s13269_s5 + $0x690] sm:$0xff]  ;;  %v937_v58 = vld [vmem:[%s13269_s5 + $0xef8] sm:$0xff]  ;;  %v6547_v61 = vpack.c.bf16 %v929_v54, %v922_v53  ;;  %v978_v47 = vld [vmem:[%s13269_s5 + $0x1040] sm:$0xff] }
 0x111   :  { %6502 = vmatprep.subr.bf16.mxu1 %v6501_v3  ;;  %6308 = vmatpush1.bf16.msra.mxu0 %v6307_v7  ;;  %v675_v3 = vld [vmem:[%s13269_s5 + $0x6c8] sm:$0xff]  ;;  %v894_v7 = vld [vmem:[%s13269_s5 + $0xda0] sm:$0xff]  ;;  %v753_v34 = vld [vmem:[%s13269_s5 + $0x938] sm:$0xff] }
 0x112   :  { %6310 = vmatprep.subr.bf16.mxu0 %v6309_v9  ;;  %v6315_v5 = vpack.c.bf16 %v675_v3, %v668_v2  ;;  %v683_v9 = vld [vmem:[%s13269_s5 + $0x708] sm:$0xff]  ;;  %v6539_v14 = vpack.c.bf16 %v901_v8, %v894_v7  ;;  %v6549_v2 = vpack.c.bf16 %v944_v59, %v937_v58  ;;  %v936_v3 = vld [vmem:[%s13269_s5 + $0xef0] sm:$0xff]  ;;  %v958_v8 = vld [vmem:[%s13269_s5 + $0xfa0] sm:$0xff] }
 0x113   :  { %v951_v7 = vld [vmem:[%s13269_s5 + $0xf68] sm:$0xff]  ;;  %v985_v48 = vld [vmem:[%s13269_s5 + $0x1078] sm:$0xff]  ;;  %v774_v53 = vld [vmem:[%s13269_s5 + $0x9e0] sm:$0xff] }
 0x114   :  { %6504 = vmatpush1.bf16.msra.mxu1 %v6503_v12  ;;  %v6317_v12 = vpack.c.bf16 %v690_v10, %v683_v9  ;;  %v993_v54 = vld [vmem:[%s13269_s5 + $0x10b8] sm:$0xff]  ;;  %v766_v58 = vld [vmem:[%s13269_s5 + $0x9a0] sm:$0xff] }
 0x115   :  { %6506 = vmatprep.subr.bf16.mxu1 %v6505_v13  ;;  %6312 = vmatpush1.bf16.msra.mxu0 %v6311_v16  ;;  %v916_v13 = vld [vmem:[%s13269_s5 + $0xe50] sm:$0xff]  ;;  %v216_v16 = vlaneseq  ;;  %v773_v59 = vld [vmem:[%s13269_s5 + $0x9d8] sm:$0xff] }
 0x116   :  { %6314 = vmatprep.subr.bf16.mxu0 %v6313_v63  ;;  %v6541_v15 = vpack.c.bf16 %v916_v13, %v909_v11  ;;  %v717_v63 = vld [vmem:[%s13269_s5 + $0x818] sm:$0xff]  ;;  %v724_v11 = vld [vmem:[%s13269_s5 + $0x850] sm:$0xff] }
 0x117   :  { %v8679_v17 = vshrl.u32 %v216_v16, 7  ;;  %v6327_v9 = vpack.c.bf16 %v717_v63, %v710_v62  ;;  %v957_v16 = vld [vmem:[%s13269_s5 + $0xf98] sm:$0xff]  ;;  %v992_v63 = vld [vmem:[%s13269_s5 + $0x10b0] sm:$0xff] }
 0x118   :  { %6508 = vmatpush1.bf16.msra.mxu1 %v6507_v51 }
 0x119   :  { %6510 = vmatprep.subr.bf16.mxu1 %v6509_v19  ;;  %6316 = vmatpush1.bf16.msra.mxu0 %v6315_v5  ;;  %13314 = vst [vmem:[#allocation2_spill] sm:$0xff] %v8679_v17  ;;  %v8682_v18 = vsub.s32 0, %v8679_v17  ;;  %v8685_v51 = vsub.s32 2, %v8679_v17  ;;  %v8690_v19 = vld [vmem:[%s13271_s4] sm:$0x1f]  ;;  %v8693_v20 = vsub.s32 1, %v8679_v17 }
 0x11a   :  { %6318 = vmatprep.subr.bf16.mxu0 %v6317_v12  ;;  %v8696_v21 = vsub.s32 3, %v8679_v17  ;;  %v725_v5 = vld [vmem:[%s13269_s5 + $0x858] sm:$0xff]  ;;  %v731_v12 = vld [vmem:[%s13269_s5 + $0x888] sm:$0xff]  ;;  %v8871_v62 = vsub.s32 4, %v8679_v17 }
 0x11b   :  { %13315 = vst [vmem:[#allocation3_spill] sm:$0xff] %v8685_v51  ;;  %13316 = vst [vmem:[#allocation4_spill] sm:$0xff] %v8693_v20  ;;  %v219_v22 = vrot.slane %v8690_v19, %v8682_v18  ;;  %v227_v23 = vrot.slane %v8690_v19, %v8685_v51 }
 0x11c   :  { %6512 = vmatpush1.bf16.msra.mxu1 %v6511_v24  ;;  %13317 = vst [vmem:[#allocation5_spill] sm:$0xff] %v8696_v21  ;;  %v223_v24 = vrot.slane %v8690_v19, %v8693_v20  ;;  %13318 = vst [vmem:[#allocation6_spill] sm:$0xff] %v8871_v62 }
 0x11d   :  { %6514 = vmatprep.subr.bf16.mxu1 %v6513_v25  ;;  %v231_v25 = vrot.slane %v8690_v19, %v8696_v21 }
 0x120   :  { %6516 = vmatpush1.bf16.msra.mxu1 %v6515_v30 }
 0x121   :  { %6518 = vmatprep.subr.bf16.mxu1 %v6517_v31 }
 0x124   :  { %6520 = vmatpush1.bf16.msra.mxu1 %v6519_v37 }
 0x125   :  { %6522 = vmatprep.subr.bf16.mxu1 %v6521_v38 }
 0x128   :  { %6524 = vmatpush1.bf16.msra.mxu1 %v6523_v43 }
 0x129   :  { %6526 = vmatprep.subr.bf16.mxu1 %v6525_v44 }
 0x12c   :  { %6528 = vmatpush1.bf16.msra.mxu1 %v6527_v49 }
 0x12d   :  { %6530 = vmatprep.subr.bf16.mxu1 %v6529_v50 }
 0x130   :  { %6532 = vmatpush1.bf16.msra.mxu1 %v6531_v56  ;;  %v6545_v56 = vpack.c.bf16 %v930_v42, %v923_v41  ;;  %v752_v41 = vld [vmem:[%s13269_s5 + $0x930] sm:$0xff]  ;;  %v759_v42 = vld [vmem:[%s13269_s5 + $0x968] sm:$0xff] }
 0x131   :  { %6534 = vmatprep.subr.bf16.mxu1 %v6533_v57  ;;  %v718_v57 = vld [vmem:[%s13269_s5 + $0x820] sm:$0xff] }
 0x132   :  { %v6325_v1 = vpack.c.bf16 %v718_v57, %v711_v55  ;;  %v1000_v55 = vld [vmem:[%s13269_s5 + $0x10f0] sm:$0xff]  ;;  %v6563_v57 = vpack.c.bf16 %v985_v48, %v978_v47  ;;  %v478_v47 = vld [vmem:[%s13269_s5 + $0xa0] sm:$0xff]  ;;  %v485_v48 = vld [vmem:[%s13269_s5 + $0xd8] sm:$0xff] }
 0x134   :  { %6536 = vmatpush1.bf16.msra.mxu1 %v6535_v4  ;;  %v943_v4 = vld [vmem:[%s13269_s5 + $0xf28] sm:$0xff] }
 0x135   :  { %6538 = vmatprep.subr.bf16.mxu1 %v6537_v6  ;;  %v732_v6 = vld [vmem:[%s13269_s5 + $0x890] sm:$0xff]  ;;  %v6551_v10 = vpack.c.bf16 %v943_v4, %v936_v3  ;;  %v1007_v4 = vld [vmem:[%s13269_s5 + $0x1128] sm:$0xff] }
 0x136   :  { %v6329_v13 = vpack.c.bf16 %v732_v6, %v725_v5  ;;  %v788_v3 = vld [vmem:[%s13269_s5 + $0xa50] sm:$0xff]  ;;  %v1014_v5 = vld [vmem:[%s13269_s5 + $0x1160] sm:$0xff]  ;;  %v6343_v6 = vpack.c.bf16 %v773_v59, %v766_v58  ;;  %v6739_v58 = vpack.c.bf16 %v485_v48, %v478_v47  ;;  %v879_v47 = vld [vmem:[%s13269_s5 + $0xd28] sm:$0xff] }
 0x137   :  { %v822_v59 = vld [vmem:[%s13269_s5 + $0xb60] sm:$0xff] }
 0x138   :  { %6540 = vmatpush1.bf16.msra.mxu1 %v6539_v14  ;;  %v6553_v14 = vpack.c.bf16 %v958_v8, %v951_v7  ;;  %v780_v8 = vld [vmem:[%s13269_s5 + $0xa10] sm:$0xff]  ;;  %v886_v48 = vld [vmem:[%s13269_s5 + $0xd60] sm:$0xff] }
 0x139   :  { %6542 = vmatprep.subr.bf16.mxu1 %v6541_v15  ;;  %v950_v15 = vld [vmem:[%s13269_s5 + $0xf60] sm:$0xff] }
 0x1ae   :  { %v307_v26 = vpop.f32.mrb[0].mxu1  ;;  %v378_v27 = vpop.f32.mrb[2].mxu0 }
 0x1af   :  { %v308_v29 = vadd.f32 %v307_v26, %v219_v22  ;;  %v379_v30 = vadd.f32 %v378_v27, %v227_v23  ;;  %v309_v31 = vpop.f32.mrb[1].mxu1  ;;  %v380_v32 = vpop.f32.mrb[3].mxu0  ;;  %v739_v22 = vld [vmem:[%s13269_s5 + $0x8c8] sm:$0xff]  ;;  %v746_v23 = vld [vmem:[%s13269_s5 + $0x900] sm:$0xff]  ;;  %v6331_v26 = vpack.c.bf16 %v731_v12, %v724_v11  ;;  %v6555_v27 = vpack.c.bf16 %v957_v16, %v950_v15 }
 0x1b0   :  { %v310_v37 = vadd.f32 %v309_v31, %v223_v24  ;;  %v381_v38 = vadd.f32 %v380_v32, %v231_v25  ;;  %v965_v24 = vld [vmem:[%s13269_s5 + $0xfd8] sm:$0xff]  ;;  %v972_v25 = vld [vmem:[%s13269_s5 + $0x1010] sm:$0xff]  ;;  %v6569_v12 = vpack.c.bf16 %v1014_v5, %v1007_v4  ;;  %v795_v15 = vld [vmem:[%s13269_s5 + $0xa88] sm:$0xff] }
 0x1b1   :  { %v8740_v49 = vmax.f32 %v308_v29, 0.0  ;;  %v8742_v50 = vmax.f32 %v379_v30, 0.0  ;;  %v745_v29 = vld [vmem:[%s13269_s5 + $0x8f8] sm:$0xff]  ;;  %v6333_v30 = vpack.c.bf16 %v746_v23, %v739_v22  ;;  %v6557_v31 = vpack.c.bf16 %v972_v25, %v965_v24  ;;  %v964_v32 = vld [vmem:[%s13269_s5 + $0xfd0] sm:$0xff]  ;;  %v802_v16 = vld [vmem:[%s13269_s5 + $0xac0] sm:$0xff] }
 0x1b2   :  { %v8730_v43 = vmax.f32 %v310_v37, 0.0  ;;  %v8732_v44 = vmax.f32 %v381_v38, 0.0  ;;  %v979_v37 = vld [vmem:[%s13269_s5 + $0x1048] sm:$0xff]  ;;  %v986_v38 = vld [vmem:[%s13269_s5 + $0x1080] sm:$0xff]  ;;  %v6335_v39 = vpack.c.bf16 %v745_v29, %v738_v28  ;;  %v6559_v40 = vpack.c.bf16 %v971_v33, %v964_v32  ;;  %v464_v32 = vld [vmem:[%s13269_s5 + $0x30] sm:$0xff] }
 0x1b3   :  { %v583_v22 = vld [vmem:[%s13269_s5 + $0x3e8] sm:$0xff]  ;;  %v6349_v29 = vpack.c.bf16 %v802_v16, %v795_v15  ;;  %v844_v4 = vld [vmem:[%s13269_s5 + $0xc10] sm:$0xff]  ;;  %v618_v5 = vld [vmem:[%s13269_s5 + $0x500] sm:$0xff] }
 0x1b4   :  { %1119 = vmatprep.mubr.f32.mxu0 %v8730_v43  ;;  %1403 = vmatprep.mubr.f32.mxu1 %v8732_v44  ;;  %v471_v33 = vld [vmem:[%s13269_s5 + $0x68] sm:$0xff]  ;;  %v858_v16 = vld [vmem:[%s13269_s5 + $0xc80] sm:$0xff] }
 0x1b5   :  { %1120 = vmatmul.mubr.f32.vlgmr.msra.gmra.mrb[4].mxu0 %v8740_v49  ;;  %1404 = vmatmul.mubr.f32.vlgmr.msra.gmra.mrb[4].mxu1 %v8742_v50  ;;  %v851_v15 = vld [vmem:[%s13269_s5 + $0xc48] sm:$0xff] }
 0x1b6   :  { %6320 = vmatpush1.bf16.msra.mxu0 %v6319_v45  ;;  %6544 = vmatpush1.bf16.msra.mxu1 %v6543_v46  ;;  %v6337_v45 = vpack.c.bf16 %v760_v35, %v753_v34  ;;  %v6561_v46 = vpack.c.bf16 %v986_v38, %v979_v37  ;;  %v809_v34 = vld [vmem:[%s13269_s5 + $0xaf8] sm:$0xff]  ;;  %v816_v35 = vld [vmem:[%s13269_s5 + $0xb30] sm:$0xff]  ;;  %v590_v37 = vld [vmem:[%s13269_s5 + $0x420] sm:$0xff] }
 0x1b7   :  { %1190 = vmatprep.mubr.f32.mxu0 %v8732_v44  ;;  %6322 = vmatprep.subr.bf16.mxu0 %v6321_v52  ;;  %v767_v52 = vld [vmem:[%s13269_s5 + $0x9a8] sm:$0xff]  ;;  %v597_v38 = vld [vmem:[%s13269_s5 + $0x458] sm:$0xff] }
 0x1b8   :  { %6546 = vmatprep.subr.bf16.mxu1 %v6545_v56  ;;  %1474 = vmatprep.mubr.f32.mxu1 %v13284_v0  ;;  %v6339_v56 = vpack.c.bf16 %v759_v42, %v752_v41  ;;  %v808_v41 = vld [vmem:[%s13269_s5 + $0xaf0] sm:$0xff]  ;;  %v815_v42 = vld [vmem:[%s13269_s5 + $0xb28] sm:$0xff] }
 0x1ba   :  { %6324 = vmatpush1.bf16.msra.mxu0 %v6323_v60  ;;  %6548 = vmatpush1.bf16.msra.mxu1 %v6547_v61  ;;  %v6341_v60 = vpack.c.bf16 %v774_v53, %v767_v52  ;;  %v6565_v61 = vpack.c.bf16 %v1000_v55, %v993_v54  ;;  %v823_v52 = vld [vmem:[%s13269_s5 + $0xb68] sm:$0xff]  ;;  %v6737_v53 = vpack.c.bf16 %v597_v38, %v590_v37  ;;  %v830_v54 = vld [vmem:[%s13269_s5 + $0xba0] sm:$0xff]  ;;  %v604_v55 = vld [vmem:[%s13269_s5 + $0x490] sm:$0xff] }
 0x1bb   :  { %6326 = vmatprep.subr.bf16.mxu0 %v6325_v1  ;;  %6550 = vmatprep.subr.bf16.mxu1 %v6549_v2  ;;  %v999_v1 = vld [vmem:[%s13269_s5 + $0x10e8] sm:$0xff]  ;;  %v781_v2 = vld [vmem:[%s13269_s5 + $0xa18] sm:$0xff]  ;;  %v864_v38 = vld [vmem:[%s13269_s5 + $0xcb0] sm:$0xff] }
 0x1bc   :  { %v6567_v7 = vpack.c.bf16 %v999_v1, %v992_v63  ;;  %v6345_v11 = vpack.c.bf16 %v788_v3, %v781_v2  ;;  %v492_v1 = vld [vmem:[%s13269_s5 + $0x110] sm:$0xff]  ;;  %v499_v2 = vld [vmem:[%s13269_s5 + $0x148] sm:$0xff]  ;;  %v837_v3 = vld [vmem:[%s13269_s5 + $0xbd8] sm:$0xff] }
 0x1be   :  { %6328 = vmatpush1.bf16.msra.mxu0 %v6327_v9  ;;  %6552 = vmatpush1.bf16.msra.mxu1 %v6551_v10  ;;  %v787_v9 = vld [vmem:[%s13269_s5 + $0xa48] sm:$0xff]  ;;  %v235_v10 = vrot.slane %v8690_v19, %v8871_v62  ;;  %v576_v19 = vld [vmem:[%s13269_s5 + $0x3b0] sm:$0xff] }
 0x1bf   :  { %6330 = vmatprep.subr.bf16.mxu0 %v6329_v13  ;;  %6554 = vmatprep.subr.bf16.mxu1 %v6553_v14  ;;  %v1006_v13 = vld [vmem:[%s13269_s5 + $0x1120] sm:$0xff]  ;;  %v1013_v14 = vld [vmem:[%s13269_s5 + $0x1158] sm:$0xff]  ;;  %v6347_v24 = vpack.c.bf16 %v787_v9, %v780_v8  ;;  %v6743_v8 = vpack.c.bf16 %v499_v2, %v492_v1  ;;  %v836_v9 = vld [vmem:[%s13269_s5 + $0xbd0] sm:$0xff] }
 0x1c0   :  { %v6571_v25 = vpack.c.bf16 %v1013_v14, %v1006_v13  ;;  %v506_v13 = vld [vmem:[%s13269_s5 + $0x180] sm:$0xff]  ;;  %v513_v14 = vld [vmem:[%s13269_s5 + $0x1b8] sm:$0xff]  ;;  %v900_v1 = vld [vmem:[%s13269_s5 + $0xdd0] sm:$0xff] }
 0x1c1   :  { %v674_v2 = vld [vmem:[%s13269_s5 + $0x6c0] sm:$0xff] }
 0x1c2   :  { %6332 = vmatpush1.bf16.msra.mxu0 %v6331_v26  ;;  %6556 = vmatpush1.bf16.msra.mxu1 %v6555_v27  ;;  %v794_v26 = vld [vmem:[%s13269_s5 + $0xa80] sm:$0xff] }
 0x1c3   :  { %6334 = vmatprep.subr.bf16.mxu0 %v6333_v30  ;;  %6558 = vmatprep.subr.bf16.mxu1 %v6557_v31  ;;  %v6733_v30 = vpack.c.bf16 %v583_v22, %v576_v19  ;;  %v801_v31 = vld [vmem:[%s13269_s5 + $0xab8] sm:$0xff]  ;;  %v632_v19 = vld [vmem:[%s13269_s5 + $0x570] sm:$0xff]  ;;  %v639_v22 = vld [vmem:[%s13269_s5 + $0x5a8] sm:$0xff] }
 0x1c6   :  { %6336 = vmatpush1.bf16.msra.mxu0 %v6335_v39  ;;  %6560 = vmatpush1.bf16.msra.mxu1 %v6559_v40  ;;  %v6351_v39 = vpack.c.bf16 %v801_v31, %v794_v26  ;;  %v6735_v40 = vpack.c.bf16 %v471_v33, %v464_v32  ;;  %v857_v26 = vld [vmem:[%s13269_s5 + $0xc78] sm:$0xff]  ;;  %v872_v32 = vld [vmem:[%s13269_s5 + $0xcf0] sm:$0xff]  ;;  %v646_v33 = vld [vmem:[%s13269_s5 + $0x5e0] sm:$0xff] }
 0x1c7   :  { %6338 = vmatprep.subr.bf16.mxu0 %v6337_v45  ;;  %6562 = vmatprep.subr.bf16.mxu1 %v6561_v46  ;;  %v6353_v46 = vpack.c.bf16 %v816_v35, %v809_v34  ;;  %v865_v31 = vld [vmem:[%s13269_s5 + $0xcb8] sm:$0xff] }
 0x1c8   :  { %v653_v34 = vld [vmem:[%s13269_s5 + $0x618] sm:$0xff] }
 0x1ca   :  { %6340 = vmatpush1.bf16.msra.mxu0 %v6339_v56  ;;  %6564 = vmatpush1.bf16.msra.mxu1 %v6563_v57  ;;  %v611_v56 = vld [vmem:[%s13269_s5 + $0x4c8] sm:$0xff]  ;;  %v6355_v57 = vpack.c.bf16 %v815_v42, %v808_v41  ;;  %v6753_v41 = vpack.c.bf16 %v653_v34, %v646_v33  ;;  %v534_v42 = vld [vmem:[%s13269_s5 + $0x260] sm:$0xff]  ;;  %v920_v34 = vld [vmem:[%s13269_s5 + $0xe70] sm:$0xff] }
 0x1cb   :  { %6342 = vmatprep.subr.bf16.mxu0 %v6341_v60  ;;  %6566 = vmatprep.subr.bf16.mxu1 %v6565_v61  ;;  %v829_v60 = vld [vmem:[%s13269_s5 + $0xb98] sm:$0xff]  ;;  %v6357_v61 = vpack.c.bf16 %v830_v54, %v823_v52  ;;  %v6741_v63 = vpack.c.bf16 %v611_v56, %v604_v55  ;;  %v660_v52 = vld [vmem:[%s13269_s5 + $0x650] sm:$0xff]  ;;  %v878_v56 = vld [vmem:[%s13269_s5 + $0xd20] sm:$0xff] }
 0x1ce   :  { %v449_v23 = vpop.f32.mrb[2].mxu1  ;;  %6344 = vmatpush1.bf16.msra.mxu0 %v6343_v6  ;;  %6568 = vmatpush1.bf16.msra.mxu1 %v6567_v7  ;;  %v625_v6 = vld [vmem:[%s13269_s5 + $0x538] sm:$0xff]  ;;  %v6359_v7 = vpack.c.bf16 %v829_v60, %v822_v59  ;;  %v548_v60 = vld [vmem:[%s13269_s5 + $0x2d0] sm:$0xff] }
 0x1cf   :  { %v450_v27 = vadd.f32 %v449_v23, %v235_v10  ;;  %v6038_v28 = vpop.f32.mrb[3].mxu1  ;;  %6346 = vmatprep.subr.bf16.mxu0 %v6345_v11  ;;  %6570 = vmatprep.subr.bf16.mxu1 %v6569_v12  ;;  %v843_v10 = vld [vmem:[%s13269_s5 + $0xc08] sm:$0xff]  ;;  %v6361_v11 = vpack.c.bf16 %v844_v4, %v837_v3  ;;  %v6745_v12 = vpack.c.bf16 %v625_v6, %v618_v5  ;;  %v681_v3 = vld [vmem:[%s13269_s5 + $0x6f8] sm:$0xff]  ;;  %v892_v6 = vld [vmem:[%s13269_s5 + $0xd90] sm:$0xff] }
 0x1d0   :  { %v6363_v23 = vpack.c.bf16 %v843_v10, %v836_v9  ;;  %v6749_v28 = vpack.c.bf16 %v639_v22, %v632_v19  ;;  %v6761_v9 = vpack.c.bf16 %v681_v3, %v674_v2  ;;  %v562_v10 = vld [vmem:[%s13269_s5 + $0x340] sm:$0xff]  ;;  %v948_v3 = vld [vmem:[%s13269_s5 + $0xf50] sm:$0xff] }
 0x1d1   :  { %v8947_v45 = vmax.f32 %v450_v27, 0.0  ;;  %v6365_v27 = vpack.c.bf16 %v858_v16, %v851_v15  ;;  %v807_v15 = vld [vmem:[%s13269_s5 + $0xae8] sm:$0xff]  ;;  %v906_v22 = vld [vmem:[%s13269_s5 + $0xe00] sm:$0xff] }
 0x1d2   :  { %6348 = vmatpush1.bf16.msra.mxu0 %v6347_v24  ;;  %6572 = vmatpush1.bf16.msra.mxu1 %v6571_v25  ;;  %v6747_v24 = vpack.c.bf16 %v513_v14, %v506_v13  ;;  %v850_v25 = vld [vmem:[%s13269_s5 + $0xc40] sm:$0xff]  ;;  %v800_v14 = vld [vmem:[%s13269_s5 + $0xab0] sm:$0xff] }
 0x1d3   :  { %6350 = vmatprep.subr.bf16.mxu0 %v6349_v29  ;;  %6734 = vmatprep.subr.bf16.mxu1 %v6733_v30  ;;  %v520_v29 = vld [vmem:[%s13269_s5 + $0x1f0] sm:$0xff]  ;;  %v527_v30 = vld [vmem:[%s13269_s5 + $0x228] sm:$0xff]  ;;  %v6367_v35 = vpack.c.bf16 %v857_v26, %v850_v25  ;;  %v914_v13 = vld [vmem:[%s13269_s5 + $0xe40] sm:$0xff] }
 0x1d4   :  { %v6751_v37 = vpack.c.bf16 %v527_v30, %v520_v29  ;;  %v913_v25 = vld [vmem:[%s13269_s5 + $0xe38] sm:$0xff]  ;;  %v688_v26 = vld [vmem:[%s13269_s5 + $0x730] sm:$0xff]  ;;  %v814_v30 = vld [vmem:[%s13269_s5 + $0xb20] sm:$0xff] }
 0x1d5   :  { %1475 = vmatmul.mubr.f32.vlgmr.msra.gmra.mrb[4].mxu1 %v8947_v45  ;;  %v928_v29 = vld [vmem:[%s13269_s5 + $0xeb0] sm:$0xff] }
 0x1d6   :  { %6352 = vmatpush1.bf16.msra.mxu0 %v6351_v39  ;;  %6736 = vmatpush3.bf16.msra.mxu1 %v6735_v40  ;;  %v871_v39 = vld [vmem:[%s13269_s5 + $0xce8] sm:$0xff]  ;;  %v6369_v40 = vpack.c.bf16 %v872_v32, %v865_v31  ;;  %v821_v31 = vld [vmem:[%s13269_s5 + $0xb58] sm:$0xff]  ;;  %v6383_v32 = vpack.c.bf16 %v913_v25, %v906_v22 }
 0x1d7   :  { %1758 = vmatprep.mubr.f32.mxu1 %v8730_v43  ;;  %6354 = vmatprep.subr.bf16.mxu0 %v6353_v46  ;;  %v541_v46 = vld [vmem:[%s13269_s5 + $0x298] sm:$0xff]  ;;  %v6371_v54 = vpack.c.bf16 %v871_v39, %v864_v38  ;;  %v702_v38 = vld [vmem:[%s13269_s5 + $0x7a0] sm:$0xff] }
 0x1d8   :  { %6738 = vmatprep.subr.bf16.mxu1 %v6737_v53  ;;  %v667_v53 = vld [vmem:[%s13269_s5 + $0x688] sm:$0xff]  ;;  %v6755_v55 = vpack.c.bf16 %v541_v46, %v534_v42  ;;  %v709_v39 = vld [vmem:[%s13269_s5 + $0x7d8] sm:$0xff]  ;;  %v942_v42 = vld [vmem:[%s13269_s5 + $0xf20] sm:$0xff] }
 0x1d9   :  { %v6757_v59 = vpack.c.bf16 %v667_v53, %v660_v52  ;;  %v828_v46 = vld [vmem:[%s13269_s5 + $0xb90] sm:$0xff]  ;;  %v6771_v52 = vpack.c.bf16 %v709_v39, %v702_v38  ;;  %v934_v53 = vld [vmem:[%s13269_s5 + $0xee0] sm:$0xff]  ;;  %v977_v25 = vld [vmem:[%s13269_s5 + $0x1038] sm:$0xff] }
 0x1da   :  { %6356 = vmatpush1.bf16.msra.mxu0 %v6355_v57  ;;  %6740 = vmatpush3.bf16.msra.mxu1 %v6739_v58  ;;  %v885_v57 = vld [vmem:[%s13269_s5 + $0xd58] sm:$0xff]  ;;  %v6373_v58 = vpack.c.bf16 %v886_v48, %v879_v47  ;;  %v835_v47 = vld [vmem:[%s13269_s5 + $0xbc8] sm:$0xff]  ;;  %v998_v39 = vld [vmem:[%s13269_s5 + $0x10e0] sm:$0xff] }
 0x1db   :  { %6358 = vmatprep.subr.bf16.mxu0 %v6357_v61  ;;  %6742 = vmatprep.subr.bf16.mxu1 %v6741_v63  ;;  %v555_v61 = vld [vmem:[%s13269_s5 + $0x308] sm:$0xff]  ;;  %v893_v63 = vld [vmem:[%s13269_s5 + $0xd98] sm:$0xff]  ;;  %v6375_v4 = vpack.c.bf16 %v885_v57, %v878_v56  ;;  %v6773_v56 = vpack.c.bf16 %v835_v47, %v828_v46  ;;  %v716_v57 = vld [vmem:[%s13269_s5 + $0x810] sm:$0xff] }
 0x1dc   :  { %v6759_v5 = vpack.c.bf16 %v555_v61, %v548_v60  ;;  %v956_v60 = vld [vmem:[%s13269_s5 + $0xf90] sm:$0xff]  ;;  %v842_v61 = vld [vmem:[%s13269_s5 + $0xc00] sm:$0xff]  ;;  %v991_v38 = vld [vmem:[%s13269_s5 + $0x10a8] sm:$0xff] }
 0x1dd   :  { %v990_v47 = vld [vmem:[%s13269_s5 + $0x10a0] sm:$0xff] }
 0x1de   :  { %6360 = vmatpush1.bf16.msra.mxu0 %v6359_v7  ;;  %6744 = vmatpush3.bf16.msra.mxu1 %v6743_v8  ;;  %v899_v7 = vld [vmem:[%s13269_s5 + $0xdc8] sm:$0xff]  ;;  %v6377_v8 = vpack.c.bf16 %v900_v1, %v893_v63  ;;  %v849_v63 = vld [vmem:[%s13269_s5 + $0xc38] sm:$0xff] }
 0x1df   :  { %6362 = vmatprep.subr.bf16.mxu0 %v6361_v11  ;;  %6746 = vmatprep.subr.bf16.mxu1 %v6745_v12  ;;  %v569_v11 = vld [vmem:[%s13269_s5 + $0x378] sm:$0xff]  ;;  %v907_v12 = vld [vmem:[%s13269_s5 + $0xe08] sm:$0xff]  ;;  %v6379_v16 = vpack.c.bf16 %v899_v7, %v892_v6  ;;  %v6777_v6 = vpack.c.bf16 %v849_v63, %v842_v61  ;;  %v730_v7 = vld [vmem:[%s13269_s5 + $0x880] sm:$0xff] }
 0x1e0   :  { %v6763_v19 = vpack.c.bf16 %v569_v11, %v562_v10  ;;  %v970_v10 = vld [vmem:[%s13269_s5 + $0x1000] sm:$0xff]  ;;  %v856_v11 = vld [vmem:[%s13269_s5 + $0xc70] sm:$0xff] }
 0x1e1   :  { %v1004_v63 = vld [vmem:[%s13269_s5 + $0x1110] sm:$0xff] }
 0x1e2   :  { %6364 = vmatpush1.bf16.msra.mxu0 %v6363_v23  ;;  %6748 = vmatpush3.bf16.msra.mxu1 %v6747_v24  ;;  %v6381_v23 = vpack.c.bf16 %v914_v13, %v907_v12  ;;  %v6765_v24 = vpack.c.bf16 %v807_v15, %v800_v14  ;;  %v863_v12 = vld [vmem:[%s13269_s5 + $0xca8] sm:$0xff]  ;;  %v962_v15 = vld [vmem:[%s13269_s5 + $0xfc0] sm:$0xff] }
 0x1e3   :  { %6366 = vmatprep.subr.bf16.mxu0 %v6365_v27  ;;  %6750 = vmatprep.subr.bf16.mxu1 %v6749_v28  ;;  %v695_v27 = vld [vmem:[%s13269_s5 + $0x768] sm:$0xff]  ;;  %v921_v28 = vld [vmem:[%s13269_s5 + $0xe78] sm:$0xff]  ;;  %v6781_v22 = vpack.c.bf16 %v863_v12, %v856_v11  ;;  %v460_v11 = vld [vmem:[%s13269_s5 + $0x10] sm:$0xff] }
 0x1e4   :  { %v6767_v33 = vpack.c.bf16 %v695_v27, %v688_v26  ;;  %v984_v26 = vld [vmem:[%s13269_s5 + $0x1070] sm:$0xff]  ;;  %v870_v27 = vld [vmem:[%s13269_s5 + $0xce0] sm:$0xff]  ;;  %v467_v12 = vld [vmem:[%s13269_s5 + $0x48] sm:$0xff] }
 0x1e6   :  { %6368 = vmatpush1.bf16.msra.mxu0 %v6367_v35  ;;  %6752 = vmatpush3.bf16.msra.mxu1 %v6751_v37  ;;  %v927_v35 = vld [vmem:[%s13269_s5 + $0xea8] sm:$0xff]  ;;  %v6385_v37 = vpack.c.bf16 %v928_v29, %v921_v28  ;;  %v877_v28 = vld [vmem:[%s13269_s5 + $0xd18] sm:$0xff] }
 0x1e7   :  { %6370 = vmatprep.subr.bf16.mxu0 %v6369_v40  ;;  %6754 = vmatprep.subr.bf16.mxu1 %v6753_v41  ;;  %v935_v40 = vld [vmem:[%s13269_s5 + $0xee8] sm:$0xff]  ;;  %v6769_v41 = vpack.c.bf16 %v821_v31, %v814_v30  ;;  %v6387_v48 = vpack.c.bf16 %v927_v35, %v920_v34  ;;  %v976_v31 = vld [vmem:[%s13269_s5 + $0x1030] sm:$0xff]  ;;  %v6785_v34 = vpack.c.bf16 %v877_v28, %v870_v27  ;;  %v758_v35 = vld [vmem:[%s13269_s5 + $0x960] sm:$0xff] }
 0x1e8   :  { %v933_v27 = vld [vmem:[%s13269_s5 + $0xed8] sm:$0xff] }
 0x1e9   :  { %v489_v28 = vld [vmem:[%s13269_s5 + $0xf8] sm:$0xff] }
 0x1ea   :  { %6372 = vmatpush1.bf16.msra.mxu0 %v6371_v54  ;;  %6756 = vmatpush3.bf16.msra.mxu1 %v6755_v55  ;;  %v941_v54 = vld [vmem:[%s13269_s5 + $0xf18] sm:$0xff]  ;;  %v6389_v55 = vpack.c.bf16 %v942_v42, %v935_v40  ;;  %v884_v40 = vld [vmem:[%s13269_s5 + $0xd50] sm:$0xff] }
 0x1eb   :  { %6374 = vmatprep.subr.bf16.mxu0 %v6373_v58  ;;  %6758 = vmatprep.subr.bf16.mxu1 %v6757_v59  ;;  %v723_v58 = vld [vmem:[%s13269_s5 + $0x848] sm:$0xff]  ;;  %v949_v59 = vld [vmem:[%s13269_s5 + $0xf58] sm:$0xff]  ;;  %v6391_v1 = vpack.c.bf16 %v941_v54, %v934_v53  ;;  %v772_v54 = vld [vmem:[%s13269_s5 + $0x9d0] sm:$0xff] }
 0x1ec   :  { %v6775_v2 = vpack.c.bf16 %v723_v58, %v716_v57  ;;  %v1012_v57 = vld [vmem:[%s13269_s5 + $0x1150] sm:$0xff]  ;;  %v898_v58 = vld [vmem:[%s13269_s5 + $0xdc0] sm:$0xff] }
 0x1ee   :  { %6376 = vmatpush1.bf16.msra.mxu0 %v6375_v4  ;;  %6760 = vmatpush3.bf16.msra.mxu1 %v6759_v5  ;;  %v955_v4 = vld [vmem:[%s13269_s5 + $0xf88] sm:$0xff]  ;;  %v6393_v5 = vpack.c.bf16 %v956_v60, %v949_v59  ;;  %v905_v59 = vld [vmem:[%s13269_s5 + $0xdf8] sm:$0xff] }
 0x1ef   :  { %6378 = vmatprep.subr.bf16.mxu0 %v6377_v8  ;;  %6762 = vmatprep.subr.bf16.mxu1 %v6761_v9  ;;  %v737_v8 = vld [vmem:[%s13269_s5 + $0x8b8] sm:$0xff]  ;;  %v963_v9 = vld [vmem:[%s13269_s5 + $0xfc8] sm:$0xff]  ;;  %v6395_v13 = vpack.c.bf16 %v955_v4, %v948_v3  ;;  %v786_v4 = vld [vmem:[%s13269_s5 + $0xa40] sm:$0xff] }
 0x1f0   :  { %v6779_v14 = vpack.c.bf16 %v737_v8, %v730_v7  ;;  %v1011_v3 = vld [vmem:[%s13269_s5 + $0x1148] sm:$0xff]  ;;  %v468_v7 = vld [vmem:[%s13269_s5 + $0x50] sm:$0xff] }
 0x1f1   :  { %v6411_v8 = vpack.c.bf16 %v1011_v3, %v1004_v63  ;;  %v531_v63 = vld [vmem:[%s13269_s5 + $0x248] sm:$0xff] }
 0x1f2   :  { %6380 = vmatpush1.bf16.msra.mxu0 %v6379_v16  ;;  %6764 = vmatpush3.bf16.msra.mxu1 %v6763_v19  ;;  %v969_v16 = vld [vmem:[%s13269_s5 + $0xff8] sm:$0xff]  ;;  %v6397_v19 = vpack.c.bf16 %v970_v10, %v963_v9 }
 0x1f3   :  { %6382 = vmatprep.subr.bf16.mxu0 %v6381_v23  ;;  %6766 = vmatprep.subr.bf16.mxu1 %v6765_v24  ;;  %v744_v23 = vld [vmem:[%s13269_s5 + $0x8f0] sm:$0xff]  ;;  %v751_v24 = vld [vmem:[%s13269_s5 + $0x928] sm:$0xff]  ;;  %v6399_v29 = vpack.c.bf16 %v969_v16, %v962_v15  ;;  %v482_v16 = vld [vmem:[%s13269_s5 + $0xc0] sm:$0xff] }
 0x1f4   :  { %v6783_v30 = vpack.c.bf16 %v751_v24, %v744_v23  ;;  %v475_v15 = vld [vmem:[%s13269_s5 + $0x88] sm:$0xff]  ;;  %v474_v24 = vld [vmem:[%s13269_s5 + $0x80] sm:$0xff] }
 0x1f5   :  { %1191 = vmatmul.mubr.f32.vlgmr.msra.gmra.mrb[4].mxu0 %v8742_v50  ;;  %1759 = vmatmul.mubr.f32.vlgmr.msra.gmra.mrb[6].mxu1 %v8740_v49  ;;  %v6417_v23 = vpack.c.bf16 %v482_v16, %v475_v15  ;;  %v551_v15 = vld [vmem:[%s13269_s5 + $0x2e8] sm:$0xff]  ;;  %v996_v16 = vld [vmem:[%s13269_s5 + $0x10d0] sm:$0xff] }
 0x1f6   :  { %6384 = vmatpush1.bf16.msra.mxu0 %v6383_v32  ;;  %6768 = vmatpush3.bf16.msra.mxu1 %v6767_v33  ;;  %v983_v32 = vld [vmem:[%s13269_s5 + $0x1068] sm:$0xff]  ;;  %v6401_v33 = vpack.c.bf16 %v984_v26, %v977_v25  ;;  %v481_v25 = vld [vmem:[%s13269_s5 + $0xb8] sm:$0xff]  ;;  %v926_v26 = vld [vmem:[%s13269_s5 + $0xea0] sm:$0xff] }
 0x1f7   :  { %1828 = vmatprep.mubr.f32.mxu1 %v8732_v44  ;;  %6386 = vmatprep.subr.bf16.mxu0 %v6385_v37  ;;  %v765_v37 = vld [vmem:[%s13269_s5 + $0x998] sm:$0xff]  ;;  %v6403_v42 = vpack.c.bf16 %v983_v32, %v976_v31  ;;  %v6801_v31 = vpack.c.bf16 %v933_v27, %v926_v26  ;;  %v558_v27 = vld [vmem:[%s13269_s5 + $0x320] sm:$0xff] }
 0x1f8   :  { %6770 = vmatprep.subr.bf16.mxu1 %v6769_v41  ;;  %1261 = vmatprep.mubr.f32.mxu0 %v13284_v0  ;;  %v891_v41 = vld [vmem:[%s13269_s5 + $0xd88] sm:$0xff]  ;;  %v6787_v46 = vpack.c.bf16 %v765_v37, %v758_v35  ;;  %v940_v35 = vld [vmem:[%s13269_s5 + $0xf10] sm:$0xff] }
 0x1f9   :  { %v6789_v53 = vpack.c.bf16 %v891_v41, %v884_v40  ;;  %v947_v37 = vld [vmem:[%s13269_s5 + $0xf48] sm:$0xff] }
 0x1fa   :  { %6388 = vmatpush1.bf16.msra.mxu0 %v6387_v48  ;;  %6772 = vmatpush3.bf16.msra.mxu1 %v6771_v52  ;;  %v997_v48 = vld [vmem:[%s13269_s5 + $0x10d8] sm:$0xff]  ;;  %v6405_v52 = vpack.c.bf16 %v998_v39, %v991_v38  ;;  %v503_v38 = vld [vmem:[%s13269_s5 + $0x168] sm:$0xff]  ;;  %v510_v39 = vld [vmem:[%s13269_s5 + $0x1a0] sm:$0xff]  ;;  %v6804_v41 = vpack.c.bf16 %v947_v37, %v940_v35 }
 0x1fb   :  { %6390 = vmatprep.subr.bf16.mxu0 %v6389_v55  ;;  %6774 = vmatprep.subr.bf16.mxu1 %v6773_v56  ;;  %v779_v55 = vld [vmem:[%s13269_s5 + $0xa08] sm:$0xff]  ;;  %v1005_v56 = vld [vmem:[%s13269_s5 + $0x1118] sm:$0xff]  ;;  %v6407_v60 = vpack.c.bf16 %v997_v48, %v990_v47  ;;  %v954_v48 = vld [vmem:[%s13269_s5 + $0xf80] sm:$0xff] }
 0x1fc   :  { %v6791_v61 = vpack.c.bf16 %v779_v55, %v772_v54  ;;  %v509_v47 = vld [vmem:[%s13269_s5 + $0x198] sm:$0xff]  ;;  %v524_v54 = vld [vmem:[%s13269_s5 + $0x210] sm:$0xff] }
 0x1fd   :  { %v572_v37 = vld [vmem:[%s13269_s5 + $0x390] sm:$0xff] }
 0x1fe   :  { %6392 = vmatpush1.bf16.msra.mxu0 %v6391_v1  ;;  %6776 = vmatpush3.bf16.msra.mxu1 %v6775_v2  ;;  %v6409_v1 = vpack.c.bf16 %v1012_v57, %v1005_v56  ;;  %v6793_v2 = vpack.c.bf16 %v905_v59, %v898_v58  ;;  %v516_v58 = vld [vmem:[%s13269_s5 + $0x1d0] sm:$0xff]  ;;  %v523_v59 = vld [vmem:[%s13269_s5 + $0x208] sm:$0xff] }
 0x1ff   :  { %6394 = vmatprep.subr.bf16.mxu0 %v6393_v5  ;;  %6778 = vmatprep.subr.bf16.mxu1 %v6777_v6  ;;  %v793_v5 = vld [vmem:[%s13269_s5 + $0xa78] sm:$0xff] }
 0x200   :  { %v461_v6 = vld [vmem:[%s13269_s5 + $0x18] sm:$0xff]  ;;  %v6795_v9 = vpack.c.bf16 %v793_v5, %v786_v4  ;;  %v530_v5 = vld [vmem:[%s13269_s5 + $0x240] sm:$0xff] }
 0x201   :  { %v6413_v10 = vpack.c.bf16 %v468_v7, %v461_v6  ;;  %v537_v6 = vld [vmem:[%s13269_s5 + $0x278] sm:$0xff]  ;;  %v982_v7 = vld [vmem:[%s13269_s5 + $0x1060] sm:$0xff] }
 0x202   :  { %6396 = vmatpush1.bf16.msra.mxu0 %v6395_v13  ;;  %6780 = vmatpush3.bf16.msra.mxu1 %v6779_v14  ;;  %v912_v13 = vld [vmem:[%s13269_s5 + $0xe30] sm:$0xff]  ;;  %v919_v14 = vld [vmem:[%s13269_s5 + $0xe68] sm:$0xff] }
 0x203   :  { %6398 = vmatprep.subr.bf16.mxu0 %v6397_v19  ;;  %6782 = vmatprep.subr.bf16.mxu1 %v6781_v22  ;;  %v6415_v19 = vpack.c.bf16 %v467_v12, %v460_v11  ;;  %v6798_v22 = vpack.c.bf16 %v919_v14, %v912_v13  ;;  %v6435_v11 = vpack.c.bf16 %v537_v6, %v530_v5  ;;  %v544_v14 = vld [vmem:[%s13269_s5 + $0x2b0] sm:$0xff]  ;;  %v635_v6 = vld [vmem:[%s13269_s5 + $0x588] sm:$0xff] }
 0x204   :  { %v628_v5 = vld [vmem:[%s13269_s5 + $0x550] sm:$0xff] }
 0x206   :  { %6400 = vmatpush1.bf16.msra.mxu0 %v6399_v29  ;;  %6784 = vmatpush3.bf16.msra.mxu1 %v6783_v30  ;;  %v496_v29 = vld [vmem:[%s13269_s5 + $0x130] sm:$0xff]  ;;  %v6419_v30 = vpack.c.bf16 %v481_v25, %v474_v24  ;;  %v6439_v24 = vpack.c.bf16 %v551_v15, %v544_v14 }
 0x207   :  { %6402 = vmatprep.subr.bf16.mxu0 %v6401_v33  ;;  %6786 = vmatprep.subr.bf16.mxu1 %v6785_v34  ;;  %v6421_v32 = vpack.c.bf16 %v496_v29, %v489_v28  ;;  %v488_v33 = vld [vmem:[%s13269_s5 + $0xf0] sm:$0xff]  ;;  %v495_v34 = vld [vmem:[%s13269_s5 + $0x128] sm:$0xff]  ;;  %v565_v28 = vld [vmem:[%s13269_s5 + $0x358] sm:$0xff] }
 0x208   :  { %v6423_v40 = vpack.c.bf16 %v495_v34, %v488_v33  ;;  %v1010_v29 = vld [vmem:[%s13269_s5 + $0x1140] sm:$0xff]  ;;  %v6443_v33 = vpack.c.bf16 %v565_v28, %v558_v27  ;;  %v664_v14 = vld [vmem:[%s13269_s5 + $0x670] sm:$0xff]  ;;  %v677_v28 = vld [vmem:[%s13269_s5 + $0x6d8] sm:$0xff] }
 0x209   :  { %v670_v27 = vld [vmem:[%s13269_s5 + $0x6a0] sm:$0xff] }
 0x20a   :  { %6404 = vmatpush1.bf16.msra.mxu0 %v6403_v42  ;;  %6788 = vmatpush3.bf16.msra.mxu1 %v6787_v46  ;;  %v6425_v42 = vpack.c.bf16 %v510_v39, %v503_v38  ;;  %v502_v46 = vld [vmem:[%s13269_s5 + $0x160] sm:$0xff]  ;;  %v579_v38 = vld [vmem:[%s13269_s5 + $0x3c8] sm:$0xff] }
 0x20b   :  { %6406 = vmatprep.subr.bf16.mxu0 %v6405_v52  ;;  %6790 = vmatprep.subr.bf16.mxu1 %v6789_v53  ;;  %v961_v52 = vld [vmem:[%s13269_s5 + $0xfb8] sm:$0xff]  ;;  %v6427_v55 = vpack.c.bf16 %v509_v47, %v502_v46  ;;  %v587_v39 = vld [vmem:[%s13269_s5 + $0x408] sm:$0xff]  ;;  %v586_v46 = vld [vmem:[%s13269_s5 + $0x400] sm:$0xff] }
 0x20c   :  { %v517_v53 = vld [vmem:[%s13269_s5 + $0x1d8] sm:$0xff]  ;;  %v6807_v56 = vpack.c.bf16 %v961_v52, %v954_v48  ;;  %v608_v52 = vld [vmem:[%s13269_s5 + $0x4b0] sm:$0xff] }
 0x20d   :  { %v6429_v57 = vpack.c.bf16 %v524_v54, %v517_v53  ;;  %v593_v47 = vld [vmem:[%s13269_s5 + $0x438] sm:$0xff] }
 0x20e   :  { %6408 = vmatpush1.bf16.msra.mxu0 %v6407_v60  ;;  %6792 = vmatpush3.bf16.msra.mxu1 %v6791_v61  ;;  %v968_v60 = vld [vmem:[%s13269_s5 + $0xff0] sm:$0xff]  ;;  %v975_v61 = vld [vmem:[%s13269_s5 + $0x1028] sm:$0xff]  ;;  %v601_v48 = vld [vmem:[%s13269_s5 + $0x478] sm:$0xff]  ;;  %v6451_v53 = vpack.c.bf16 %v593_v47, %v586_v46 }
 0x20f   :  { %6410 = vmatprep.subr.bf16.mxu0 %v6409_v1  ;;  %6794 = vmatprep.subr.bf16.mxu1 %v6793_v2  ;;  %v538_v1 = vld [vmem:[%s13269_s5 + $0x280] sm:$0xff]  ;;  %v6431_v2 = vpack.c.bf16 %v523_v59, %v516_v58  ;;  %v6810_v3 = vpack.c.bf16 %v975_v61, %v968_v60  ;;  %v6453_v54 = vpack.c.bf16 %v608_v52, %v601_v48 }
 0x210   :  { %v6433_v4 = vpack.c.bf16 %v538_v1, %v531_v63  ;;  %v622_v58 = vld [vmem:[%s13269_s5 + $0x520] sm:$0xff]  ;;  %v621_v63 = vld [vmem:[%s13269_s5 + $0x518] sm:$0xff] }
 0x211   :  { %v614_v61 = vld [vmem:[%s13269_s5 + $0x4e0] sm:$0xff]  ;;  %v629_v1 = vld [vmem:[%s13269_s5 + $0x558] sm:$0xff] }
 0x212   :  { %6412 = vmatpush1.bf16.msra.mxu0 %v6411_v8  ;;  %6796 = vmatpush3.bf16.msra.mxu1 %v6795_v9  ;;  %v989_v8 = vld [vmem:[%s13269_s5 + $0x1098] sm:$0xff]  ;;  %v498_v46 = vld [vmem:[%s13269_s5 + $0x140] sm:$0xff] }
 0x213   :  { %6414 = vmatprep.subr.bf16.mxu0 %v6413_v10  ;;  %6797 = vmatprep.subr.bf16.mxu1 %v13282_v36  ;;  %v545_v9 = vld [vmem:[%s13269_s5 + $0x2b8] sm:$0xff]  ;;  %v552_v10 = vld [vmem:[%s13269_s5 + $0x2f0] sm:$0xff]  ;;  %v6813_v12 = vpack.c.bf16 %v989_v8, %v982_v7  ;;  %v643_v7 = vld [vmem:[%s13269_s5 + $0x5c8] sm:$0xff] }
 0x214   :  { %v6437_v13 = vpack.c.bf16 %v552_v10, %v545_v9  ;;  %v650_v8 = vld [vmem:[%s13269_s5 + $0x600] sm:$0xff]  ;;  %v6463_v9 = vpack.c.bf16 %v635_v6, %v628_v5  ;;  %v1972_v5 = vld [vmem:[%s13272_s9 + $0x90] sm:$0xff]  ;;  %v1973_v6 = vld [vmem:[%s13272_s9 + $0x98] sm:$0xff] }
 0x215   :  { %1262 = vmatmul.mubr.f32.vlgmr.msra.gmra.mrb[4].mxu0 %v8947_v45  ;;  %1829 = vmatmul.mubr.f32.vlgmr.msra.gmra.mrb[8].mxu1 %v8742_v50  ;;  %v6465_v10 = vpack.c.bf16 %v650_v8, %v643_v7  ;;  %v490_v52 = vld [vmem:[%s13269_s5 + $0x100] sm:$0xff]  ;;  %v9631_v7 = vpack.c.bf16 %v1973_v6, %v1972_v5  ;;  %v1956_v8 = vld [vmem:[%s13272_s9 + $0x10] sm:$0xff]  ;;  %v1965_v6 = vld [vmem:[%s13272_s9 + $0x58] sm:$0xff] }
 0x216   :  { %6416 = vmatpush1.bf16.msra.mxu0 %v6415_v19  ;;  %1332 = vmatprep.mubr.f32.mxu0 %v8730_v43  ;;  %v1003_v19 = vld [vmem:[%s13269_s5 + $0x1108] sm:$0xff]  ;;  %v1964_v5 = vld [vmem:[%s13272_s9 + $0x50] sm:$0xff] }
 0x217   :  { %6799 = vmatpush3.bf16.msra.mxu1 %v6798_v22  ;;  %6418 = vmatprep.subr.bf16.mxu0 %v6417_v23  ;;  %v559_v22 = vld [vmem:[%s13269_s5 + $0x328] sm:$0xff]  ;;  %v566_v23 = vld [vmem:[%s13269_s5 + $0x360] sm:$0xff]  ;;  %v6816_v25 = vpack.c.bf16 %v1003_v19, %v996_v16  ;;  %v656_v19 = vld [vmem:[%s13269_s5 + $0x630] sm:$0xff] }
 0x218   :  { %6800 = vmatprep.subr.bf16.mxu1 %v13282_v36  ;;  %6071 = vmatprep.mubr.msk.f32.mxu1 %vm7932_vm1, %v13284_v0  ;;  %v6441_v26 = vpack.c.bf16 %v566_v23, %v559_v22  ;;  %v663_v22 = vld [vmem:[%s13269_s5 + $0x668] sm:$0xff] }
 0x219   :  { %v671_v23 = vld [vmem:[%s13269_s5 + $0x6a8] sm:$0xff] }
 0x21a   :  { %6420 = vmatpush1.bf16.msra.mxu0 %v6419_v30  ;;  %v1017_v30 = vld [vmem:[%s13269_s5 + $0x1178] sm:$0xff] }
 0x21b   :  { %6802 = vmatpush3.bf16.msra.mxu1 %v6801_v31  ;;  %6422 = vmatprep.subr.bf16.mxu0 %v6421_v32  ;;  %v573_v31 = vld [vmem:[%s13269_s5 + $0x398] sm:$0xff]  ;;  %v580_v32 = vld [vmem:[%s13269_s5 + $0x3d0] sm:$0xff]  ;;  %v6819_v34 = vpack.c.bf16 %v1017_v30, %v1010_v29  ;;  %v463_v29 = vld [vmem:[%s13269_s5 + $0x28] sm:$0xff] }
 0x21c   :  { %6803 = vmatprep.subr.bf16.mxu1 %v13282_v36  ;;  %v6445_v35 = vpack.c.bf16 %v580_v32, %v573_v31  ;;  %v470_v30 = vld [vmem:[%s13269_s5 + $0x60] sm:$0xff]  ;;  %v6475_v31 = vpack.c.bf16 %v677_v28, %v670_v27 }
 0x21d   :  { %v6573_v32 = vpack.c.bf16 %v470_v30, %v463_v29  ;;  %v532_v29 = vld [vmem:[%s13269_s5 + $0x250] sm:$0xff]  ;;  %v539_v30 = vld [vmem:[%s13269_s5 + $0x288] sm:$0xff] }
 0x21e   :  { %6424 = vmatpush1.bf16.msra.mxu0 %v6423_v40  ;;  %v594_v40 = vld [vmem:[%s13269_s5 + $0x440] sm:$0xff] }
 0x21f   :  { %6805 = vmatpush3.bf16.msra.mxu1 %v6804_v41  ;;  %6426 = vmatprep.subr.bf16.mxu0 %v6425_v42  ;;  %v6447_v41 = vpack.c.bf16 %v579_v38, %v572_v37  ;;  %v6449_v42 = vpack.c.bf16 %v594_v40, %v587_v39  ;;  %v484_v37 = vld [vmem:[%s13269_s5 + $0xd0] sm:$0xff] }
 0x220   :  { %6806 = vmatprep.subr.bf16.mxu1 %v13282_v36  ;;  %v476_v40 = vld [vmem:[%s13269_s5 + $0x90] sm:$0xff] }
 0x222   :  { %6428 = vmatpush1.bf16.msra.mxu0 %v6427_v55  ;;  %v600_v55 = vld [vmem:[%s13269_s5 + $0x470] sm:$0xff] }
 0x223   :  { %6808 = vmatpush3.bf16.msra.mxu1 %v6807_v56  ;;  %6430 = vmatprep.subr.bf16.mxu0 %v6429_v57  ;;  %v607_v56 = vld [vmem:[%s13269_s5 + $0x4a8] sm:$0xff] }
 0x224   :  { %6809 = vmatprep.subr.bf16.mxu1 %v13282_v36  ;;  %v615_v57 = vld [vmem:[%s13269_s5 + $0x4e8] sm:$0xff]  ;;  %v6455_v59 = vpack.c.bf16 %v607_v56, %v600_v55  ;;  %v512_v55 = vld [vmem:[%s13269_s5 + $0x1b0] sm:$0xff] }
 0x225   :  { %v6457_v60 = vpack.c.bf16 %v622_v58, %v615_v57  ;;  %v1971_v56 = vld [vmem:[%s13272_s9 + $0x88] sm:$0xff]  ;;  %v1954_v58 = vld [vmem:[%s13272_s9] sm:$0xff] }
 0x226   :  { %6432 = vmatpush1.bf16.msra.mxu0 %v6431_v2  ;;  %v636_v2 = vld [vmem:[%s13269_s5 + $0x590] sm:$0xff] }
 0x227   :  { %6811 = vmatpush3.bf16.msra.mxu1 %v6810_v3  ;;  %6434 = vmatprep.subr.bf16.mxu0 %v6433_v4  ;;  %v6459_v3 = vpack.c.bf16 %v621_v63, %v614_v61  ;;  %v6461_v4 = vpack.c.bf16 %v636_v2, %v629_v1  ;;  %v504_v1 = vld [vmem:[%s13269_s5 + $0x170] sm:$0xff]  ;;  %v511_v2 = vld [vmem:[%s13269_s5 + $0x1a8] sm:$0xff] }
 0x228   :  { %6812 = vmatprep.subr.bf16.mxu1 %v13282_v36 }
 0x22a   :  { %6436 = vmatpush1.bf16.msra.mxu0 %v6435_v11  ;;  %v642_v11 = vld [vmem:[%s13269_s5 + $0x5c0] sm:$0xff] }
 0x22b   :  { %6814 = vmatpush3.bf16.msra.mxu1 %v6813_v12  ;;  %6438 = vmatprep.subr.bf16.mxu0 %v6437_v13  ;;  %v649_v12 = vld [vmem:[%s13269_s5 + $0x5f8] sm:$0xff] }
 0x22c   :  { %6815 = vmatprep.subr.bf16.mxu1 %v13282_v36  ;;  %v657_v13 = vld [vmem:[%s13269_s5 + $0x638] sm:$0xff]  ;;  %v6467_v15 = vpack.c.bf16 %v649_v12, %v642_v11 }
 0x22d   :  { %v6469_v16 = vpack.c.bf16 %v664_v14, %v657_v13  ;;  %v518_v13 = vld [vmem:[%s13269_s5 + $0x1e0] sm:$0xff]  ;;  %v525_v14 = vld [vmem:[%s13269_s5 + $0x218] sm:$0xff] }
 0x22e   :  { %6440 = vmatpush1.bf16.msra.mxu0 %v6439_v24  ;;  %v678_v24 = vld [vmem:[%s13269_s5 + $0x6e0] sm:$0xff] }
 0x22f   :  { %6817 = vmatpush3.bf16.msra.mxu1 %v6816_v25  ;;  %6442 = vmatprep.subr.bf16.mxu0 %v6441_v26  ;;  %v6471_v25 = vpack.c.bf16 %v663_v22, %v656_v19  ;;  %v6473_v26 = vpack.c.bf16 %v678_v24, %v671_v23  ;;  %v1974_v19 = vld [vmem:[%s13272_s9 + $0xa0] sm:$0xff]  ;;  %v1975_v22 = vld [vmem:[%s13272_s9 + $0xa8] sm:$0xff] }
 0x230   :  { %6818 = vmatprep.subr.bf16.mxu1 %v13282_v36  ;;  %v9661_v23 = vpack.c.bf16 %v1975_v22, %v1974_v19  ;;  %v1958_v24 = vld [vmem:[%s13272_s9 + $0x20] sm:$0xff]  ;;  %v1983_v22 = vld [vmem:[%s13272_s9 + $0xe8] sm:$0xff] }
 0x231   :  { %v1982_v19 = vld [vmem:[%s13272_s9 + $0xe0] sm:$0xff] }
 0x232   :  { %6444 = vmatpush1.bf16.msra.mxu0 %v6443_v33  ;;  %v462_v33 = vld [vmem:[%s13269_s5 + $0x20] sm:$0xff] }
 0x233   :  { %6820 = vmatpush3.bf16.msra.mxu1 %v6819_v34  ;;  %6446 = vmatprep.subr.bf16.mxu0 %v6445_v35  ;;  %v469_v34 = vld [vmem:[%s13269_s5 + $0x58] sm:$0xff] }
 0x234   :  { %v477_v35 = vld [vmem:[%s13269_s5 + $0x98] sm:$0xff]  ;;  %v6575_v38 = vpack.c.bf16 %v469_v34, %v462_v33  ;;  %v1976_v33 = vld [vmem:[%s13272_s9 + $0xb0] sm:$0xff] }
 0x235   :  { %v6577_v39 = vpack.c.bf16 %v484_v37, %v477_v35  ;;  %v1977_v34 = vld [vmem:[%s13272_s9 + $0xb8] sm:$0xff]  ;;  %v1960_v37 = vld [vmem:[%s13272_s9 + $0x30] sm:$0xff] }
 0x236   :  { %6072 = vmatmul.mubr.f32.vlgmr.msra.gmra.mrb[10].mxu1 %v8947_v45  ;;  %6448 = vmatpush1.bf16.msra.mxu0 %v6447_v41  ;;  %v483_v41 = vld [vmem:[%s13269_s5 + $0xc8] sm:$0xff]  ;;  %v9691_v35 = vpack.c.bf16 %v1977_v34, %v1976_v33  ;;  %v610_v34 = vld [vmem:[%s13269_s5 + $0x4c0] sm:$0xff] }
 0x237   :  { %6450 = vmatprep.subr.bf16.mxu0 %v6449_v42  ;;  %v491_v42 = vld [vmem:[%s13269_s5 + $0x108] sm:$0xff]  ;;  %v6579_v47 = vpack.c.bf16 %v483_v41, %v476_v40 }
 0x238   :  { %v6581_v48 = vpack.c.bf16 %v498_v46, %v491_v42  ;;  %v546_v42 = vld [vmem:[%s13269_s5 + $0x2c0] sm:$0xff]  ;;  %v553_v46 = vld [vmem:[%s13269_s5 + $0x2f8] sm:$0xff]  ;;  %v603_v33 = vld [vmem:[%s13269_s5 + $0x488] sm:$0xff] }
 0x23a   :  { %6452 = vmatpush1.bf16.msra.mxu0 %v6451_v53  ;;  %v497_v53 = vld [vmem:[%s13269_s5 + $0x138] sm:$0xff] }
 0x23b   :  { %6454 = vmatprep.subr.bf16.mxu0 %v6453_v54  ;;  %v505_v54 = vld [vmem:[%s13269_s5 + $0x178] sm:$0xff] }
 0x23c   :  { %v6585_v63 = vpack.c.bf16 %v512_v55, %v505_v54  ;;  %v1962_v54 = vld [vmem:[%s13272_s9 + $0x40] sm:$0xff]  ;;  %v1963_v55 = vld [vmem:[%s13272_s9 + $0x48] sm:$0xff] }
 0x23e   :  { %6456 = vmatpush1.bf16.msra.mxu0 %v6455_v59  ;;  %v1955_v59 = vld [vmem:[%s13272_s9 + $0x8] sm:$0xff] }
 0x23f   :  { %6458 = vmatprep.subr.bf16.mxu0 %v6457_v60  ;;  %v6583_v60 = vpack.c.bf16 %v497_v53, %v490_v52  ;;  %v9609_v61 = vpack.c.bf16 %v1955_v59, %v1954_v58  ;;  %v1978_v52 = vld [vmem:[%s13272_s9 + $0xc0] sm:$0xff]  ;;  %v1979_v53 = vld [vmem:[%s13272_s9 + $0xc8] sm:$0xff]  ;;  %v9729_v58 = vpack.c.bf16 %v1963_v55, %v1962_v54  ;;  %v617_v54 = vld [vmem:[%s13269_s5 + $0x4f8] sm:$0xff] }
 0x240   :  { %v624_v55 = vld [vmem:[%s13269_s5 + $0x530] sm:$0xff] }
 0x242   :  { %6460 = vmatpush1.bf16.msra.mxu0 %v6459_v3  ;;  %v519_v3 = vld [vmem:[%s13269_s5 + $0x1e8] sm:$0xff] }
 0x243   :  { %6462 = vmatprep.subr.bf16.mxu0 %v6461_v4  ;;  %v526_v4 = vld [vmem:[%s13269_s5 + $0x220] sm:$0xff] }
 0x244   :  { %v6589_v12 = vpack.c.bf16 %v526_v4, %v519_v3  ;;  %v1980_v3 = vld [vmem:[%s13272_s9 + $0xd0] sm:$0xff]  ;;  %v1981_v4 = vld [vmem:[%s13272_s9 + $0xd8] sm:$0xff] }
 0x246   :  { %6464 = vmatpush1.bf16.msra.mxu0 %v6463_v9  ;;  %v1957_v9 = vld [vmem:[%s13272_s9 + $0x18] sm:$0xff] }
 0x247   :  { %6466 = vmatprep.subr.bf16.mxu0 %v6465_v10  ;;  %v6587_v10 = vpack.c.bf16 %v511_v2, %v504_v1  ;;  %v9639_v11 = vpack.c.bf16 %v1957_v9, %v1956_v8  ;;  %v575_v1 = vld [vmem:[%s13269_s5 + $0x3a8] sm:$0xff]  ;;  %v582_v2 = vld [vmem:[%s13269_s5 + $0x3e0] sm:$0xff]  ;;  %v9757_v9 = vpack.c.bf16 %v1981_v4, %v1980_v3 }
 0x24a   :  { %6468 = vmatpush1.bf16.msra.mxu0 %v6467_v15  ;;  %v533_v15 = vld [vmem:[%s13269_s5 + $0x258] sm:$0xff] }
 0x24b   :  { %6470 = vmatprep.subr.bf16.mxu0 %v6469_v16  ;;  %v540_v16 = vld [vmem:[%s13269_s5 + $0x290] sm:$0xff] }
 0x24c   :  { %v6593_v28 = vpack.c.bf16 %v540_v16, %v533_v15  ;;  %v589_v15 = vld [vmem:[%s13269_s5 + $0x418] sm:$0xff]  ;;  %v596_v16 = vld [vmem:[%s13269_s5 + $0x450] sm:$0xff] }
 0x24e   :  { %6472 = vmatpush1.bf16.msra.mxu0 %v6471_v25  ;;  %v1959_v25 = vld [vmem:[%s13272_s9 + $0x28] sm:$0xff] }
 0x24f   :  { %6474 = vmatprep.subr.bf16.mxu0 %v6473_v26  ;;  %v6591_v26 = vpack.c.bf16 %v525_v14, %v518_v13  ;;  %v9669_v27 = vpack.c.bf16 %v1959_v25, %v1958_v24  ;;  %v574_v13 = vld [vmem:[%s13269_s5 + $0x3a0] sm:$0xff]  ;;  %v581_v14 = vld [vmem:[%s13269_s5 + $0x3d8] sm:$0xff]  ;;  %v1967_v25 = vld [vmem:[%s13272_s9 + $0x68] sm:$0xff] }
 0x250   :  { %v1966_v24 = vld [vmem:[%s13272_s9 + $0x60] sm:$0xff] }
 0x252   :  { %6476 = vmatpush1.bf16.msra.mxu0 %v6475_v31  ;;  %v547_v31 = vld [vmem:[%s13269_s5 + $0x2c8] sm:$0xff] }
 0x253   :  { %6574 = vmatprep.subr.bf16.mxu0 %v6573_v32  ;;  %v554_v32 = vld [vmem:[%s13269_s5 + $0x300] sm:$0xff] }
 0x254   :  { %v6597_v41 = vpack.c.bf16 %v554_v32, %v547_v31  ;;  %v588_v31 = vld [vmem:[%s13269_s5 + $0x410] sm:$0xff]  ;;  %v595_v32 = vld [vmem:[%s13269_s5 + $0x448] sm:$0xff] }
 0x255   :  { %1333 = vmatmul.mubr.f32.vlgmr.msra.gmra.mrb[6].mxu0 %v8740_v49 }
 0x256   :  { %6576 = vmatpush1.bf16.msra.mxu0 %v6575_v38  ;;  %1545 = vmatprep.mubr.f32.mxu0 %v8730_v43  ;;  %v1970_v43 = vld [vmem:[%s13272_s9 + $0x80] sm:$0xff]  ;;  %v1961_v38 = vld [vmem:[%s13272_s9 + $0x38] sm:$0xff] }
 0x257   :  { %6578 = vmatprep.subr.bf16.mxu0 %v6577_v39  ;;  %v9601_v57 = vpack.c.bf16 %v1971_v56, %v1970_v43  ;;  %v6595_v39 = vpack.c.bf16 %v539_v30, %v532_v29  ;;  %v9699_v40 = vpack.c.bf16 %v1961_v38, %v1960_v37  ;;  %v6599_v43 = vpack.c.bf16 %v553_v46, %v546_v42  ;;  %v1984_v37 = vld [vmem:[%s13272_s9 + $0xf0] sm:$0xff]  ;;  %v1985_v38 = vld [vmem:[%s13272_s9 + $0xf8] sm:$0xff] }
 0x258   :  { %v9727_v56 = vpack.c.bf16 %v1979_v53, %v1978_v52  ;;  %v9789_v29 = vpack.c.bf16 %v1967_v25, %v1966_v24  ;;  %v6609_v30 = vpack.c.bf16 %v596_v16, %v589_v15  ;;  %v1969_v42 = vld [vmem:[%s13272_s9 + $0x78] sm:$0xff]  ;;  %v6611_v46 = vpack.c.bf16 %v595_v32, %v588_v31  ;;  %v602_v52 = vld [vmem:[%s13269_s5 + $0x480] sm:$0xff]  ;;  %v644_v15 = vld [vmem:[%s13269_s5 + $0x5d0] sm:$0xff] }
 0x259   :  { %6822 = vmatprep.subr.bf16.mxu1 %v9601_v57  ;;  %v609_v53 = vld [vmem:[%s13269_s5 + $0x4b8] sm:$0xff]  ;;  %v651_v16 = vld [vmem:[%s13269_s5 + $0x608] sm:$0xff]  ;;  %v680_v32 = vld [vmem:[%s13269_s5 + $0x6f0] sm:$0xff] }
 0x25a   :  { %6580 = vmatpush1.bf16.msra.mxu0 %v6579_v47  ;;  %6824 = vmatpush3.bf16.msra.mxu1 %v9609_v61  ;;  %v561_v47 = vld [vmem:[%s13269_s5 + $0x338] sm:$0xff]  ;;  %v6627_v24 = vpack.c.bf16 %v651_v16, %v644_v15  ;;  %v728_v16 = vld [vmem:[%s13269_s5 + $0x870] sm:$0xff] }
 0x25b   :  { %6582 = vmatprep.subr.bf16.mxu0 %v6581_v48  ;;  %6826 = vmatprep.subr.bf16.mxu1 %v9631_v7  ;;  %v568_v48 = vld [vmem:[%s13269_s5 + $0x370] sm:$0xff]  ;;  %v673_v31 = vld [vmem:[%s13269_s5 + $0x6b8] sm:$0xff] }
 0x25c   :  { %v6601_v59 = vpack.c.bf16 %v568_v48, %v561_v47  ;;  %v6613_v48 = vpack.c.bf16 %v610_v34, %v603_v33  ;;  %v6633_v34 = vpack.c.bf16 %v680_v32, %v673_v31  ;;  %v749_v31 = vld [vmem:[%s13269_s5 + $0x918] sm:$0xff] }
 0x25d   :  { %v757_v32 = vld [vmem:[%s13269_s5 + $0x958] sm:$0xff] }
 0x25e   :  { %6584 = vmatpush1.bf16.msra.mxu0 %v6583_v60  ;;  %6828 = vmatpush3.bf16.msra.mxu1 %v9639_v11  ;;  %v560_v60 = vld [vmem:[%s13269_s5 + $0x330] sm:$0xff] }
 0x25f   :  { %6586 = vmatprep.subr.bf16.mxu0 %v6585_v63  ;;  %6830 = vmatprep.subr.bf16.mxu1 %v9661_v23  ;;  %v567_v63 = vld [vmem:[%s13269_s5 + $0x368] sm:$0xff] }
 0x260   :  { %v6603_v8 = vpack.c.bf16 %v567_v63, %v560_v60  ;;  %v616_v60 = vld [vmem:[%s13269_s5 + $0x4f0] sm:$0xff]  ;;  %v623_v63 = vld [vmem:[%s13269_s5 + $0x528] sm:$0xff] }
 0x261   :  { %v6619_v3 = vpack.c.bf16 %v623_v63, %v616_v60  ;;  %v700_v60 = vld [vmem:[%s13269_s5 + $0x790] sm:$0xff]  ;;  %v707_v63 = vld [vmem:[%s13269_s5 + $0x7c8] sm:$0xff] }
 0x262   :  { %6588 = vmatpush1.bf16.msra.mxu0 %v6587_v10  ;;  %6832 = vmatpush3.bf16.msra.mxu1 %v9669_v27  ;;  %v9759_v10 = vpack.c.bf16 %v1965_v6, %v1964_v5  ;;  %v630_v5 = vld [vmem:[%s13269_s5 + $0x560] sm:$0xff]  ;;  %v637_v6 = vld [vmem:[%s13269_s5 + $0x598] sm:$0xff] }
 0x263   :  { %6590 = vmatprep.subr.bf16.mxu0 %v6589_v12  ;;  %6834 = vmatprep.subr.bf16.mxu1 %v9691_v35  ;;  %v6605_v12 = vpack.c.bf16 %v582_v2, %v575_v1  ;;  %v631_v1 = vld [vmem:[%s13269_s5 + $0x568] sm:$0xff]  ;;  %v638_v2 = vld [vmem:[%s13269_s5 + $0x5a0] sm:$0xff] }
 0x264   :  { %v6621_v4 = vpack.c.bf16 %v638_v2, %v631_v1  ;;  %v715_v1 = vld [vmem:[%s13269_s5 + $0x808] sm:$0xff]  ;;  %v722_v2 = vld [vmem:[%s13269_s5 + $0x840] sm:$0xff] }
 0x266   :  { %6592 = vmatpush1.bf16.msra.mxu0 %v6591_v26  ;;  %6836 = vmatpush3.bf16.msra.mxu1 %v9699_v40  ;;  %v6607_v26 = vpack.c.bf16 %v581_v14, %v574_v13  ;;  %v6623_v13 = vpack.c.bf16 %v637_v6, %v630_v5  ;;  %v6643_v5 = vpack.c.bf16 %v707_v63, %v700_v60 }
 0x267   :  { %6594 = vmatprep.subr.bf16.mxu0 %v6593_v28  ;;  %6838 = vmatprep.subr.bf16.mxu1 %v9727_v56  ;;  %v9787_v28 = vpack.c.bf16 %v1983_v22, %v1982_v19  ;;  %v659_v19 = vld [vmem:[%s13269_s5 + $0x648] sm:$0xff]  ;;  %v666_v22 = vld [vmem:[%s13269_s5 + $0x680] sm:$0xff] }
 0x268   :  { %v6629_v25 = vpack.c.bf16 %v666_v22, %v659_v19  ;;  %v735_v19 = vld [vmem:[%s13269_s5 + $0x8a8] sm:$0xff] }
 0x269   :  { %v743_v22 = vld [vmem:[%s13269_s5 + $0x8e8] sm:$0xff] }
 0x26a   :  { %6596 = vmatpush1.bf16.msra.mxu0 %v6595_v39  ;;  %6840 = vmatpush3.bf16.msra.mxu1 %v9729_v58  ;;  %v9811_v39 = vpack.c.bf16 %v1985_v38, %v1984_v37  ;;  %v672_v37 = vld [vmem:[%s13269_s5 + $0x6b0] sm:$0xff]  ;;  %v679_v38 = vld [vmem:[%s13269_s5 + $0x6e8] sm:$0xff] }
 0x26b   :  { %6598 = vmatprep.subr.bf16.mxu0 %v6597_v41  ;;  %6842 = vmatprep.subr.bf16.mxu1 %v9757_v9  ;;  %v1968_v41 = vld [vmem:[%s13272_s9 + $0x70] sm:$0xff] }
 0x26c   :  { %v9819_v47 = vpack.c.bf16 %v1969_v42, %v1968_v41  ;;  %v687_v41 = vld [vmem:[%s13269_s5 + $0x728] sm:$0xff]  ;;  %v694_v42 = vld [vmem:[%s13269_s5 + $0x760] sm:$0xff] }
 0x26e   :  { %6600 = vmatpush1.bf16.msra.mxu0 %v6599_v43  ;;  %6844 = vmatpush3.bf16.msra.mxu1 %v9759_v10  ;;  %v6615_v43 = vpack.c.bf16 %v609_v53, %v602_v52  ;;  %v686_v52 = vld [vmem:[%s13269_s5 + $0x720] sm:$0xff]  ;;  %v693_v53 = vld [vmem:[%s13269_s5 + $0x758] sm:$0xff] }
 0x26f   :  { %6602 = vmatprep.subr.bf16.mxu0 %v6601_v59  ;;  %6846 = vmatprep.subr.bf16.mxu1 %v9787_v28  ;;  %v6617_v59 = vpack.c.bf16 %v624_v55, %v617_v54  ;;  %v701_v54 = vld [vmem:[%s13269_s5 + $0x798] sm:$0xff]  ;;  %v708_v55 = vld [vmem:[%s13269_s5 + $0x7d0] sm:$0xff] }
 0x272   :  { %6604 = vmatpush1.bf16.msra.mxu0 %v6603_v8  ;;  %6848 = vmatpush3.bf16.msra.mxu1 %v9789_v29  ;;  %v645_v8 = vld [vmem:[%s13269_s5 + $0x5d8] sm:$0xff] }
 0x273   :  { %6606 = vmatprep.subr.bf16.mxu0 %v6605_v12  ;;  %6850 = vmatprep.subr.bf16.mxu1 %v9811_v39  ;;  %v652_v12 = vld [vmem:[%s13269_s5 + $0x610] sm:$0xff] }
 0x274   :  { %v6625_v14 = vpack.c.bf16 %v652_v12, %v645_v8  ;;  %v6645_v8 = vpack.c.bf16 %v722_v2, %v715_v1  ;;  %v721_v12 = vld [vmem:[%s13269_s5 + $0x838] sm:$0xff]  ;;  %v784_v2 = vld [vmem:[%s13269_s5 + $0xa30] sm:$0xff] }
 0x276   :  { %6608 = vmatpush1.bf16.msra.mxu0 %v6607_v26  ;;  %6852 = vmatpush3.bf16.msra.mxu1 %v9819_v47  ;;  %v658_v26 = vld [vmem:[%s13269_s5 + $0x640] sm:$0xff] }
 0x277   :  { %6610 = vmatprep.subr.bf16.mxu0 %v6609_v30  ;;  %v665_v30 = vld [vmem:[%s13269_s5 + $0x678] sm:$0xff] }
 0x278   :  { %v6631_v33 = vpack.c.bf16 %v665_v30, %v658_v26  ;;  %v742_v30 = vld [vmem:[%s13269_s5 + $0x8e0] sm:$0xff] }
 0x27a   :  { %6612 = vmatpush1.bf16.msra.mxu0 %v6611_v46  ;;  %v6635_v46 = vpack.c.bf16 %v679_v38, %v672_v37  ;;  %v756_v38 = vld [vmem:[%s13269_s5 + $0x950] sm:$0xff] }
 0x27b   :  { %6614 = vmatprep.subr.bf16.mxu0 %v6613_v48  ;;  %v6637_v48 = vpack.c.bf16 %v694_v42, %v687_v41  ;;  %v763_v41 = vld [vmem:[%s13269_s5 + $0x988] sm:$0xff] }
 0x27c   :  { %v771_v42 = vld [vmem:[%s13269_s5 + $0x9c8] sm:$0xff] }
 0x27e   :  { %6616 = vmatpush1.bf16.msra.mxu0 %v6615_v43  ;;  %v6639_v43 = vpack.c.bf16 %v693_v53, %v686_v52  ;;  %v770_v53 = vld [vmem:[%s13269_s5 + $0x9c0] sm:$0xff] }
 0x27f   :  { %6618 = vmatprep.subr.bf16.mxu0 %v6617_v59  ;;  %v6641_v59 = vpack.c.bf16 %v708_v55, %v701_v54  ;;  %v777_v54 = vld [vmem:[%s13269_s5 + $0x9f8] sm:$0xff] }
 0x280   :  { %v6663_v63 = vpack.c.bf16 %v777_v54, %v770_v53  ;;  %v854_v54 = vld [vmem:[%s13269_s5 + $0xc60] sm:$0xff] }
 0x282   :  { %6620 = vmatpush1.bf16.msra.mxu0 %v6619_v3  ;;  %v2002_v3 = vld [vmem:[%s13272_s9 + $0x180] sm:$0xff] }
 0x283   :  { %6622 = vmatprep.subr.bf16.mxu0 %v6621_v4  ;;  %v2003_v4 = vld [vmem:[%s13272_s9 + $0x188] sm:$0xff] }
 0x284   :  { %v9927_v6 = vpack.c.bf16 %v2003_v4, %v2002_v3  ;;  %v791_v3 = vld [vmem:[%s13269_s5 + $0xa68] sm:$0xff] }
 0x285   :  { %v799_v4 = vld [vmem:[%s13269_s5 + $0xaa8] sm:$0xff] }
 0x286   :  { %6624 = vmatpush1.bf16.msra.mxu0 %v6623_v13  ;;  %v729_v13 = vld [vmem:[%s13269_s5 + $0x878] sm:$0xff]  ;;  %6854 = vmatprep.subr.bf16.mxu1 %v9927_v6 }
 0x287   :  { %6626 = vmatprep.subr.bf16.mxu0 %v6625_v14 }
 0x28a   :  { %6628 = vmatpush1.bf16.msra.mxu0 %v6627_v24  ;;  %v750_v24 = vld [vmem:[%s13269_s5 + $0x920] sm:$0xff] }
 0x28b   :  { %6630 = vmatprep.subr.bf16.mxu0 %v6629_v25  ;;  %v6651_v25 = vpack.c.bf16 %v735_v19, %v728_v16  ;;  %v6653_v26 = vpack.c.bf16 %v750_v24, %v743_v22  ;;  %v812_v19 = vld [vmem:[%s13269_s5 + $0xb10] sm:$0xff]  ;;  %v819_v22 = vld [vmem:[%s13269_s5 + $0xb48] sm:$0xff] }
 0x28c   :  { %v827_v24 = vld [vmem:[%s13269_s5 + $0xb88] sm:$0xff] }
 0x28e   :  { %6632 = vmatpush1.bf16.msra.mxu0 %v6631_v33  ;;  %v764_v33 = vld [vmem:[%s13269_s5 + $0x990] sm:$0xff] }
 0x28f   :  { %6634 = vmatprep.subr.bf16.mxu0 %v6633_v34  ;;  %v6655_v34 = vpack.c.bf16 %v749_v31, %v742_v30  ;;  %v6657_v37 = vpack.c.bf16 %v764_v33, %v757_v32  ;;  %v826_v31 = vld [vmem:[%s13269_s5 + $0xb80] sm:$0xff]  ;;  %v833_v32 = vld [vmem:[%s13269_s5 + $0xbb8] sm:$0xff] }
 0x290   :  { %v841_v33 = vld [vmem:[%s13269_s5 + $0xbf8] sm:$0xff] }
 0x292   :  { %6636 = vmatpush1.bf16.msra.mxu0 %v6635_v46  ;;  %v778_v46 = vld [vmem:[%s13269_s5 + $0xa00] sm:$0xff] }
 0x293   :  { %6638 = vmatprep.subr.bf16.mxu0 %v6637_v48  ;;  %v6659_v48 = vpack.c.bf16 %v763_v41, %v756_v38  ;;  %v6661_v52 = vpack.c.bf16 %v778_v46, %v771_v42  ;;  %v840_v41 = vld [vmem:[%s13269_s5 + $0xbf0] sm:$0xff]  ;;  %v847_v42 = vld [vmem:[%s13269_s5 + $0xc28] sm:$0xff] }
 0x294   :  { %v855_v46 = vld [vmem:[%s13269_s5 + $0xc68] sm:$0xff] }
 0x295   :  { %1546 = vmatmul.mubr.f32.vlgmr.msra.gmra.mrb[8].mxu0 %v8740_v49  ;;  %v714_v49 = vld [vmem:[%s13269_s5 + $0x800] sm:$0xff] }
 0x296   :  { %6640 = vmatpush1.bf16.msra.mxu0 %v6639_v43  ;;  %1616 = vmatprep.mubr.f32.mxu0 %v8732_v44  ;;  %v736_v44 = vld [vmem:[%s13269_s5 + $0x8b0] sm:$0xff]  ;;  %v6647_v14 = vpack.c.bf16 %v721_v12, %v714_v49  ;;  %v785_v43 = vld [vmem:[%s13269_s5 + $0xa38] sm:$0xff]  ;;  %v798_v12 = vld [vmem:[%s13269_s5 + $0xaa0] sm:$0xff] }
 0x297   :  { %6642 = vmatprep.subr.bf16.mxu0 %v6641_v59  ;;  %v6649_v15 = vpack.c.bf16 %v736_v44, %v729_v13  ;;  %v792_v59 = vld [vmem:[%s13269_s5 + $0xa70] sm:$0xff]  ;;  %v805_v13 = vld [vmem:[%s13269_s5 + $0xad8] sm:$0xff] }
 0x298   :  { %v6665_v1 = vpack.c.bf16 %v792_v59, %v785_v43  ;;  %v813_v44 = vld [vmem:[%s13269_s5 + $0xb18] sm:$0xff] }
 0x299   :  { %v861_v43 = vld [vmem:[%s13269_s5 + $0xc98] sm:$0xff] }
 0x29a   :  { %6644 = vmatpush1.bf16.msra.mxu0 %v6643_v5  ;;  %v806_v5 = vld [vmem:[%s13269_s5 + $0xae0] sm:$0xff]  ;;  %v869_v59 = vld [vmem:[%s13269_s5 + $0xcd8] sm:$0xff] }
 0x29b   :  { %6646 = vmatprep.subr.bf16.mxu0 %v6645_v8  ;;  %v6667_v8 = vpack.c.bf16 %v791_v3, %v784_v2  ;;  %v6669_v49 = vpack.c.bf16 %v806_v5, %v799_v4  ;;  %v868_v3 = vld [vmem:[%s13269_s5 + $0xcd0] sm:$0xff]  ;;  %v875_v4 = vld [vmem:[%s13269_s5 + $0xd08] sm:$0xff] }
 0x29c   :  { %v883_v5 = vld [vmem:[%s13269_s5 + $0xd48] sm:$0xff] }
 0x29e   :  { %6648 = vmatpush1.bf16.msra.mxu0 %v6647_v14  ;;  %v820_v14 = vld [vmem:[%s13269_s5 + $0xb50] sm:$0xff] }
 0x29f   :  { %6650 = vmatprep.subr.bf16.mxu0 %v6649_v15  ;;  %v6671_v15 = vpack.c.bf16 %v805_v13, %v798_v12  ;;  %v6673_v16 = vpack.c.bf16 %v820_v14, %v813_v44  ;;  %v882_v13 = vld [vmem:[%s13269_s5 + $0xd40] sm:$0xff]  ;;  %v889_v44 = vld [vmem:[%s13269_s5 + $0xd78] sm:$0xff] }
 0x2a2   :  { %6652 = vmatpush1.bf16.msra.mxu0 %v6651_v25  ;;  %v834_v25 = vld [vmem:[%s13269_s5 + $0xbc0] sm:$0xff] }
 0x2a3   :  { %6654 = vmatprep.subr.bf16.mxu0 %v6653_v26  ;;  %v6675_v26 = vpack.c.bf16 %v819_v22, %v812_v19  ;;  %v6677_v30 = vpack.c.bf16 %v834_v25, %v827_v24  ;;  %v6695_v24 = vpack.c.bf16 %v889_v44, %v882_v13  ;;  %v974_v13 = vld [vmem:[%s13269_s5 + $0x1020] sm:$0xff] }
 0x2a6   :  { %6656 = vmatpush1.bf16.msra.mxu0 %v6655_v34  ;;  %v848_v34 = vld [vmem:[%s13269_s5 + $0xc30] sm:$0xff] }
 0x2a7   :  { %6658 = vmatprep.subr.bf16.mxu0 %v6657_v37  ;;  %v6679_v37 = vpack.c.bf16 %v833_v32, %v826_v31  ;;  %v6681_v38 = vpack.c.bf16 %v848_v34, %v841_v33  ;;  %v911_v31 = vld [vmem:[%s13269_s5 + $0xe28] sm:$0xff]  ;;  %v918_v32 = vld [vmem:[%s13269_s5 + $0xe60] sm:$0xff] }
 0x2a8   :  { %v9984_v55 = vpop.f32.mrb[4].mxu1  ;;  %v6701_v34 = vpack.c.bf16 %v918_v32, %v911_v31  ;;  %v980_v32 = vld [vmem:[%s13269_s5 + $0x1050] sm:$0xff] }
 0x2a9   :  { %v9992_v60 = vpop.f32.mrb[5].mxu1 }
 0x2aa   :  { %6660 = vmatpush1.bf16.msra.mxu0 %v6659_v48  ;;  %v862_v48 = vld [vmem:[%s13269_s5 + $0xca0] sm:$0xff] }
 0x2ab   :  { %6662 = vmatprep.subr.bf16.mxu0 %v6661_v52  ;;  %v6683_v52 = vpack.c.bf16 %v847_v42, %v840_v41  ;;  %v6685_v53 = vpack.c.bf16 %v862_v48, %v855_v46  ;;  %v925_v41 = vld [vmem:[%s13269_s5 + $0xe98] sm:$0xff]  ;;  %v932_v42 = vld [vmem:[%s13269_s5 + $0xed0] sm:$0xff] }
 0x2ac   :  { %v6705_v48 = vpack.c.bf16 %v932_v42, %v925_v41 }
 0x2ae   :  { %6664 = vmatpush1.bf16.msra.mxu0 %v6663_v63  ;;  %v876_v63 = vld [vmem:[%s13269_s5 + $0xd10] sm:$0xff] }
 0x2af   :  { %6666 = vmatprep.subr.bf16.mxu0 %v6665_v1  ;;  %v6687_v1 = vpack.c.bf16 %v861_v43, %v854_v54  ;;  %v6689_v2 = vpack.c.bf16 %v876_v63, %v869_v59  ;;  %v939_v54 = vld [vmem:[%s13269_s5 + $0xf08] sm:$0xff]  ;;  %v946_v43 = vld [vmem:[%s13269_s5 + $0xf40] sm:$0xff] }
 0x2b0   :  { %v6709_v63 = vpack.c.bf16 %v946_v43, %v939_v54 }
 0x2b2   :  { %6668 = vmatpush1.bf16.msra.mxu0 %v6667_v8  ;;  %v890_v8 = vld [vmem:[%s13269_s5 + $0xd80] sm:$0xff] }
 0x2b3   :  { %6670 = vmatprep.subr.bf16.mxu0 %v6669_v49  ;;  %v6691_v49 = vpack.c.bf16 %v875_v4, %v868_v3  ;;  %v6693_v12 = vpack.c.bf16 %v890_v8, %v883_v5  ;;  %v953_v3 = vld [vmem:[%s13269_s5 + $0xf78] sm:$0xff]  ;;  %v952_v8 = vld [vmem:[%s13269_s5 + $0xf70] sm:$0xff] }
 0x2b6   :  { %6672 = vmatpush1.bf16.msra.mxu0 %v6671_v15  ;;  %v897_v15 = vld [vmem:[%s13269_s5 + $0xdb8] sm:$0xff] }
 0x2b7   :  { %6674 = vmatprep.subr.bf16.mxu0 %v6673_v16  ;;  %v904_v16 = vld [vmem:[%s13269_s5 + $0xdf0] sm:$0xff] }
 0x2b8   :  { %v6697_v25 = vpack.c.bf16 %v904_v16, %v897_v15  ;;  %v966_v15 = vld [vmem:[%s13269_s5 + $0xfe0] sm:$0xff]  ;;  %v973_v16 = vld [vmem:[%s13269_s5 + $0x1018] sm:$0xff] }
 0x2ba   :  { %6676 = vmatpush1.bf16.msra.mxu0 %v6675_v26  ;;  %v896_v26 = vld [vmem:[%s13269_s5 + $0xdb0] sm:$0xff] }
 0x2bb   :  { %6678 = vmatprep.subr.bf16.mxu0 %v6677_v30  ;;  %v903_v30 = vld [vmem:[%s13269_s5 + $0xde8] sm:$0xff] }
 0x2bc   :  { %v6699_v33 = vpack.c.bf16 %v903_v30, %v896_v26  ;;  %v6719_v26 = vpack.c.bf16 %v973_v16, %v966_v15  ;;  %v10170_v30 = vld [vmem:[%s13273_s6] sm:$0xff] }
 0x2bd   :  { %v1027_v42 = vrot.slane %v10170_v30, %v8693_v20  ;;  %v2034_v16 = vld [vmem:[%s13272_s9 + $0x280] sm:$0xff] }
 0x2be   :  { %6680 = vmatpush1.bf16.msra.mxu0 %v6679_v37  ;;  %v910_v37 = vld [vmem:[%s13269_s5 + $0xe20] sm:$0xff] }
 0x2bf   :  { %6682 = vmatprep.subr.bf16.mxu0 %v6681_v38  ;;  %v917_v38 = vld [vmem:[%s13269_s5 + $0xe58] sm:$0xff] }
 0x2c0   :  { %v6703_v46 = vpack.c.bf16 %v917_v38, %v910_v37  ;;  %v1002_v37 = vld [vmem:[%s13269_s5 + $0x1100] sm:$0xff]  ;;  %v1023_v38 = vrot.slane %v10170_v30, %v8682_v18 }
 0x2c2   :  { %6684 = vmatpush1.bf16.msra.mxu0 %v6683_v52  ;;  %v924_v52 = vld [vmem:[%s13269_s5 + $0xe90] sm:$0xff] }
 0x2c3   :  { %6686 = vmatprep.subr.bf16.mxu0 %v6685_v53  ;;  %v931_v53 = vld [vmem:[%s13269_s5 + $0xec8] sm:$0xff] }
 0x2c4   :  { %v6707_v59 = vpack.c.bf16 %v931_v53, %v924_v52  ;;  %v994_v52 = vld [vmem:[%s13269_s5 + $0x10c0] sm:$0xff]  ;;  %v1001_v53 = vld [vmem:[%s13269_s5 + $0x10f8] sm:$0xff] }
 0x2c6   :  { %6688 = vmatpush1.bf16.msra.mxu0 %v6687_v1  ;;  %v938_v1 = vld [vmem:[%s13269_s5 + $0xf00] sm:$0xff] }
 0x2c7   :  { %6690 = vmatprep.subr.bf16.mxu0 %v6689_v2  ;;  %v945_v2 = vld [vmem:[%s13269_s5 + $0xf38] sm:$0xff] }
 0x2c8   :  { %v5621_v14 = vpop.f32.mrb[6].mxu1  ;;  %v6711_v4 = vpack.c.bf16 %v945_v2, %v938_v1 }
 0x2c9   :  { %v5622_v19 = vpop.f32.mrb[7].mxu1 }
 0x2ca   :  { %v10090_v22 = vadd.f32 %v5622_v19, %v5621_v14  ;;  %6692 = vmatpush1.bf16.msra.mxu0 %v6691_v49  ;;  %v959_v49 = vld [vmem:[%s13269_s5 + $0xfa8] sm:$0xff]  ;;  %v981_v19 = vld [vmem:[%s13269_s5 + $0x1058] sm:$0xff] }
 0x2cb   :  { %6694 = vmatprep.subr.bf16.mxu0 %v6693_v12  ;;  %v967_v12 = vld [vmem:[%s13269_s5 + $0xfe8] sm:$0xff]  ;;  %v6715_v44 = vpack.c.bf16 %v959_v49, %v952_v8  ;;  %v6727_v8 = vpack.c.bf16 %v1001_v53, %v994_v52  ;;  %v1986_v53 = vld [vmem:[%s13272_s9 + $0x100] sm:$0xff] }
 0x2cc   :  { %v6717_v14 = vpack.c.bf16 %v974_v13, %v967_v12  ;;  %v1008_v13 = vld [vmem:[%s13269_s5 + $0x1130] sm:$0xff] }
 0x2ce   :  { %6696 = vmatpush1.bf16.msra.mxu0 %v6695_v24  ;;  %v988_v24 = vld [vmem:[%s13269_s5 + $0x1090] sm:$0xff] }
 0x2cf   :  { %6698 = vmatprep.subr.bf16.mxu0 %v6697_v25  ;;  %v1046_v25 = vsub.s32 6, %v8679_v17  ;;  %v6721_v31 = vpack.c.bf16 %v988_v24, %v981_v19  ;;  %v2035_v19 = vld [vmem:[%s13272_s9 + $0x288] sm:$0xff] }
 0x2d1   :  { %v1047_v41 = vrot.slane %v10170_v30, %v1046_v25 }
 0x2d2   :  { %6700 = vmatpush1.bf16.msra.mxu0 %v6699_v33  ;;  %v987_v33 = vld [vmem:[%s13269_s5 + $0x1088] sm:$0xff] }
 0x2d3   :  { %6702 = vmatprep.subr.bf16.mxu0 %v6701_v34  ;;  %v995_v34 = vld [vmem:[%s13269_s5 + $0x10c8] sm:$0xff] }
 0x2d5   :  { %1617 = vmatmul.mubr.f32.vlgmr.msra.gmra.mrb[8].mxu0 %v8742_v50  ;;  %v960_v50 = vld [vmem:[%s13269_s5 + $0xfb0] sm:$0xff] }
 0x2d6   :  { %6704 = vmatpush1.bf16.msra.mxu0 %v6703_v46  ;;  %1687 = vmatprep.mubr.f32.mxu0 %v13284_v0  ;;  %v6713_v5 = vpack.c.bf16 %v960_v50, %v953_v3  ;;  %v6723_v46 = vpack.c.bf16 %v987_v33, %v980_v32  ;;  %v1761_v50 = vadd.f32 %v10090_v22, %v1047_v41  ;;  %v2018_v33 = vld [vmem:[%s13272_s9 + $0x200] sm:$0xff]  ;;  %v2037_v41 = vld [vmem:[%s13272_s9 + $0x298] sm:$0xff] }
 0x2d7   :  { %6706 = vmatprep.subr.bf16.mxu0 %v6705_v48  ;;  %v6725_v48 = vpack.c.bf16 %v1002_v37, %v995_v34  ;;  %v10224_v32 = vpack.c.bf16 %v2035_v19, %v2034_v16  ;;  %v2019_v34 = vld [vmem:[%s13272_s9 + $0x208] sm:$0xff] }
 0x2d8   :  { %v2023_v16 = vld [vmem:[%s13272_s9 + $0x228] sm:$0xff] }
 0x2da   :  { %6708 = vmatpush1.bf16.msra.mxu0 %v6707_v59  ;;  %v1009_v59 = vld [vmem:[%s13269_s5 + $0x1138] sm:$0xff] }
 0x2db   :  { %6710 = vmatprep.subr.bf16.mxu0 %v6709_v63  ;;  %v1016_v63 = vld [vmem:[%s13269_s5 + $0x1170] sm:$0xff] }
 0x2dc   :  { %v6729_v12 = vpack.c.bf16 %v1016_v63, %v1009_v59  ;;  %v2021_v59 = vld [vmem:[%s13272_s9 + $0x218] sm:$0xff] }
 0x2de   :  { %6712 = vmatpush1.bf16.msra.mxu0 %v6711_v4 }
 0x2df   :  { %6714 = vmatprep.subr.bf16.mxu0 %v6713_v5 }
 0x2e2   :  { %6716 = vmatpush1.bf16.msra.mxu0 %v6715_v44  ;;  %v1015_v44 = vld [vmem:[%s13269_s5 + $0x1168] sm:$0xff] }
 0x2e3   :  { %6718 = vmatprep.subr.bf16.mxu0 %v6717_v14 }
 0x2e6   :  { %6720 = vmatpush1.bf16.msra.mxu0 %v6719_v26  ;;  %v6731_v26 = vpack.c.bf16 %v1015_v44, %v1008_v13 }
 0x2e7   :  { %6722 = vmatprep.subr.bf16.mxu0 %v6721_v31 }
 0x2e8   :  { %v1263_v54 = vpop.f32.mrb[4].mxu0  ;;  %v5656_v43 = vpop.f32.mrb[8].mxu1 }
 0x2e9   :  { %v10201_v1 = vadd.f32 %v1263_v54, %v1023_v38  ;;  %v1265_v2 = vpop.f32.mrb[5].mxu0  ;;  %v5657_v3 = vpop.f32.mrb[9].mxu1  ;;  %v2036_v38 = vld [vmem:[%s13272_s9 + $0x290] sm:$0xff] }
 0x2ea   :  { %v10204_v4 = vadd.f32 %v1265_v2, %v1027_v42  ;;  %v5658_v5 = vadd.f32 %v5657_v3, %v5656_v43  ;;  %6724 = vmatpush1.bf16.msra.mxu0 %v6723_v46  ;;  %v10244_v54 = vpack.c.bf16 %v2037_v41, %v2036_v38  ;;  %v2020_v43 = vld [vmem:[%s13272_s9 + $0x210] sm:$0xff]  ;;  %v1987_v2 = vld [vmem:[%s13272_s9 + $0x108] sm:$0xff]  ;;  %v2038_v3 = vld [vmem:[%s13272_s9 + $0x2a0] sm:$0xff] }
 0x2eb   :  { %v1905_v49 = vsel %vm1904_vm2, %v10201_v1, 0.0  ;;  %6726 = vmatprep.subr.bf16.mxu0 %v6725_v48  ;;  %v10238_v48 = vpack.c.bf16 %v2019_v34, %v2018_v33  ;;  %v10271_v44 = vpack.c.bf16 %v1987_v2, %v1986_v53  ;;  %v2006_v33 = vld [vmem:[%s13272_s9 + $0x1a0] sm:$0xff]  ;;  %v2007_v34 = vld [vmem:[%s13272_s9 + $0x1a8] sm:$0xff] }
 0x2ec   :  { %v1906_v14 = vrot.slane %v1905_v49, 4  ;;  %v1912_v22 = vsel %vm1904_vm2, %v10204_v4, 0.0  ;;  %v10216_v15 = vadd.f32 %v5658_v5, %v1761_v50  ;;  %v2039_v50 = vld [vmem:[%s13272_s9 + $0x2a8] sm:$0xff]  ;;  %v1990_v53 = vld [vmem:[%s13272_s9 + $0x120] sm:$0xff] }
 0x2ed   :  { %v1913_v24 = vrot.slane %v1912_v22, 4 }
 0x2ee   :  { %v1907_v25 = vadd.f32 %v1906_v14, %v1905_v49  ;;  %6728 = vmatpush1.bf16.msra.mxu0 %v6727_v8  ;;  %v2004_v8 = vld [vmem:[%s13272_s9 + $0x190] sm:$0xff]  ;;  %v2005_v49 = vld [vmem:[%s13272_s9 + $0x198] sm:$0xff]  ;;  %v10277_v14 = vpack.c.bf16 %v2039_v50, %v2038_v3 }
 0x2ef   :  { %v1914_v31 = vadd.f32 %v1913_v24, %v1912_v22  ;;  %6730 = vmatprep.subr.bf16.mxu0 %v6729_v12  ;;  %v10269_v12 = vpack.c.bf16 %v2021_v59, %v2020_v43  ;;  %v2022_v22 = vld [vmem:[%s13272_s9 + $0x220] sm:$0xff]  ;;  %v10285_v24 = vpack.c.bf16 %v2005_v49, %v2004_v8  ;;  %v1991_v43 = vld [vmem:[%s13272_s9 + $0x128] sm:$0xff]  ;;  %v2008_v59 = vld [vmem:[%s13272_s9 + $0x1b0] sm:$0xff] }
 0x2f0   :  { %v1908_v37 = vrot.slane %v1907_v25, 2  ;;  %13320 = vst [vmem:[#allocation8_spill] sm:$0xff] %v10277_v14  ;;  %v10336_v3 = vpack.c.bf16 %v1991_v43, %v1990_v53  ;;  %v1993_v8 = vld [vmem:[%s13272_s9 + $0x138] sm:$0xff]  ;;  %v2010_v49 = vld [vmem:[%s13272_s9 + $0x1c0] sm:$0xff]  ;;  %v2015_v43 = vld [vmem:[%s13272_s9 + $0x1e8] sm:$0xff] }
 0x2f1   :  { %v1915_v42 = vrot.slane %v1914_v31, 2  ;;  %13319 = vst [vmem:[#allocation7_spill] sm:$0xff] %v10269_v12  ;;  %v2014_v53 = vld [vmem:[%s13272_s9 + $0x1e0] sm:$0xff] }
 0x2f2   :  { %v1909_v46 = vadd.f32 %v1908_v37, %v1907_v25  ;;  %6732 = vmatpush1.bf16.msra.mxu0 %v6731_v26  ;;  %v1989_v25 = vld [vmem:[%s13272_s9 + $0x118] sm:$0xff]  ;;  %v2040_v26 = vld [vmem:[%s13272_s9 + $0x2b0] sm:$0xff]  ;;  %v10303_v37 = vpack.c.bf16 %v2023_v16, %v2022_v22  ;;  %v1994_v16 = vld [vmem:[%s13272_s9 + $0x140] sm:$0xff] }
 0x2f3   :  { %v1916_v52 = vadd.f32 %v1915_v42, %v1914_v31  ;;  %6886 = vmatprep.subr.bf16.mxu0 %v10224_v32  ;;  %v2041_v31 = vld [vmem:[%s13272_s9 + $0x2b8] sm:$0xff]  ;;  %v2024_v42 = vld [vmem:[%s13272_s9 + $0x230] sm:$0xff] }
 0x2f4   :  { %v1910_v63 = vrot.slane %v1909_v46, 1  ;;  %13321 = vst [vmem:[#allocation9_spill] sm:$0xff] %v10303_v37  ;;  %v10309_v41 = vpack.c.bf16 %v2041_v31, %v2040_v26  ;;  %v2013_v26 = vld [vmem:[%s13272_s9 + $0x1d8] sm:$0xff] }
 0x2f5   :  { %1688 = vmatmul.mubr.f32.vlgmr.msra.gmra.mrb[8].mxu0 %v8947_v45  ;;  %v1917_v5 = vrot.slane %v1916_v52, 1  ;;  %v1988_v45 = vld [vmem:[%s13272_s9 + $0x110] sm:$0xff] }
 0x2f6   :  { %6888 = vmatpush3.bf16.msra.mxu0 %v10238_v48  ;;  %v1911_v19 = vadd.f32 %v1910_v63, %v1909_v46  ;;  %v10306_v38 = vpack.c.bf16 %v1989_v25, %v1988_v45  ;;  %13322 = vst [vmem:[#allocation10_spill] sm:$0xff] %v10309_v41  ;;  %v2025_v46 = vld [vmem:[%s13272_s9 + $0x238] sm:$0xff]  ;;  %v2012_v25 = vld [vmem:[%s13272_s9 + $0x1d0] sm:$0xff] }
 0x2f7   :  { %v1918_v13 = vadd.f32 %v1917_v5, %v1916_v52  ;;  %6890 = vmatprep.subr.bf16.mxu0 %v10244_v54  ;;  %v10318_v52 = vpack.c.bf16 %v2007_v34, %v2006_v33  ;;  %v2009_v63 = vld [vmem:[%s13272_s9 + $0x1b8] sm:$0xff]  ;;  %v10333_v2 = vpack.c.bf16 %v2025_v46, %v2024_v42  ;;  %v1992_v5 = vld [vmem:[%s13272_s9 + $0x130] sm:$0xff]  ;;  %v10377_v33 = vpack.c.bf16 %v2013_v26, %v2012_v25 }
 0x2f8   :  { %v10340_v50 = vpack.c.bf16 %v2009_v63, %v2008_v59  ;;  %v10356_v45 = vpack.c.bf16 %v1993_v8, %v1992_v5  ;;  %v1996_v34 = vld [vmem:[%s13272_s9 + $0x150] sm:$0xff]  ;;  %v1997_v42 = vld [vmem:[%s13272_s9 + $0x158] sm:$0xff]  ;;  %v10398_v8 = vpack.c.bf16 %v2015_v43, %v2014_v53  ;;  %v1035_v53 = vrot.slane %v10170_v30, %v8696_v21 }
 0x2f9   :  { %2130 = vmatprep.mubr.f32.mxu1 %v1918_v13  ;;  %13323 = vst [vmem:[#allocation11_spill] sm:$0xff] %v10333_v2  ;;  %v2011_v13 = vld [vmem:[%s13272_s9 + $0x1c8] sm:$0xff]  ;;  %v10395_v5 = vpack.c.bf16 %v1997_v42, %v1996_v34  ;;  %v2000_v26 = vld [vmem:[%s13272_s9 + $0x170] sm:$0xff]  ;;  %v2001_v34 = vld [vmem:[%s13272_s9 + $0x178] sm:$0xff] }
 0x2fa   :  { %2131 = vmatmul.mubr.f32.vlgmr.msra.gmra.mrb[12].mxu1 %v1911_v19  ;;  %6892 = vmatpush3.bf16.msra.mxu0 %v10269_v12  ;;  %v10359_v22 = vpack.c.bf16 %v2011_v13, %v2010_v49  ;;  %v1995_v19 = vld [vmem:[%s13272_s9 + $0x148] sm:$0xff]  ;;  %v1998_v49 = vld [vmem:[%s13272_s9 + $0x160] sm:$0xff]  ;;  %v10425_v42 = vpack.c.bf16 %v2001_v34, %v2000_v26 }
 0x2fb   :  { %6856 = vmatpush3.bf16.msra.mxu1 %v10271_v44  ;;  %6894 = vmatprep.subr.bf16.mxu0 %v10277_v14  ;;  %v10374_v31 = vpack.c.bf16 %v1995_v19, %v1994_v16  ;;  %v1999_v13 = vld [vmem:[%s13272_s9 + $0x168] sm:$0xff]  ;;  %v2017_v16 = vld [vmem:[%s13272_s9 + $0x1f8] sm:$0xff] }
 0x2fc   :  { %6858 = vmatprep.subr.bf16.mxu1 %v10285_v24  ;;  %v10413_v19 = vpack.c.bf16 %v1999_v13, %v1998_v49 }
 0x2fe   :  { %6896 = vmatpush3.bf16.msra.mxu0 %v10303_v37 }
 0x2ff   :  { %6860 = vmatpush3.bf16.msra.mxu1 %v10306_v38  ;;  %6898 = vmatprep.subr.bf16.mxu0 %v10309_v41 }
 0x300   :  { %6862 = vmatprep.subr.bf16.mxu1 %v10318_v52 }
 0x302   :  { %6900 = vmatpush3.bf16.msra.mxu0 %v10333_v2 }
 0x303   :  { %6864 = vmatpush3.bf16.msra.mxu1 %v10336_v3 }
 0x304   :  { %6866 = vmatprep.subr.bf16.mxu1 %v10340_v50 }
 0x307   :  { %6868 = vmatpush3.bf16.msra.mxu1 %v10356_v45 }
 0x308   :  { %6870 = vmatprep.subr.bf16.mxu1 %v10359_v22 }
 0x309   :  { %v1900_v46 = vpop.f32.mrb[10].mxu1 }
 0x30a   :  { %v10392_v59 = vadd.f32 %v1900_v46, %v10216_v15  ;;  %v6073_v63 = vpop.f32.mrb[11].mxu1  ;;  %v2016_v15 = vld [vmem:[%s13272_s9 + $0x1f0] sm:$0xff]  ;;  %v1031_v46 = vrot.slane %v10170_v30, %v8685_v51 }
 0x30b   :  { %6872 = vmatpush3.bf16.msra.mxu1 %v10374_v31  ;;  %v10416_v25 = vpack.c.bf16 %v2017_v16, %v2016_v15 }
 0x30c   :  { %13324 = vst [vmem:[#allocation12_spill] sm:$0xff] %v10392_v59  ;;  %6874 = vmatprep.subr.bf16.mxu1 %v10377_v33 }
 0x30f   :  { %6876 = vmatpush3.bf16.msra.mxu1 %v10395_v5 }
 0x310   :  { %6878 = vmatprep.subr.bf16.mxu1 %v10398_v8 }
 0x313   :  { %6880 = vmatpush3.bf16.msra.mxu1 %v10413_v19 }
 0x314   :  { %6882 = vmatprep.subr.bf16.mxu1 %v10416_v25 }
 0x317   :  { %6884 = vmatpush3.bf16.msra.mxu1 %v10425_v42 }
 0x318   :  { %6917 = vmatprep.subr.bf16.mxu1 %v13282_v36 }
 0x328   :  { %v1334_v43 = vpop.f32.mrb[6].mxu0 }
 0x329   :  { %v1335_v63 = vadd.f32 %v1334_v43, %v1031_v46  ;;  %v1336_v49 = vpop.f32.mrb[7].mxu0 }
 0x32a   :  { %v1337_v13 = vadd.f32 %v1336_v49, %v1035_v53 }
 0x32b   :  { %v10435_v15 = vadd.f32 %v9984_v55, %v1335_v63  ;;  %v2050_v55 = vld [vmem:[%s13272_s9 + $0x300] sm:$0xff] }
 0x32c   :  { %v10438_v16 = vadd.f32 %v9992_v60, %v1337_v13  ;;  %v2051_v60 = vld [vmem:[%s13272_s9 + $0x308] sm:$0xff] }
 0x32d   :  { %v1919_v26 = vsel %vm1904_vm2, %v10435_v15, 0.0  ;;  %v10450_v2 = vpack.c.bf16 %v2051_v60, %v2050_v55  ;;  %v2058_v60 = vld [vmem:[%s13272_s9 + $0x340] sm:$0xff] }
 0x32e   :  { %v1920_v34 = vrot.slane %v1919_v26, 4  ;;  %v1926_v36 = vsel %vm1904_vm2, %v10438_v16, 0.0 }
 0x32f   :  { %v1927_v0 = vrot.slane %v1926_v36, 4  ;;  %13325 = vst [vmem:[#allocation13_spill] sm:$0xff] %v10450_v2 }
 0x330   :  { %v1921_v51 = vadd.f32 %v1920_v34, %v1919_v26  ;;  %v2054_v26 = vld [vmem:[%s13272_s9 + $0x320] sm:$0xff]  ;;  %v2055_v34 = vld [vmem:[%s13272_s9 + $0x328] sm:$0xff] }
 0x331   :  { %v1928_v21 = vadd.f32 %v1927_v0, %v1926_v36  ;;  %v2052_v0 = vld [vmem:[%s13272_s9 + $0x310] sm:$0xff]  ;;  %v2053_v36 = vld [vmem:[%s13272_s9 + $0x318] sm:$0xff] }
 0x332   :  { %v1922_v20 = vrot.slane %v1921_v51, 2 }
 0x333   :  { %v1929_v46 = vrot.slane %v1928_v21, 2 }
 0x334   :  { %v1923_v43 = vadd.f32 %v1922_v20, %v1921_v51  ;;  %v10459_v51 = vpack.c.bf16 %v2053_v36, %v2052_v0  ;;  %v13327_v20 = vmov 0.0   ;;  %v2043_v0 = vld [vmem:[%s13272_s9 + $0x2c8] sm:$0xff] }
 0x335   :  { %v1930_v53 = vadd.f32 %v1929_v46, %v1928_v21  ;;  %v13328_v21 = vmov 0.0|0.0   ;;  %v2056_v46 = vld [vmem:[%s13272_s9 + $0x330] sm:$0xff] }
 0x336   :  { %v1924_v49 = vrot.slane %v1923_v43, 1  ;;  %13326 = vst [vmem:[#allocation14_spill] sm:$0xff] %v10459_v51 }
 0x337   :  { %v1931_v63 = vrot.slane %v1930_v53, 1 }
 0x338   :  { %v1925_v41 = vadd.f32 %v1924_v49, %v1923_v43  ;;  %v2057_v43 = vld [vmem:[%s13272_s9 + $0x338] sm:$0xff] }
 0x339   :  { %v1932_v13 = vadd.f32 %v1931_v63, %v1930_v53  ;;  %v1947_v53 = vsel %vm1904_vm2, %v10392_v59, 0.0  ;;  %v10483_v49 = vpack.c.bf16 %v2057_v43, %v2056_v46  ;;  %v2059_v63 = vld [vmem:[%s13272_s9 + $0x348] sm:$0xff] }
 0x33a   :  { %v1948_v55 = vrot.slane %v1947_v53, 4  ;;  %v10499_v36 = vpack.c.bf16 %v2059_v63, %v2058_v60  ;;  %v2027_v46 = vld [vmem:[%s13272_s9 + $0x248] sm:$0xff]  ;;  %v2061_v60 = vld [vmem:[%s13272_s9 + $0x358] sm:$0xff] }
 0x33b   :  { %2200 = vmatprep.mubr.f32.mxu1 %v1932_v13  ;;  %13330 = vst [vmem:[#allocation16_spill] sm:$0xff] %v10483_v49  ;;  %v2042_v13 = vld [vmem:[%s13272_s9 + $0x2c0] sm:$0xff] }
 0x33c   :  { %2201 = vmatmul.mubr.f32.vlgmr.msra.gmra.mrb[14].mxu1 %v1925_v41  ;;  %v10471_v41 = vpack.c.bf16 %v2055_v34, %v2054_v26  ;;  %13331 = vst [vmem:[#allocation17_spill] sm:$0xff] %v10499_v36  ;;  %v10501_v26 = vpack.c.bf16 %v2043_v0, %v2042_v13  ;;  %v2026_v34 = vld [vmem:[%s13272_s9 + $0x240] sm:$0xff]  ;;  %v1949_v43 = vadd.f32 %v1948_v55, %v1947_v53  ;;  %v2044_v53 = vld [vmem:[%s13272_s9 + $0x2d0] sm:$0xff]  ;;  %v2045_v55 = vld [vmem:[%s13272_s9 + $0x2d8] sm:$0xff] }
 0x33d   :  { %6919 = vmatpush3.bf16.msra.mxu1 %v10450_v2  ;;  %6106 = vmatprep.mubr.msk.f32.mxu1 %vm7932_vm1, %v13327_v20  ;;  %v10516_v63 = vpack.c.bf16 %v2027_v46, %v2026_v34  ;;  %v10529_v0 = vpack.c.bf16 %v2045_v55, %v2044_v53  ;;  %v2028_v34 = vld [vmem:[%s13272_s9 + $0x250] sm:$0xff]  ;;  %v2029_v46 = vld [vmem:[%s13272_s9 + $0x258] sm:$0xff]  ;;  %v2046_v53 = vld [vmem:[%s13272_s9 + $0x2e0] sm:$0xff] }
 0x33e   :  { %6920 = vmatprep.subr.bf16.mxu1 %v13328_v21  ;;  %13329 = vst [vmem:[#allocation15_spill] sm:$0xff] %v10471_v41  ;;  %13332 = vst [vmem:[#allocation18_spill] sm:$0xff] %v10501_v26  ;;  %6902 = vmatprep.subr.bf16.mxu0 %v10501_v26  ;;  %v2047_v55 = vld [vmem:[%s13272_s9 + $0x2e8] sm:$0xff] }
 0x33f   :  { %13333 = vst [vmem:[#allocation19_spill] sm:$0xff] %v10516_v63  ;;  %6904 = vmatpush3.bf16.msra.mxu0 %v10516_v63  ;;  %13335 = vst [vmem:[#allocation21_spill] sm:$0xff] %v10529_v0  ;;  %v2062_v63 = vld [vmem:[%s13272_s9 + $0x360] sm:$0xff]  ;;  %v10557_v26 = vpack.c.bf16 %v2047_v55, %v2046_v53  ;;  %v2032_v53 = vld [vmem:[%s13272_s9 + $0x270] sm:$0xff] }
 0x340   :  { %6906 = vmatprep.subr.bf16.mxu0 %v10529_v0  ;;  %v2064_v0 = vld [vmem:[%s13272_s9 + $0x370] sm:$0xff] }
 0x341   :  { %6922 = vmatpush3.bf16.msra.mxu1 %v10459_v51  ;;  %13338 = vst [vmem:[#allocation24_spill] sm:$0xff] %v10557_v26 }
 0x342   :  { %6923 = vmatprep.subr.bf16.mxu1 %v13328_v21 }
 0x345   :  { %6925 = vmatpush3.bf16.msra.mxu1 %v10471_v41  ;;  %v2060_v41 = vld [vmem:[%s13272_s9 + $0x350] sm:$0xff] }
 0x346   :  { %6926 = vmatprep.subr.bf16.mxu1 %v13328_v21  ;;  %v10527_v13 = vpack.c.bf16 %v2061_v60, %v2060_v41  ;;  %v2063_v41 = vld [vmem:[%s13272_s9 + $0x368] sm:$0xff]  ;;  %v10544_v60 = vpack.c.bf16 %v2029_v46, %v2028_v34  ;;  %v2030_v34 = vld [vmem:[%s13272_s9 + $0x260] sm:$0xff] }
 0x347   :  { %v2031_v46 = vld [vmem:[%s13272_s9 + $0x268] sm:$0xff] }
 0x348   :  { %13334 = vst [vmem:[#allocation20_spill] sm:$0xff] %v10527_v13  ;;  %13336 = vst [vmem:[#allocation22_spill] sm:$0xff] %v10544_v60  ;;  %6908 = vmatpush3.bf16.msra.mxu0 %v10544_v60 }
 0x349   :  { %6928 = vmatpush3.bf16.msra.mxu1 %v10483_v49  ;;  %v1950_v49 = vrot.slane %v1949_v43, 2  ;;  %6910 = vmatprep.subr.bf16.mxu0 %v10557_v26 }
 0x34a   :  { %6929 = vmatprep.subr.bf16.mxu1 %v13328_v21 }
 0x34b   :  { %v1951_v60 = vadd.f32 %v1950_v49, %v1949_v43  ;;  %v2048_v49 = vld [vmem:[%s13272_s9 + $0x2f0] sm:$0xff]  ;;  %v2049_v43 = vld [vmem:[%s13272_s9 + $0x2f8] sm:$0xff] }
 0x34d   :  { %6931 = vmatpush3.bf16.msra.mxu1 %v10499_v36  ;;  %v10555_v36 = vpack.c.bf16 %v2063_v41, %v2062_v63  ;;  %v2065_v63 = vld [vmem:[%s13272_s9 + $0x378] sm:$0xff]  ;;  %v10572_v41 = vpack.c.bf16 %v2031_v46, %v2030_v34  ;;  %v10588_v34 = vpack.c.bf16 %v2049_v43, %v2048_v49  ;;  %v1039_v49 = vrot.slane %v10170_v30, %v8871_v62 }
 0x34e   :  { %6932 = vmatprep.subr.bf16.mxu1 %v13328_v21  ;;  %v10586_v55 = vpack.c.bf16 %v2065_v63, %v2064_v0  ;;  %v2033_v46 = vld [vmem:[%s13272_s9 + $0x278] sm:$0xff]  ;;  %v13308_v63 = vsub.s32 5, %v8679_v17 }
 0x34f   :  { %13337 = vst [vmem:[#allocation23_spill] sm:$0xff] %v10555_v36  ;;  %13339 = vst [vmem:[#allocation25_spill] sm:$0xff] %v10572_v41  ;;  %6912 = vmatpush3.bf16.msra.mxu0 %v10572_v41  ;;  %v10594_v41 = vpack.c.bf16 %v2033_v46, %v2032_v53 }
 0x350   :  { %13340 = vst [vmem:[#allocation26_spill] sm:$0xff] %v10586_v55  ;;  %13341 = vst [vmem:[#allocation27_spill] sm:$0xff] %v10588_v34  ;;  %6914 = vmatprep.subr.bf16.mxu0 %v10588_v34  ;;  %v1043_v43 = vrot.slane %v10170_v30, %v13308_v63 }
 0x351   :  { %6934 = vmatpush3.bf16.msra.mxu1 %v10527_v13  ;;  %v1952_v13 = vrot.slane %v1951_v60, 1  ;;  %13342 = vst [vmem:[#allocation28_spill] sm:$0xff] %v10594_v41 }
 0x352   :  { %6935 = vmatprep.subr.bf16.mxu1 %v13328_v21 }
 0x353   :  { %6916 = vmatpush3.bf16.msra.mxu0 %v10594_v41  ;;  %v1953_v0 = vadd.f32 %v1952_v13, %v1951_v60 }
 0x354   :  { %6953 = vmatprep.subr.bf16.mxu0 %v13328_v21 }
 0x355   :  { %6937 = vmatpush3.bf16.msra.mxu1 %v10555_v36 }
 0x356   :  { %6938 = vmatprep.subr.bf16.mxu1 %v13328_v21 }
 0x359   :  { %6940 = vmatpush3.bf16.msra.mxu1 %v10586_v55 }
 0x35c   :  { %6107 = vmatmul.mubr.f32.vlgmr.msra.gmra.mrb[16].mxu1 %v1953_v0 }
 0x35d   :  { %2429 = vmatprep.mubr.f32.mxu1 %v13327_v20 }
 0x3c8   :  { %v1689_v53 = vpop.f32.mrb[8].mxu0 }
 0x3c9   :  { %v10607_v46 = vadd.f32 %v1689_v53, %v1039_v49  ;;  %v1691_v36 = vpop.f32.mrb[9].mxu0 }
 0x3ca   :  { %v10609_v55 = vadd.f32 %v1691_v36, %v1043_v43 }
 0x3cb   :  { %v1933_v13 = vsel %vm1904_vm2, %v10607_v46, 0.0 }
 0x3cc   :  { %v1934_v60 = vrot.slane %v1933_v13, 4  ;;  %v1940_v0 = vsel %vm1904_vm2, %v10609_v55, 0.0 }
 0x3cd   :  { %v1941_v41 = vrot.slane %v1940_v0, 4  ;;  %v5708_v34 = vpop.f32.mrb[12].mxu1 }
 0x3ce   :  { %v1935_v62 = vadd.f32 %v1934_v60, %v1933_v13  ;;  %v5709_v26 = vpop.f32.mrb[13].mxu1 }
 0x3cf   :  { %v1942_v17 = vadd.f32 %v1941_v41, %v1940_v0  ;;  %v5710_v51 = vadd.f32 %v5709_v26, %v5708_v34  ;;  %v2350_v34 = vld [vmem:[%s13274_s10 + $0x18] sm:$0xff] }
 0x3d0   :  { %v1936_v30 = vrot.slane %v1935_v62, 2 }
 0x3d1   :  { %v1943_v63 = vrot.slane %v1942_v17, 2 }
 0x3d2   :  { %v1937_v49 = vadd.f32 %v1936_v30, %v1935_v62  ;;  %v2348_v62 = vld [vmem:[%s13274_s10 + $0x8] sm:$0xff] }
 0x3d3   :  { %v1944_v53 = vadd.f32 %v1943_v63, %v1942_v17  ;;  %v2355_v17 = vld [vmem:[%s13274_s10 + $0x40] sm:$0xff]  ;;  %v2357_v63 = vld [vmem:[%s13274_s10 + $0x50] sm:$0xff] }
 0x3d4   :  { %v1938_v37 = vrot.slane %v1937_v49, 1  ;;  %v10650_v0 = vpack.c.bf16 %v2357_v63, %v2350_v34 }
 0x3d5   :  { %v1945_v36 = vrot.slane %v1944_v53, 1 }
 0x3d6   :  { %v1939_v14 = vadd.f32 %v1938_v37, %v1937_v49  ;;  %v10623_v37 = vpack.c.bf16 %v2355_v17, %v2348_v62  ;;  %v2352_v62 = vld [vmem:[%s13274_s10 + $0x28] sm:$0xff] }
 0x3d7   :  { %v1946_v43 = vadd.f32 %v1945_v36, %v1944_v53 }
 0x3d8   :  { %6942 = vmatprep.subr.bf16.mxu1 %v10623_v37 }
 0x3d9   :  { %2270 = vmatprep.mubr.f32.mxu0 %v1946_v43  ;;  %v2349_v43 = vld [vmem:[%s13274_s10 + $0x10] sm:$0xff] }
 0x3da   :  { %2271 = vmatmul.mubr.f32.vlgmr.msra.gmra.mrb[10].mxu0 %v1939_v14  ;;  %v2347_v14 = vld [vmem:[%s13274_s10] sm:$0xff] }
 0x3db   :  { %6113 = vmatprep.mubr.msk.f32.mxu0 %vm7932_vm1, %v13327_v20 }
 0x40f   :  { %v5743_v2 = vpop.f32.mrb[14].mxu1 }
 0x410   :  { %v5744_v12 = vpop.f32.mrb[15].mxu1 }
 0x411   :  { %v5745_v59 = vadd.f32 %v5744_v12, %v5743_v2  ;;  %v2354_v12 = vld [vmem:[%s13274_s10 + $0x38] sm:$0xff]  ;;  %v2353_v2 = vld [vmem:[%s13274_s10 + $0x30] sm:$0xff] }
 0x413   :  { %v2203_v13 = vadd.f32 %v5745_v59, %v5710_v51  ;;  %v10634_v59 = vpack.c.bf16 %v2354_v12, %v2347_v14  ;;  %v2360_v51 = vld [vmem:[%s13274_s10 + $0x68] sm:$0xff] }
 0x414   :  { %v10640_v26 = vpack.c.bf16 %v2360_v51, %v2353_v2  ;;  %v2351_v2 = vld [vmem:[%s13274_s10 + $0x20] sm:$0xff]  ;;  %v2358_v51 = vld [vmem:[%s13274_s10 + $0x58] sm:$0xff] }
 0x415   :  { %6944 = vmatpush1.bf16.msra.mxu1 %v10634_v59 }
 0x416   :  { %6955 = vmatpush3.bf16.msra.mxu0 %v10640_v26  ;;  %6946 = vmatprep.subr.bf16.mxu1 %v10650_v0 }
 0x417   :  { %6957 = vmatprep.subr.bf16.mxu0 %v9601_v57  ;;  %v2359_v57 = vld [vmem:[%s13274_s10 + $0x60] sm:$0xff] }
 0x418   :  { %v10668_v12 = vpack.c.bf16 %v2359_v57, %v2352_v62 }
 0x42f   :  { %v2342_v60 = vpop.f32.mrb[16].mxu1 }
 0x430   :  { %v6108_v41 = vpop.f32.mrb[17].mxu1 }
 0x431   :  { %v2356_v41 = vld [vmem:[%s13274_s10 + $0x48] sm:$0xff] }
 0x432   :  { %v10666_v14 = vpack.c.bf16 %v2356_v41, %v2349_v43 }
 0x4ad   :  { %v5778_v30 = vpop.f32.mrb[10].mxu0 }
 0x4ae   :  { %v5779_v49 = vpop.f32.mrb[11].mxu0 }
 0x4af   :  { %v5780_v53 = vadd.f32 %v5779_v49, %v5778_v30 }
 0x4b1   :  { %v2273_v36 = vadd.f32 %v5780_v53, %v2203_v13 }
 0x4b3   :  { %v2343_v17 = vadd.f32 %v2342_v60, %v2273_v36  ;;  %v10680_v60 = vpack.c.bf16 %v2358_v51, %v2351_v2 }
 0x4b5   :  { %v2346_v13 = vmul.f32 0.008928572, %v2343_v17 }
 0x4b7   :  { %5556 = vmatmul.mubr.msk.f32.vlgmr.msra.gmra.mrb[18].mxu1 %vm2361_vm3, %v2346_v13  ;;  %6114 = vmatmul.mubr.msk.f32.vlgmr.msra.gmra.mrb[12].mxu0 %vm2361_vm3, %v2346_v13 }
 0x4b8   :  { %6948 = vmatpush1.bf16.msra.mxu1 %v10666_v14  ;;  %2500 = vmatprep.mubr.f32.mxu1 %v13327_v20 }
 0x4b9   :  { %6950 = vmatprep.subr.bf16.mxu1 %v10668_v12  ;;  %6959 = vmatpush3.bf16.msra.mxu0 %v9609_v61 }
 0x4ba   :  { %6961 = vmatprep.subr.bf16.mxu0 %v9631_v7 }
 0x4bb   :  { %5557 = vmatmul.mubr.msk.f32.vlgmr.msra.gmra.mrb[20].mxu1 %vm2361_vm3, %v2346_v13 }
 0x4bc   :  { %6952 = vmatpush1.bf16.msra.mxu1 %v10680_v60  ;;  %2571 = vmatprep.mubr.f32.mxu1 %v13327_v20 }
 0x4bd   :  { %6989 = vmatprep.subr.bf16.mxu1 %v9927_v6  ;;  %6963 = vmatpush3.bf16.msra.mxu0 %v9639_v11 }
 0x4be   :  { %6965 = vmatprep.subr.bf16.mxu0 %v9661_v23 }
 0x4bf   :  { %5558 = vmatmul.mubr.msk.f32.vlgmr.msra.gmra.mrb[22].mxu1 %vm2361_vm3, %v2346_v13 }
 0x4c0   :  { %6991 = vmatpush3.bf16.msra.mxu1 %v10271_v44 }
 0x4c1   :  { %6993 = vmatprep.subr.bf16.mxu1 %v10285_v24  ;;  %6967 = vmatpush3.bf16.msra.mxu0 %v9669_v27 }
 0x4c2   :  { %6969 = vmatprep.subr.bf16.mxu0 %v9691_v35 }
 0x4c4   :  { %6995 = vmatpush3.bf16.msra.mxu1 %v10306_v38 }
 0x4c5   :  { %6997 = vmatprep.subr.bf16.mxu1 %v10318_v52  ;;  %6971 = vmatpush3.bf16.msra.mxu0 %v9699_v40 }
 0x4c6   :  { %6973 = vmatprep.subr.bf16.mxu0 %v9727_v56 }
 0x4c8   :  { %6999 = vmatpush3.bf16.msra.mxu1 %v10336_v3 }
 0x4c9   :  { %7001 = vmatprep.subr.bf16.mxu1 %v10340_v50  ;;  %6975 = vmatpush3.bf16.msra.mxu0 %v9729_v58 }
 0x4ca   :  { %6977 = vmatprep.subr.bf16.mxu0 %v9757_v9 }
 0x4cc   :  { %7003 = vmatpush3.bf16.msra.mxu1 %v10356_v45 }
 0x4cd   :  { %7005 = vmatprep.subr.bf16.mxu1 %v10359_v22  ;;  %6979 = vmatpush3.bf16.msra.mxu0 %v9759_v10 }
 0x4ce   :  { %6981 = vmatprep.subr.bf16.mxu0 %v9787_v28 }
 0x4d0   :  { %7007 = vmatpush3.bf16.msra.mxu1 %v10374_v31 }
 0x4d1   :  { %7009 = vmatprep.subr.bf16.mxu1 %v10377_v33  ;;  %6983 = vmatpush3.bf16.msra.mxu0 %v9789_v29 }
 0x4d2   :  { %6985 = vmatprep.subr.bf16.mxu0 %v9811_v39 }
 0x4d4   :  { %7011 = vmatpush3.bf16.msra.mxu1 %v10395_v5 }
 0x4d5   :  { %7013 = vmatprep.subr.bf16.mxu1 %v10398_v8  ;;  %6987 = vmatpush3.bf16.msra.mxu0 %v9819_v47 }
 0x4d6   :  { %7021 = vmatprep.subr.bf16.mxu0 %v10224_v32 }
 0x4d8   :  { %7015 = vmatpush3.bf16.msra.mxu1 %v10413_v19 }
 0x4d9   :  { %7017 = vmatprep.subr.bf16.mxu1 %v10416_v25 }
 0x4dc   :  { %7019 = vmatpush3.bf16.msra.mxu1 %v10425_v42 }
 0x4dd   :  { %7052 = vmatprep.subr.bf16.mxu1 %v13328_v21 }
 0x58a   :  { %v2431_v61 = vpop.f32.mrb[18].mxu1  ;;  %v10720_v7 = vpop.f32.mrb[12].mxu0 }
 0x58b   :  { %v2651_v11 = vrot.slane %v2431_v61, %v8682_v18  ;;  %v2433_v23 = vpop.f32.mrb[19].mxu1  ;;  %v6115_v27 = vpop.f32.mrb[13].mxu0 }
 0x58c   :  { %v2655_v35 = vrot.slane %v2433_v23, %v8682_v18 }
 0x58d   :  { %v10725_v40 = vsub.f32 %v10201_v1, %v2651_v11  ;;  %v2675_v11 = vrot.slane %v10720_v7, %v8682_v18 }
 0x58e   :  { %v10728_v56 = vsub.f32 %v10204_v4, %v2655_v35  ;;  %v2502_v58 = vpop.f32.mrb[20].mxu1 }
 0x58f   :  { %v2683_v9 = vmul.f32 %v10725_v40, %v10725_v40  ;;  %v2659_v10 = vrot.slane %v2502_v58, %v8682_v18  ;;  %v2504_v28 = vpop.f32.mrb[21].mxu1 }
 0x590   :  { %v2684_v29 = vmul.f32 %v10728_v56, %v10728_v56  ;;  %v2663_v39 = vrot.slane %v2504_v28, %v8682_v18  ;;  %v13343_v28 = vld [vmem:[#allocation12_spill] sm:$0xff] }
 0x591   :  { %v2690_v47 = vsel %vm1904_vm2, %v2683_v9, 0.0  ;;  %v10738_v6 = vsub.f32 %v10435_v15, %v2659_v10 }
 0x592   :  { %v2691_v1 = vrot.slane %v2690_v47, 4  ;;  %v2697_v4 = vsel %vm1904_vm2, %v2684_v29, 0.0  ;;  %v10742_v32 = vsub.f32 %v10438_v16, %v2663_v39  ;;  %v2573_v44 = vpop.f32.mrb[22].mxu1  ;;  %v10766_v29 = vsub.f32 %v13343_v28, %v2675_v11  ;;  %v13344_v39 = vld [vmem:[#allocation7_spill] sm:$0xff] }
 0x593   :  { %v2698_v24 = vrot.slane %v2697_v4, 4  ;;  %v2685_v38 = vmul.f32 %v10738_v6, %v10738_v6  ;;  %v2575_v52 = vpop.f32.mrb[23].mxu1  ;;  %v2667_v36 = vrot.slane %v2573_v44, %v8682_v18  ;;  %v13347_v44 = vld [vmem:[#allocation9_spill] sm:$0xff] }
 0x594   :  { %v2692_v3 = vadd.f32 %v2691_v1, %v2690_v47  ;;  %v2686_v50 = vmul.f32 %v10742_v32, %v10742_v32  ;;  %v2671_v45 = vrot.slane %v2575_v52, %v8682_v18  ;;  %v13345_v47 = vld [vmem:[#allocation13_spill] sm:$0xff]  ;;  %v13346_v1 = vld [vmem:[#allocation8_spill] sm:$0xff]  ;;  %v13349_v52 = vld [vmem:[#allocation10_spill] sm:$0xff] }
 0x595   :  { %v2699_v22 = vadd.f32 %v2698_v24, %v2697_v4  ;;  %v2704_v31 = vsel %vm1904_vm2, %v2685_v38, 0.0  ;;  %v10761_v23 = vsub.f32 %v10607_v46, %v2667_v36  ;;  %v13348_v24 = vld [vmem:[#allocation14_spill] sm:$0xff]  ;;  %v13360_v36 = vld [vmem:[#allocation20_spill] sm:$0xff] }
 0x596   :  { %v2693_v33 = vrot.slane %v2692_v3, 2  ;;  %v2705_v5 = vrot.slane %v2704_v31, 4  ;;  %v2711_v8 = vsel %vm1904_vm2, %v2686_v50, 0.0  ;;  %v10752_v25 = vsub.f32 %v10609_v55, %v2671_v45  ;;  %v13350_v50 = vld [vmem:[#allocation11_spill] sm:$0xff] }
 0x597   :  { %v2712_v19 = vrot.slane %v2711_v8, 4  ;;  %v2700_v42 = vrot.slane %v2699_v22, 2  ;;  %v2687_v7 = vmul.f32 %v10761_v23, %v10761_v23  ;;  %v13351_v45 = vld [vmem:[#allocation15_spill] sm:$0xff] }
 0x598   :  { %v2706_v15 = vadd.f32 %v2705_v5, %v2704_v31  ;;  %v2694_v16 = vadd.f32 %v2693_v33, %v2692_v3  ;;  %v2688_v63 = vmul.f32 %v10752_v25, %v10752_v25  ;;  %v13352_v33 = vld [vmem:[#allocation18_spill] sm:$0xff]  ;;  %v13353_v5 = vld [vmem:[#allocation19_spill] sm:$0xff] }
 0x599   :  { %v2713_v34 = vadd.f32 %v2712_v19, %v2711_v8  ;;  %v2701_v30 = vadd.f32 %v2700_v42, %v2699_v22  ;;  %v2718_v4 = vsel %vm1904_vm2, %v2687_v7, 0.0  ;;  %v13354_v8 = vld [vmem:[#allocation16_spill] sm:$0xff]  ;;  %v3686_v7 = vld [vmem:[%s13276_s11 + $0x60] sm:$0xff] }
 0x59a   :  { %v2707_v49 = vrot.slane %v2706_v15, 2  ;;  %v2695_v53 = vrot.slane %v2694_v16, 1  ;;  %v2725_v43 = vsel %vm1904_vm2, %v2688_v63, 0.0  ;;  %v2719_v38 = vrot.slane %v2718_v4, 4 }
 0x59b   :  { %v2702_v41 = vrot.slane %v2701_v30, 1  ;;  %v2714_v62 = vrot.slane %v2713_v34, 2  ;;  %v2726_v57 = vrot.slane %v2725_v43, 4 }
 0x59c   :  { %v2708_v17 = vadd.f32 %v2707_v49, %v2706_v15  ;;  %v2696_v51 = vadd.f32 %v2695_v53, %v2694_v16  ;;  %v2720_v31 = vadd.f32 %v2719_v38, %v2718_v4  ;;  %v13355_v15 = vld [vmem:[#allocation21_spill] sm:$0xff]  ;;  %v13356_v16 = vld [vmem:[#allocation22_spill] sm:$0xff]  ;;  %v3704_v4 = vld [vmem:[%s13276_s11 + $0xf0] sm:$0xff] }
 0x59d   :  { %v2703_v55 = vadd.f32 %v2702_v41, %v2701_v30  ;;  %v2715_v13 = vadd.f32 %v2714_v62, %v2713_v34  ;;  %v2727_v2 = vadd.f32 %v2726_v57, %v2725_v43  ;;  %v13357_v34 = vld [vmem:[#allocation17_spill] sm:$0xff]  ;;  %v13358_v30 = vld [vmem:[#allocation24_spill] sm:$0xff]  ;;  %v13361_v43 = vld [vmem:[#allocation27_spill] sm:$0xff] }
 0x59e   :  { %v2709_v61 = vrot.slane %v2708_v17, 1  ;;  %v2721_v42 = vrot.slane %v2720_v31, 2  ;;  %v13359_v53 = vld [vmem:[#allocation25_spill] sm:$0xff]  ;;  %v13362_v57 = vld [vmem:[#allocation28_spill] sm:$0xff] }
 0x59f   :  { %2803 = vmatprep.mubr.f32.mxu0 %v2703_v55  ;;  %v2716_v27 = vrot.slane %v2715_v13, 1  ;;  %v2728_v35 = vrot.slane %v2727_v2, 2  ;;  %v3717_v38 = vld [vmem:[%s13276_s11 + $0x158] sm:$0xff] }
 0x5a0   :  { %2804 = vmatmul.mubr.f32.vlgmr.msra.gmra.mrb[14].mxu0 %v2696_v51  ;;  %v2710_v9 = vadd.f32 %v2709_v61, %v2708_v17  ;;  %v2722_v49 = vadd.f32 %v2721_v42, %v2720_v31  ;;  %v13363_v17 = vld [vmem:[#allocation23_spill] sm:$0xff]  ;;  %v10815_v61 = vld [vmem:[%s13275_s8] sm:$0x1]  ;;  %v3729_v31 = vld [vmem:[%s13276_s11 + $0x1b8] sm:$0xff] }
 0x5a1   :  { %7023 = vmatpush3.bf16.msra.mxu0 %v10238_v48  ;;  %v2717_v58 = vadd.f32 %v2716_v27, %v2715_v13  ;;  %v2729_v10 = vadd.f32 %v2728_v35, %v2727_v2  ;;  %v13364_v2 = vld [vmem:[#allocation26_spill] sm:$0xff]  ;;  %v3680_v35 = vld [vmem:[%s13276_s11 + $0x30] sm:$0xff]  ;;  %v3735_v42 = vld [vmem:[%s13276_s11 + $0x1e8] sm:$0xff] }
 0x5a2   :  { %7025 = vmatprep.subr.bf16.mxu0 %v10244_v54  ;;  %v2689_v54 = vmul.f32 %v10766_v29, %v10766_v29  ;;  %v2723_v41 = vrot.slane %v2722_v49, 1  ;;  %v3674_v27 = vld [vmem:[%s13276_s11] sm:$0xff] }
 0x5a3   :  { %2873 = vmatprep.mubr.f32.mxu1 %v2717_v58  ;;  %v2730_v46 = vrot.slane %v2729_v10, 1  ;;  %v7108_v58 = vpack.c.bf16 %v3680_v35, %v3674_v27  ;;  %v3770_v27 = vld [vmem:[%s13276_s11 + $0x300] sm:$0xff]  ;;  %v3776_v35 = vld [vmem:[%s13276_s11 + $0x330] sm:$0xff] }
 0x5a4   :  { %2874 = vmatmul.mubr.f32.vlgmr.msra.gmra.mrb[24].mxu1 %v2710_v9  ;;  %v2732_v3 = vsel %vm1904_vm2, %v2689_v54, 0.0  ;;  %v2724_v55 = vadd.f32 %v2723_v41, %v2722_v49  ;;  %v3687_v9 = vld [vmem:[%s13276_s11 + $0x68] sm:$0xff]  ;;  %v3698_v54 = vld [vmem:[%s13276_s11 + $0xc0] sm:$0xff]  ;;  %v3752_v41 = vld [vmem:[%s13276_s11 + $0x270] sm:$0xff] }
 0x5a5   :  { %7027 = vmatpush3.bf16.msra.mxu0 %v13344_v39  ;;  %7054 = vmatpush3.bf16.msra.mxu1 %v13345_v47  ;;  %v2731_v48 = vadd.f32 %v2730_v46, %v2729_v10  ;;  %v2733_v22 = vrot.slane %v2732_v3, 4  ;;  %v3693_v10 = vld [vmem:[%s13276_s11 + $0x98] sm:$0xff]  ;;  %v3692_v46 = vld [vmem:[%s13276_s11 + $0x90] sm:$0xff]  ;;  %v3699_v47 = vld [vmem:[%s13276_s11 + $0xc8] sm:$0xff] }
 0x5a6   :  { %7029 = vmatprep.subr.bf16.mxu0 %v13346_v1  ;;  %7055 = vmatprep.subr.bf16.mxu1 %v13328_v21  ;;  %v7110_v28 = vpack.c.bf16 %v3693_v10, %v3687_v9  ;;  %v7112_v39 = vpack.c.bf16 %v3692_v46, %v3686_v7  ;;  %v3705_v1 = vld [vmem:[%s13276_s11 + $0xf8] sm:$0xff]  ;;  %v3747_v49 = vld [vmem:[%s13276_s11 + $0x248] sm:$0xff]  ;;  %v3782_v7 = vld [vmem:[%s13276_s11 + $0x360] sm:$0xff] }
 0x5a7   :  { %6148 = vmatprep.mubr.msk.f32.mxu1 %vm7932_vm1, %v13327_v20  ;;  %2943 = vmatprep.mubr.f32.mxu0 %v2731_v48  ;;  %v2734_v19 = vadd.f32 %v2733_v22, %v2732_v3  ;;  %v7114_v48 = vpack.c.bf16 %v3705_v1, %v3699_v47  ;;  %v3710_v3 = vld [vmem:[%s13276_s11 + $0x120] sm:$0xff]  ;;  %v3723_v22 = vld [vmem:[%s13276_s11 + $0x188] sm:$0xff]  ;;  %v3789_v10 = vld [vmem:[%s13276_s11 + $0x398] sm:$0xff] }
 0x5a8   :  { %v3783_v9 = vld [vmem:[%s13276_s11 + $0x368] sm:$0xff]  ;;  %v3788_v46 = vld [vmem:[%s13276_s11 + $0x390] sm:$0xff]  ;;  %v3801_v1 = vld [vmem:[%s13276_s11 + $0x3f8] sm:$0xff] }
 0x5a9   :  { %7031 = vmatpush3.bf16.msra.mxu0 %v13347_v44  ;;  %7057 = vmatpush3.bf16.msra.mxu1 %v13348_v24  ;;  %v2735_v63 = vrot.slane %v2734_v19, 2  ;;  %v7116_v44 = vpack.c.bf16 %v3704_v4, %v3698_v54  ;;  %v3711_v24 = vld [vmem:[%s13276_s11 + $0x128] sm:$0xff]  ;;  %v3794_v54 = vld [vmem:[%s13276_s11 + $0x3c0] sm:$0xff]  ;;  %v3800_v4 = vld [vmem:[%s13276_s11 + $0x3f0] sm:$0xff] }
 0x5aa   :  { %7033 = vmatprep.subr.bf16.mxu0 %v13349_v52  ;;  %7058 = vmatprep.subr.bf16.mxu1 %v13328_v21  ;;  %v7118_v52 = vpack.c.bf16 %v3717_v38, %v3711_v24  ;;  %v3795_v47 = vld [vmem:[%s13276_s11 + $0x3c8] sm:$0xff]  ;;  %v3813_v38 = vld [vmem:[%s13276_s11 + $0x458] sm:$0xff] }
 0x5ab   :  { %v2736_v62 = vadd.f32 %v2735_v63, %v2734_v19  ;;  %v3740_v63 = vld [vmem:[%s13276_s11 + $0x210] sm:$0xff]  ;;  %v3807_v24 = vld [vmem:[%s13276_s11 + $0x428] sm:$0xff] }
 0x5ad   :  { %7035 = vmatpush3.bf16.msra.mxu0 %v13350_v50  ;;  %7060 = vmatpush3.bf16.msra.mxu1 %v13351_v45  ;;  %v2737_v13 = vrot.slane %v2736_v62, 1  ;;  %v3716_v50 = vld [vmem:[%s13276_s11 + $0x150] sm:$0xff] }
 0x5ae   :  { %7037 = vmatprep.subr.bf16.mxu0 %v13352_v33  ;;  %7061 = vmatprep.subr.bf16.mxu1 %v13328_v21  ;;  %v7120_v45 = vpack.c.bf16 %v3716_v50, %v3710_v3  ;;  %v7122_v33 = vpack.c.bf16 %v3729_v31, %v3723_v22  ;;  %v3806_v3 = vld [vmem:[%s13276_s11 + $0x420] sm:$0xff]  ;;  %v3812_v50 = vld [vmem:[%s13276_s11 + $0x450] sm:$0xff]  ;;  %v3819_v22 = vld [vmem:[%s13276_s11 + $0x488] sm:$0xff] }
 0x5af   :  { %v2738_v51 = vadd.f32 %v2737_v13, %v2736_v62  ;;  %v3758_v13 = vld [vmem:[%s13276_s11 + $0x2a0] sm:$0xff]  ;;  %v3825_v31 = vld [vmem:[%s13276_s11 + $0x4b8] sm:$0xff] }
 0x5b1   :  { %7039 = vmatpush3.bf16.msra.mxu0 %v13353_v5  ;;  %7063 = vmatpush3.bf16.msra.mxu1 %v13354_v8  ;;  %v3722_v5 = vld [vmem:[%s13276_s11 + $0x180] sm:$0xff]  ;;  %v3728_v8 = vld [vmem:[%s13276_s11 + $0x1b0] sm:$0xff] }
 0x5b2   :  { %7041 = vmatprep.subr.bf16.mxu0 %v13355_v15  ;;  %7064 = vmatprep.subr.bf16.mxu1 %v13328_v21  ;;  %v7124_v19 = vpack.c.bf16 %v3728_v8, %v3722_v5  ;;  %v3741_v15 = vld [vmem:[%s13276_s11 + $0x218] sm:$0xff]  ;;  %v3818_v5 = vld [vmem:[%s13276_s11 + $0x480] sm:$0xff]  ;;  %v3824_v8 = vld [vmem:[%s13276_s11 + $0x4b0] sm:$0xff] }
 0x5b5   :  { %7043 = vmatpush3.bf16.msra.mxu0 %v13356_v16  ;;  %7066 = vmatpush3.bf16.msra.mxu1 %v13357_v34  ;;  %v7126_v16 = vpack.c.bf16 %v3741_v15, %v3735_v42  ;;  %v3734_v34 = vld [vmem:[%s13276_s11 + $0x1e0] sm:$0xff]  ;;  %v3831_v42 = vld [vmem:[%s13276_s11 + $0x4e8] sm:$0xff]  ;;  %v3837_v15 = vld [vmem:[%s13276_s11 + $0x518] sm:$0xff] }
 0x5b6   :  { %7045 = vmatprep.subr.bf16.mxu0 %v13358_v30  ;;  %7067 = vmatprep.subr.bf16.mxu1 %v13328_v21  ;;  %v7128_v30 = vpack.c.bf16 %v3740_v63, %v3734_v34  ;;  %v3830_v34 = vld [vmem:[%s13276_s11 + $0x4e0] sm:$0xff]  ;;  %v3836_v63 = vld [vmem:[%s13276_s11 + $0x510] sm:$0xff] }
 0x5b9   :  { %7047 = vmatpush3.bf16.msra.mxu0 %v13359_v53  ;;  %7069 = vmatpush3.bf16.msra.mxu1 %v13360_v36  ;;  %v3753_v53 = vld [vmem:[%s13276_s11 + $0x278] sm:$0xff] }
 0x5ba   :  { %7049 = vmatprep.subr.bf16.mxu0 %v13361_v43  ;;  %7070 = vmatprep.subr.bf16.mxu1 %v13328_v21  ;;  %v7130_v36 = vpack.c.bf16 %v3753_v53, %v3747_v49  ;;  %v3746_v43 = vld [vmem:[%s13276_s11 + $0x240] sm:$0xff] }
 0x5bb   :  { %v7132_v62 = vpack.c.bf16 %v3752_v41, %v3746_v43 }
 0x5bd   :  { %7051 = vmatpush3.bf16.msra.mxu0 %v13362_v57  ;;  %7072 = vmatpush3.bf16.msra.mxu1 %v13363_v17  ;;  %v3759_v57 = vld [vmem:[%s13276_s11 + $0x2a8] sm:$0xff]  ;;  %v3765_v17 = vld [vmem:[%s13276_s11 + $0x2d8] sm:$0xff] }
 0x5be   :  { %7073 = vmatprep.subr.bf16.mxu1 %v13328_v21  ;;  %7077 = vmatprep.subr.bf16.mxu0 %v10623_v37 }
 0x5c0   :  { %2944 = vmatmul.mubr.f32.vlgmr.msra.gmra.mrb[16].mxu0 %v2724_v55  ;;  %v7134_v55 = vpack.c.bf16 %v3765_v17, %v3759_v57 }
 0x5c1   :  { %7075 = vmatpush3.bf16.msra.mxu1 %v13364_v2  ;;  %7079 = vmatpush1.bf16.msra.mxu0 %v10634_v59  ;;  %v3764_v2 = vld [vmem:[%s13276_s11 + $0x2d0] sm:$0xff] }
 0x5c2   :  { %7092 = vmatprep.subr.bf16.mxu1 %v10623_v37  ;;  %3091 = vmatprep.mubr.f32.mxu0 %v13327_v20  ;;  %v3675_v37 = vld [vmem:[%s13276_s11 + $0x8] sm:$0xff] }
 0x5c3   :  { %7081 = vmatprep.subr.bf16.mxu0 %v10650_v0 }
 0x5c4   :  { %6149 = vmatmul.mubr.f32.vlgmr.msra.gmra.mrb[26].mxu1 %v2738_v51  ;;  %v7136_v51 = vpack.c.bf16 %v3764_v2, %v3758_v13 }
 0x5c5   :  { %7094 = vmatpush1.bf16.msra.mxu1 %v10634_v59  ;;  %3378 = vmatprep.mubr.f32.mxu1 %v13327_v20  ;;  %v3681_v59 = vld [vmem:[%s13276_s11 + $0x38] sm:$0xff] }
 0x5c6   :  { %7100 = vmatprep.subr.bf16.mxu1 %v10668_v12  ;;  %v7106_v11 = vpack.c.bf16 %v3681_v59, %v3675_v37  ;;  %v3771_v37 = vld [vmem:[%s13276_s11 + $0x308] sm:$0xff]  ;;  %v3777_v59 = vld [vmem:[%s13276_s11 + $0x338] sm:$0xff] }
 0x5c8   :  { %5564 = vmatmul.mubr.msk.f32.vlgmr.msra.gmra.mrb[28].mxu1 %vm2361_vm3, %v10815_v61 }
 0x5c9   :  { %7102 = vmatpush1.bf16.msra.mxu1 %v10680_v60  ;;  %3520 = vmatprep.mubr.f32.mxu1 %v13327_v20 }
 0x5ca   :  { %7107 = vmatprep.subr.bf16.mxu1 %v7106_v11  ;;  %v7138_v11 = vpack.c.bf16 %v3777_v59, %v3771_v37 }
 0x5cc   :  { %5566 = vmatmul.mubr.msk.f32.vlgmr.msra.gmra.mrb[30].mxu1 %vm2361_vm3, %v10815_v61 }
 0x5cd   :  { %7109 = vmatpush1.bf16.msra.mxu1 %v7108_v58  ;;  %v7140_v58 = vpack.c.bf16 %v3776_v35, %v3770_v27  ;;  %v3020_v35 = vld [vmem:[%s13277_s7] sm:$0x1] }
 0x5ce   :  { %7111 = vmatprep.subr.bf16.mxu1 %v7110_v28  ;;  %v7142_v28 = vpack.c.bf16 %v3789_v10, %v3783_v9 }
 0x5d1   :  { %7113 = vmatpush1.bf16.msra.mxu1 %v7112_v39  ;;  %v7144_v39 = vpack.c.bf16 %v3788_v46, %v3782_v7  ;;  %v3689_v7 = vld [vmem:[%s13276_s11 + $0x78] sm:$0xff] }
 0x5d2   :  { %7115 = vmatprep.subr.bf16.mxu1 %v7114_v48  ;;  %v7146_v48 = vpack.c.bf16 %v3801_v1, %v3795_v47  ;;  %v3688_v47 = vld [vmem:[%s13276_s11 + $0x70] sm:$0xff]  ;;  %v3694_v1 = vld [vmem:[%s13276_s11 + $0xa0] sm:$0xff] }
 0x5d5   :  { %7117 = vmatpush1.bf16.msra.mxu1 %v7116_v44  ;;  %v7148_v44 = vpack.c.bf16 %v3800_v4, %v3794_v54  ;;  %v7336_v54 = vpack.c.bf16 %v3694_v1, %v3688_v47  ;;  %v3796_v47 = vld [vmem:[%s13276_s11 + $0x3d0] sm:$0xff]  ;;  %v3802_v1 = vld [vmem:[%s13276_s11 + $0x400] sm:$0xff] }
 0x5d6   :  { %7119 = vmatprep.subr.bf16.mxu1 %v7118_v52  ;;  %v7150_v52 = vpack.c.bf16 %v3813_v38, %v3807_v24  ;;  %v3706_v24 = vld [vmem:[%s13276_s11 + $0x100] sm:$0xff]  ;;  %v3713_v38 = vld [vmem:[%s13276_s11 + $0x138] sm:$0xff] }
 0x5d9   :  { %7121 = vmatpush1.bf16.msra.mxu1 %v7120_v45  ;;  %v7152_v45 = vpack.c.bf16 %v3812_v50, %v3806_v3  ;;  %v3712_v50 = vld [vmem:[%s13276_s11 + $0x130] sm:$0xff] }
 0x5da   :  { %7123 = vmatprep.subr.bf16.mxu1 %v7122_v33  ;;  %v7154_v33 = vpack.c.bf16 %v3825_v31, %v3819_v22  ;;  %v3725_v22 = vld [vmem:[%s13276_s11 + $0x198] sm:$0xff]  ;;  %v3731_v31 = vld [vmem:[%s13276_s11 + $0x1c8] sm:$0xff] }
 0x5dd   :  { %7125 = vmatpush1.bf16.msra.mxu1 %v7124_v19  ;;  %v7156_v19 = vpack.c.bf16 %v3824_v8, %v3818_v5  ;;  %v7346_v5 = vpack.c.bf16 %v3731_v31, %v3725_v22  ;;  %v3724_v8 = vld [vmem:[%s13276_s11 + $0x190] sm:$0xff]  ;;  %v3833_v22 = vld [vmem:[%s13276_s11 + $0x4f8] sm:$0xff]  ;;  %v3839_v31 = vld [vmem:[%s13276_s11 + $0x528] sm:$0xff] }
 0x5de   :  { %7127 = vmatprep.subr.bf16.mxu1 %v7126_v16  ;;  %v7158_v16 = vpack.c.bf16 %v3837_v15, %v3831_v42  ;;  %v3737_v42 = vld [vmem:[%s13276_s11 + $0x1f8] sm:$0xff]  ;;  %v3743_v15 = vld [vmem:[%s13276_s11 + $0x228] sm:$0xff] }
 0x5e1   :  { %7129 = vmatpush1.bf16.msra.mxu1 %v7128_v30 }
 0x5e2   :  { %7131 = vmatprep.subr.bf16.mxu1 %v7130_v36  ;;  %v7160_v36 = vpack.c.bf16 %v3836_v63, %v3830_v34  ;;  %v7350_v34 = vpack.c.bf16 %v3743_v15, %v3737_v42  ;;  %v3736_v63 = vld [vmem:[%s13276_s11 + $0x1f0] sm:$0xff]  ;;  %v3843_v15 = vld [vmem:[%s13276_s11 + $0x548] sm:$0xff] }
 0x5e5   :  { %7133 = vmatpush1.bf16.msra.mxu1 %v7132_v62 }
 0x5e6   :  { %7135 = vmatprep.subr.bf16.mxu1 %v7134_v55 }
 0x5e9   :  { %7137 = vmatpush1.bf16.msra.mxu1 %v7136_v51 }
 0x5ea   :  { %7139 = vmatprep.subr.bf16.mxu1 %v7138_v11 }
 0x5ed   :  { %7141 = vmatpush1.bf16.msra.mxu1 %v7140_v58 }
 0x5ee   :  { %7143 = vmatprep.subr.bf16.mxu1 %v7142_v28  ;;  %v3682_v28 = vld [vmem:[%s13276_s11 + $0x40] sm:$0xff] }
 0x5f1   :  { %7145 = vmatpush1.bf16.msra.mxu1 %v7144_v39 }
 0x5f2   :  { %7147 = vmatprep.subr.bf16.mxu1 %v7146_v48  ;;  %v3701_v48 = vld [vmem:[%s13276_s11 + $0xd8] sm:$0xff] }
 0x5f5   :  { %7149 = vmatpush1.bf16.msra.mxu1 %v7148_v44  ;;  %v3700_v44 = vld [vmem:[%s13276_s11 + $0xd0] sm:$0xff] }
 0x5f6   :  { %7151 = vmatprep.subr.bf16.mxu1 %v7150_v52  ;;  %v7340_v52 = vpack.c.bf16 %v3706_v24, %v3700_v44  ;;  %v3808_v44 = vld [vmem:[%s13276_s11 + $0x430] sm:$0xff]  ;;  %v3814_v24 = vld [vmem:[%s13276_s11 + $0x460] sm:$0xff] }
 0x5f9   :  { %7153 = vmatpush1.bf16.msra.mxu1 %v7152_v45  ;;  %v3718_v45 = vld [vmem:[%s13276_s11 + $0x160] sm:$0xff] }
 0x5fa   :  { %7155 = vmatprep.subr.bf16.mxu1 %v7154_v33  ;;  %v7344_v33 = vpack.c.bf16 %v3718_v45, %v3712_v50  ;;  %v3820_v50 = vld [vmem:[%s13276_s11 + $0x490] sm:$0xff]  ;;  %v3826_v45 = vld [vmem:[%s13276_s11 + $0x4c0] sm:$0xff] }
 0x5fd   :  { %7157 = vmatpush1.bf16.msra.mxu1 %v7156_v19  ;;  %v3730_v19 = vld [vmem:[%s13276_s11 + $0x1c0] sm:$0xff] }
 0x5fe   :  { %7159 = vmatprep.subr.bf16.mxu1 %v7158_v16  ;;  %v7348_v16 = vpack.c.bf16 %v3730_v19, %v3724_v8  ;;  %v3832_v8 = vld [vmem:[%s13276_s11 + $0x4f0] sm:$0xff]  ;;  %v3838_v19 = vld [vmem:[%s13276_s11 + $0x520] sm:$0xff] }
 0x5ff   :  { %v7384_v42 = vpack.c.bf16 %v3838_v19, %v3832_v8  ;;  %v3887_v8 = vld [vmem:[%s13276_s11 + $0x6a8] sm:$0xff] }
 0x601   :  { %7161 = vmatpush1.bf16.msra.mxu1 %v7160_v36 }
 0x673   :  { %v5833_v30 = vpop.f32.mrb[14].mxu0 }
 0x674   :  { %v5834_v49 = vpop.f32.mrb[15].mxu0 }
 0x675   :  { %v5835_v53 = vadd.f32 %v5834_v49, %v5833_v30  ;;  %v3742_v30 = vld [vmem:[%s13276_s11 + $0x220] sm:$0xff]  ;;  %v3749_v49 = vld [vmem:[%s13276_s11 + $0x258] sm:$0xff] }
 0x676   :  { %v7352_v36 = vpack.c.bf16 %v3742_v30, %v3736_v63  ;;  %v3851_v30 = vld [vmem:[%s13276_s11 + $0x588] sm:$0xff] }
 0x677   :  { %v5868_v43 = vpop.f32.mrb[24].mxu1 }
 0x678   :  { %v5869_v41 = vpop.f32.mrb[25].mxu1 }
 0x679   :  { %v5870_v62 = vadd.f32 %v5869_v41, %v5868_v43  ;;  %v3748_v41 = vld [vmem:[%s13276_s11 + $0x250] sm:$0xff] }
 0x67b   :  { %v2876_v57 = vadd.f32 %v5870_v62, %v5835_v53  ;;  %v3755_v53 = vld [vmem:[%s13276_s11 + $0x288] sm:$0xff]  ;;  %v3754_v62 = vld [vmem:[%s13276_s11 + $0x280] sm:$0xff] }
 0x67c   :  { %v7354_v43 = vpack.c.bf16 %v3755_v53, %v3749_v49  ;;  %v3842_v49 = vld [vmem:[%s13276_s11 + $0x540] sm:$0xff]  ;;  %v3848_v53 = vld [vmem:[%s13276_s11 + $0x570] sm:$0xff] }
 0x693   :  { %v5903_v17 = vpop.f32.mrb[16].mxu0 }
 0x694   :  { %v5904_v55 = vpop.f32.mrb[17].mxu0 }
 0x695   :  { %v5905_v13 = vadd.f32 %v5904_v55, %v5903_v17  ;;  %v3767_v17 = vld [vmem:[%s13276_s11 + $0x2e8] sm:$0xff]  ;;  %v7356_v55 = vpack.c.bf16 %v3754_v62, %v3748_v41  ;;  %v7164_v41 = vpack.c.bf16 %v3848_v53, %v3842_v49  ;;  %v3844_v62 = vld [vmem:[%s13276_s11 + $0x550] sm:$0xff] }
 0x696   :  { %v3880_v49 = vld [vmem:[%s13276_s11 + $0x670] sm:$0xff] }
 0x697   :  { %v2946_v2 = vadd.f32 %v5905_v13, %v2876_v57  ;;  %v3015_v51 = vpop.f32.mrb[26].mxu1  ;;  %v3761_v57 = vld [vmem:[%s13276_s11 + $0x2b8] sm:$0xff] }
 0x698   :  { %v6150_v37 = vpop.f32.mrb[27].mxu1  ;;  %v7358_v13 = vpack.c.bf16 %v3767_v17, %v3761_v57  ;;  %v3850_v57 = vld [vmem:[%s13276_s11 + $0x580] sm:$0xff] }
 0x699   :  { %v3016_v59 = vadd.f32 %v3015_v51, %v2946_v2  ;;  %v3760_v2 = vld [vmem:[%s13276_s11 + $0x2b0] sm:$0xff]  ;;  %v3766_v51 = vld [vmem:[%s13276_s11 + $0x2e0] sm:$0xff]  ;;  %v3773_v37 = vld [vmem:[%s13276_s11 + $0x318] sm:$0xff] }
 0x69b   :  { %v3019_v11 = vmul.f32 0.008928572, %v3016_v59  ;;  %v3779_v59 = vld [vmem:[%s13276_s11 + $0x348] sm:$0xff] }
 0x69d   :  { %v3021_v27 = vadd.f32 1e-05, %v3019_v11  ;;  %v7360_v11 = vpack.c.bf16 %v3766_v51, %v3760_v2  ;;  %v3861_v2 = vld [vmem:[%s13276_s11 + $0x5d8] sm:$0xff] }
 0x69e   :  { %v3857_v51 = vld [vmem:[%s13276_s11 + $0x5b8] sm:$0xff] }
 0x69f   :  { %7929 = vrsqrt.f32 %v3021_v27  ;;  %v7362_v27 = vpack.c.bf16 %v3779_v59, %v3773_v37  ;;  %v3863_v59 = vld [vmem:[%s13276_s11 + $0x5e8] sm:$0xff] }
 0x6a9   :  { %v7930_v58 = vpop.eup %7929 }
 0x6aa   :  { %v3023_v9 = vmul.f32 %v7930_v58, %v3020_v35  ;;  %v3772_v35 = vld [vmem:[%s13276_s11 + $0x310] sm:$0xff]  ;;  %v3778_v58 = vld [vmem:[%s13276_s11 + $0x340] sm:$0xff] }
 0x6ac   :  { %5560 = vmatmul.mubr.msk.f32.vlgmr.msra.gmra.mrb[18].mxu0 %vm2361_vm3, %v3023_v9 }
 0x6ad   :  { %7083 = vmatpush1.bf16.msra.mxu0 %v10666_v14  ;;  %3162 = vmatprep.mubr.f32.mxu0 %v13327_v20 }
 0x6ae   :  { %7085 = vmatprep.subr.bf16.mxu0 %v10668_v12  ;;  %v3677_v12 = vld [vmem:[%s13276_s11 + $0x18] sm:$0xff] }
 0x6b0   :  { %5561 = vmatmul.mubr.msk.f32.vlgmr.msra.gmra.mrb[20].mxu0 %vm2361_vm3, %v3023_v9 }
 0x6b1   :  { %7087 = vmatpush1.bf16.msra.mxu0 %v10680_v60  ;;  %3233 = vmatprep.mubr.f32.mxu0 %v13327_v20  ;;  %v3683_v60 = vld [vmem:[%s13276_s11 + $0x48] sm:$0xff] }
 0x6b2   :  { %7088 = vmatprep.subr.bf16.mxu0 %v13328_v21  ;;  %v7330_v10 = vpack.c.bf16 %v3683_v60, %v3677_v12  ;;  %v3791_v12 = vld [vmem:[%s13276_s11 + $0x3a8] sm:$0xff]  ;;  %v7364_v60 = vpack.c.bf16 %v3778_v58, %v3772_v35  ;;  %v7390_v35 = vpack.c.bf16 %v3863_v59, %v3857_v51  ;;  %v3893_v51 = vld [vmem:[%s13276_s11 + $0x6d8] sm:$0xff] }
 0x6b4   :  { %5562 = vmatmul.mubr.msk.f32.vlgmr.msra.gmra.mrb[22].mxu0 %vm2361_vm3, %v3023_v9 }
 0x6b5   :  { %7090 = vmatpush3.bf16.msra.mxu0 %v10640_v26  ;;  %6155 = vmatprep.mubr.msk.f32.mxu0 %vm7932_vm1, %v13327_v20 }
 0x6b6   :  { %7096 = vmatprep.subr.bf16.mxu0 %v10650_v0  ;;  %v3676_v0 = vld [vmem:[%s13276_s11 + $0x10] sm:$0xff] }
 0x6b7   :  { %v7332_v46 = vpack.c.bf16 %v3682_v28, %v3676_v0  ;;  %v3784_v0 = vld [vmem:[%s13276_s11 + $0x370] sm:$0xff]  ;;  %v3790_v28 = vld [vmem:[%s13276_s11 + $0x3a0] sm:$0xff] }
 0x6b8   :  { %6156 = vmatmul.mubr.msk.f32.vlgmr.msra.gmra.mrb[24].mxu0 %vm2361_vm3, %v3023_v9  ;;  %v3785_v9 = vld [vmem:[%s13276_s11 + $0x378] sm:$0xff] }
 0x6b9   :  { %7098 = vmatpush1.bf16.msra.mxu0 %v10666_v14  ;;  %3449 = vmatprep.mubr.f32.mxu0 %v13327_v20  ;;  %v3695_v14 = vld [vmem:[%s13276_s11 + $0xa8] sm:$0xff] }
 0x6ba   :  { %7103 = vmatprep.subr.bf16.mxu0 %v13328_v21  ;;  %v7334_v39 = vpack.c.bf16 %v3695_v14, %v3689_v7  ;;  %v3797_v7 = vld [vmem:[%s13276_s11 + $0x3d8] sm:$0xff]  ;;  %v3803_v14 = vld [vmem:[%s13276_s11 + $0x408] sm:$0xff] }
 0x6bc   :  { %5565 = vmatmul.mubr.msk.f32.vlgmr.msra.gmra.mrb[26].mxu0 %vm2361_vm3, %v10815_v61 }
 0x6bd   :  { %7105 = vmatpush3.bf16.msra.mxu0 %v10640_v26  ;;  %6162 = vmatprep.mubr.msk.f32.mxu0 %vm7932_vm1, %v13327_v20  ;;  %v3707_v26 = vld [vmem:[%s13276_s11 + $0x108] sm:$0xff] }
 0x6be   :  { %7331 = vmatprep.subr.bf16.mxu0 %v7330_v10  ;;  %v7338_v4 = vpack.c.bf16 %v3707_v26, %v3701_v48  ;;  %v7366_v10 = vpack.c.bf16 %v3791_v12, %v3785_v9  ;;  %v3809_v48 = vld [vmem:[%s13276_s11 + $0x438] sm:$0xff]  ;;  %v3815_v26 = vld [vmem:[%s13276_s11 + $0x468] sm:$0xff]  ;;  %v3856_v9 = vld [vmem:[%s13276_s11 + $0x5b0] sm:$0xff] }
 0x6bf   :  { %v3862_v12 = vld [vmem:[%s13276_s11 + $0x5e0] sm:$0xff] }
 0x6c0   :  { %6163 = vmatmul.mubr.msk.f32.vlgmr.msra.gmra.mrb[28].mxu0 %vm2361_vm3, %v10815_v61  ;;  %v3719_v61 = vld [vmem:[%s13276_s11 + $0x168] sm:$0xff] }
 0x6c1   :  { %7333 = vmatpush1.bf16.msra.mxu0 %v7332_v46  ;;  %v7342_v3 = vpack.c.bf16 %v3719_v61, %v3713_v38  ;;  %v7368_v46 = vpack.c.bf16 %v3790_v28, %v3784_v0  ;;  %v3821_v38 = vld [vmem:[%s13276_s11 + $0x498] sm:$0xff]  ;;  %v3827_v61 = vld [vmem:[%s13276_s11 + $0x4c8] sm:$0xff] }
 0x6c2   :  { %7335 = vmatprep.subr.bf16.mxu0 %v7334_v39  ;;  %v7370_v39 = vpack.c.bf16 %v3803_v14, %v3797_v7  ;;  %v3873_v0 = vld [vmem:[%s13276_s11 + $0x638] sm:$0xff]  ;;  %v3875_v14 = vld [vmem:[%s13276_s11 + $0x648] sm:$0xff] }
 0x6c3   :  { %v3869_v28 = vld [vmem:[%s13276_s11 + $0x618] sm:$0xff] }
 0x6c5   :  { %7337 = vmatpush1.bf16.msra.mxu0 %v7336_v54  ;;  %v7372_v54 = vpack.c.bf16 %v3802_v1, %v3796_v47 }
 0x6c6   :  { %7339 = vmatprep.subr.bf16.mxu0 %v7338_v4  ;;  %v7374_v4 = vpack.c.bf16 %v3815_v26, %v3809_v48 }
 0x6c9   :  { %7341 = vmatpush1.bf16.msra.mxu0 %v7340_v52  ;;  %v7376_v52 = vpack.c.bf16 %v3814_v24, %v3808_v44 }
 0x6ca   :  { %7343 = vmatprep.subr.bf16.mxu0 %v7342_v3  ;;  %v7378_v3 = vpack.c.bf16 %v3827_v61, %v3821_v38 }
 0x6cd   :  { %7345 = vmatpush1.bf16.msra.mxu0 %v7344_v33  ;;  %v7380_v33 = vpack.c.bf16 %v3826_v45, %v3820_v50 }
 0x6ce   :  { %7347 = vmatprep.subr.bf16.mxu0 %v7346_v5  ;;  %v7382_v5 = vpack.c.bf16 %v3839_v31, %v3833_v22  ;;  %v3868_v22 = vld [vmem:[%s13276_s11 + $0x610] sm:$0xff] }
 0x6d1   :  { %7349 = vmatpush1.bf16.msra.mxu0 %v7348_v16  ;;  %v3849_v16 = vld [vmem:[%s13276_s11 + $0x578] sm:$0xff] }
 0x6d2   :  { %7351 = vmatprep.subr.bf16.mxu0 %v7350_v34  ;;  %v3845_v34 = vld [vmem:[%s13276_s11 + $0x558] sm:$0xff]  ;;  %v7162_v63 = vpack.c.bf16 %v3849_v16, %v3843_v15 }
 0x6d4   :  { %7163 = vmatprep.subr.bf16.mxu1 %v7162_v63  ;;  %v3878_v63 = vld [vmem:[%s13276_s11 + $0x660] sm:$0xff] }
 0x6d5   :  { %7353 = vmatpush1.bf16.msra.mxu0 %v7352_v36  ;;  %v3380_v36 = vpop.f32.mrb[28].mxu1  ;;  %7165 = vmatpush1.bf16.msra.mxu1 %v7164_v41 }
 0x6d6   :  { %7355 = vmatprep.subr.bf16.mxu0 %v7354_v43  ;;  %v7386_v43 = vpack.c.bf16 %v3851_v30, %v3845_v34  ;;  %v3382_v17 = vpop.f32.mrb[29].mxu1  ;;  %v3884_v30 = vld [vmem:[%s13276_s11 + $0x690] sm:$0xff] }
 0x6d7   :  { %v3639_v44 = vrot.slane %v3382_v17, %v8682_v18  ;;  %v3891_v17 = vld [vmem:[%s13276_s11 + $0x6c8] sm:$0xff] }
 0x6d9   :  { %7357 = vmatpush1.bf16.msra.mxu0 %v7356_v55  ;;  %v7388_v55 = vpack.c.bf16 %v3850_v57, %v3844_v62  ;;  %v3886_v57 = vld [vmem:[%s13276_s11 + $0x6a0] sm:$0xff] }
 0x6da   :  { %7359 = vmatprep.subr.bf16.mxu0 %v7358_v13  ;;  %v3855_v13 = vld [vmem:[%s13276_s11 + $0x5a8] sm:$0xff] }
 0x6db   :  { %v7166_v37 = vpack.c.bf16 %v3861_v2, %v3855_v13 }
 0x6dd   :  { %7361 = vmatpush1.bf16.msra.mxu0 %v7360_v11  ;;  %v3854_v11 = vld [vmem:[%s13276_s11 + $0x5a0] sm:$0xff]  ;;  %7167 = vmatprep.subr.bf16.mxu1 %v7166_v37  ;;  %v3899_v37 = vld [vmem:[%s13276_s11 + $0x708] sm:$0xff] }
 0x6de   :  { %7363 = vmatprep.subr.bf16.mxu0 %v7362_v27  ;;  %v3860_v27 = vld [vmem:[%s13276_s11 + $0x5d0] sm:$0xff] }
 0x6df   :  { %v7168_v58 = vpack.c.bf16 %v3860_v27, %v3854_v11  ;;  %v7176_v11 = vpack.c.bf16 %v3884_v30, %v3878_v63  ;;  %v3890_v27 = vld [vmem:[%s13276_s11 + $0x6c0] sm:$0xff]  ;;  %v3920_v30 = vld [vmem:[%s13276_s11 + $0x7b0] sm:$0xff] }
 0x6e0   :  { %v3914_v63 = vld [vmem:[%s13276_s11 + $0x780] sm:$0xff] }
 0x6e1   :  { %7365 = vmatpush1.bf16.msra.mxu0 %v7364_v60  ;;  %v7392_v60 = vpack.c.bf16 %v3862_v12, %v3856_v9  ;;  %7169 = vmatpush1.bf16.msra.mxu1 %v7168_v58  ;;  %v7400_v12 = vpack.c.bf16 %v3886_v57, %v3880_v49 }
 0x6e2   :  { %7367 = vmatprep.subr.bf16.mxu0 %v7366_v10  ;;  %v3867_v10 = vld [vmem:[%s13276_s11 + $0x608] sm:$0xff] }
 0x6e3   :  { %v7170_v7 = vpack.c.bf16 %v3873_v0, %v3867_v10  ;;  %v3898_v10 = vld [vmem:[%s13276_s11 + $0x700] sm:$0xff]  ;;  %v3903_v0 = vld [vmem:[%s13276_s11 + $0x728] sm:$0xff] }
 0x6e5   :  { %7369 = vmatpush1.bf16.msra.mxu0 %v7368_v46  ;;  %v7394_v46 = vpack.c.bf16 %v3875_v14, %v3869_v28  ;;  %7171 = vmatprep.subr.bf16.mxu1 %v7170_v7  ;;  %v7402_v14 = vpack.c.bf16 %v3899_v37, %v3893_v51  ;;  %v3935_v51 = vld [vmem:[%s13276_s11 + $0x828] sm:$0xff] }
 0x6e6   :  { %7371 = vmatprep.subr.bf16.mxu0 %v7370_v39  ;;  %v11246_v39 = vpop.f32.mrb[30].mxu1 }
 0x6e7   :  { %v11248_v47 = vpop.f32.mrb[31].mxu1  ;;  %v3651_v15 = vrot.slane %v11246_v39, %v8682_v18  ;;  %v3905_v39 = vld [vmem:[%s13276_s11 + $0x738] sm:$0xff] }
 0x6e8   :  { %v3655_v2 = vrot.slane %v11248_v47, %v8682_v18  ;;  %v3911_v47 = vld [vmem:[%s13276_s11 + $0x768] sm:$0xff] }
 0x6e9   :  { %7373 = vmatpush1.bf16.msra.mxu0 %v7372_v54  ;;  %v3635_v54 = vrot.slane %v3380_v36, %v8682_v18 }
 0x6ea   :  { %7375 = vmatprep.subr.bf16.mxu0 %v7374_v4 }
 0x6ed   :  { %7377 = vmatpush1.bf16.msra.mxu0 %v7376_v52  ;;  %v3866_v52 = vld [vmem:[%s13276_s11 + $0x600] sm:$0xff] }
 0x6ee   :  { %7379 = vmatprep.subr.bf16.mxu0 %v7378_v3  ;;  %v3872_v3 = vld [vmem:[%s13276_s11 + $0x630] sm:$0xff] }
 0x6ef   :  { %v7172_v16 = vpack.c.bf16 %v3872_v3, %v3866_v52 }
 0x6f1   :  { %7381 = vmatpush1.bf16.msra.mxu0 %v7380_v33  ;;  %v3885_v33 = vld [vmem:[%s13276_s11 + $0x698] sm:$0xff] }
 0x6f2   :  { %7383 = vmatprep.subr.bf16.mxu0 %v7382_v5  ;;  %v3881_v5 = vld [vmem:[%s13276_s11 + $0x678] sm:$0xff] }
 0x6f3   :  { %v7398_v62 = vpack.c.bf16 %v3887_v8, %v3881_v5  ;;  %v3921_v5 = vld [vmem:[%s13276_s11 + $0x7b8] sm:$0xff] }
 0x6f4   :  { %v3917_v8 = vld [vmem:[%s13276_s11 + $0x798] sm:$0xff] }
 0x6f5   :  { %7385 = vmatpush1.bf16.msra.mxu0 %v7384_v42 }
 0x6f6   :  { %7387 = vmatprep.subr.bf16.mxu0 %v7386_v43 }
 0x6f9   :  { %7389 = vmatpush1.bf16.msra.mxu0 %v7388_v55  ;;  %v3897_v55 = vld [vmem:[%s13276_s11 + $0x6f8] sm:$0xff] }
 0x6fa   :  { %7391 = vmatprep.subr.bf16.mxu0 %v7390_v35  ;;  %v3896_v35 = vld [vmem:[%s13276_s11 + $0x6f0] sm:$0xff] }
 0x6fd   :  { %7393 = vmatpush1.bf16.msra.mxu0 %v7392_v60  ;;  %v3892_v60 = vld [vmem:[%s13276_s11 + $0x6d0] sm:$0xff] }
 0x6fe   :  { %7395 = vmatprep.subr.bf16.mxu0 %v7394_v46  ;;  %v3909_v46 = vld [vmem:[%s13276_s11 + $0x758] sm:$0xff] }
 0x77f   :  { %v3093_v1 = vpop.f32.mrb[18].mxu0 }
 0x780   :  { %v3600_v48 = vrot.slane %v3093_v1, %v8682_v18  ;;  %v3095_v26 = vpop.f32.mrb[19].mxu0 }
 0x781   :  { %v3604_v4 = vrot.slane %v3095_v26, %v8682_v18  ;;  %v7180_v26 = vpack.c.bf16 %v3896_v35, %v3890_v27  ;;  %v3926_v27 = vld [vmem:[%s13276_s11 + $0x7e0] sm:$0xff]  ;;  %v3932_v35 = vld [vmem:[%s13276_s11 + $0x810] sm:$0xff] }
 0x782   :  { %v3625_v24 = vmul.f32 %v3600_v48, %v10725_v40  ;;  %v3874_v40 = vld [vmem:[%s13276_s11 + $0x640] sm:$0xff] }
 0x783   :  { %v3626_v38 = vmul.f32 %v3604_v4, %v10728_v56  ;;  %v11256_v61 = vpop.f32.mrb[20].mxu0  ;;  %v3879_v56 = vld [vmem:[%s13276_s11 + $0x668] sm:$0xff]  ;;  %v7396_v34 = vpack.c.bf16 %v3874_v40, %v3868_v22  ;;  %v7404_v4 = vpack.c.bf16 %v3898_v10, %v3892_v60  ;;  %v3904_v22 = vld [vmem:[%s13276_s11 + $0x730] sm:$0xff]  ;;  %v3910_v40 = vld [vmem:[%s13276_s11 + $0x760] sm:$0xff] }
 0x784   :  { %v3660_v50 = vadd.f32 %v3635_v54, %v3625_v24  ;;  %v11264_v45 = vpop.f32.mrb[21].mxu0  ;;  %v7174_v41 = vpack.c.bf16 %v3885_v33, %v3879_v56  ;;  %v7406_v24 = vpack.c.bf16 %v3911_v47, %v3905_v39  ;;  %v3939_v60 = vld [vmem:[%s13276_s11 + $0x848] sm:$0xff]  ;;  %v3945_v10 = vld [vmem:[%s13276_s11 + $0x878] sm:$0xff]  ;;  %v3944_v39 = vld [vmem:[%s13276_s11 + $0x870] sm:$0xff] }
 0x785   :  { %v3661_v31 = vadd.f32 %v3639_v44, %v3626_v38  ;;  %v3612_v1 = vrot.slane %v11264_v45, %v8682_v18  ;;  %v7182_v44 = vpack.c.bf16 %v3909_v46, %v3903_v0  ;;  %v3902_v38 = vld [vmem:[%s13276_s11 + $0x720] sm:$0xff]  ;;  %v3908_v45 = vld [vmem:[%s13276_s11 + $0x750] sm:$0xff]  ;;  %v3941_v0 = vld [vmem:[%s13276_s11 + $0x858] sm:$0xff]  ;;  %v7194_v47 = vpack.c.bf16 %v3945_v10, %v3939_v60 }
 0x786   :  { %v11297_v53 = vmax.f32 %v3660_v50, 0.0  ;;  %v3938_v46 = vld [vmem:[%s13276_s11 + $0x840] sm:$0xff]  ;;  %v3992_v10 = vld [vmem:[%s13276_s11 + $0x9f0] sm:$0xff] }
 0x787   :  { %v11284_v19 = vmax.f32 %v3661_v31, 0.0  ;;  %v3235_v42 = vpop.f32.mrb[22].mxu0  ;;  %v3915_v31 = vld [vmem:[%s13276_s11 + $0x788] sm:$0xff]  ;;  %v3986_v60 = vld [vmem:[%s13276_s11 + $0x9c0] sm:$0xff] }
 0x788   :  { %v3616_v36 = vrot.slane %v3235_v42, %v8682_v18  ;;  %v3237_v43 = vpop.f32.mrb[23].mxu0 }
 0x789   :  { %v3620_v13 = vrot.slane %v3237_v43, %v8682_v18  ;;  %4442 = vmatprep.mubr.f32.mxu1 %v11284_v19  ;;  %4726 = vmatprep.mubr.f32.mxu0 %v11284_v19  ;;  %v3916_v43 = vld [vmem:[%s13276_s11 + $0x790] sm:$0xff] }
 0x78a   :  { %v3629_v59 = vmul.f32 %v3616_v36, %v10761_v23  ;;  %4443 = vmatmul.mubr.f32.vlgmr.msra.gmra.mrb[32].mxu1 %v11297_v53  ;;  %4727 = vmatmul.mubr.f32.vlgmr.msra.gmra.mrb[30].mxu0 %v11297_v53  ;;  %v7178_v23 = vpack.c.bf16 %v3897_v55, %v3891_v17 }
 0x78b   :  { %v3630_v58 = vmul.f32 %v3620_v13, %v10752_v25  ;;  %7173 = vmatpush1.bf16.msra.mxu1 %v7172_v16  ;;  %7397 = vmatpush1.bf16.msra.mxu0 %v7396_v34  ;;  %v3306_v9 = vpop.f32.mrb[24].mxu0  ;;  %v3608_v25 = vrot.slane %v11256_v61, %v8682_v18  ;;  %v7184_v16 = vpack.c.bf16 %v3908_v45, %v3902_v38  ;;  %v3933_v13 = vld [vmem:[%s13276_s11 + $0x818] sm:$0xff]  ;;  %v3959_v38 = vld [vmem:[%s13276_s11 + $0x8e8] sm:$0xff] }
 0x78c   :  { %v11341_v28 = vadd.f32 %v3651_v15, %v3629_v59  ;;  %v6157_v7 = vpop.f32.mrb[25].mxu0  ;;  %7175 = vmatprep.subr.bf16.mxu1 %v7174_v41  ;;  %7399 = vmatprep.subr.bf16.mxu0 %v7398_v62  ;;  %v3624_v52 = vrot.slane %v3306_v9, %v8682_v18  ;;  %v7408_v34 = vpack.c.bf16 %v3910_v40, %v3904_v22  ;;  %v3922_v41 = vld [vmem:[%s13276_s11 + $0x7c0] sm:$0xff]  ;;  %v3927_v62 = vld [vmem:[%s13276_s11 + $0x7e8] sm:$0xff]  ;;  %v3952_v40 = vld [vmem:[%s13276_s11 + $0x8b0] sm:$0xff] }
 0x78d   :  { %v11354_v48 = vadd.f32 %v3655_v2, %v3630_v58  ;;  %v3627_v61 = vmul.f32 %v3608_v25, %v10738_v6  ;;  %v3628_v6 = vmul.f32 %v3612_v1, %v10742_v32  ;;  %v3923_v32 = vld [vmem:[%s13276_s11 + $0x7c8] sm:$0xff]  ;;  %v3929_v2 = vld [vmem:[%s13276_s11 + $0x7f8] sm:$0xff]  ;;  %v7188_v59 = vpack.c.bf16 %v3920_v30, %v3914_v63  ;;  %v3964_v30 = vld [vmem:[%s13276_s11 + $0x910] sm:$0xff] }
 0x78e   :  { %v3631_v49 = vmul.f32 %v3624_v52, %v10766_v29  ;;  %v7186_v29 = vpack.c.bf16 %v3921_v5, %v3915_v31  ;;  %v7410_v55 = vpack.c.bf16 %v3923_v32, %v3917_v8  ;;  %v7190_v58 = vpack.c.bf16 %v3933_v13, %v3927_v62  ;;  %v3947_v25 = vld [vmem:[%s13276_s11 + $0x888] sm:$0xff]  ;;  %v3969_v31 = vld [vmem:[%s13276_s11 + $0x938] sm:$0xff]  ;;  %v3980_v13 = vld [vmem:[%s13276_s11 + $0x990] sm:$0xff] }
 0x78f   :  { %7177 = vmatpush1.bf16.msra.mxu1 %v7176_v11  ;;  %7401 = vmatpush1.bf16.msra.mxu0 %v7400_v12  ;;  %v3451_v54 = vpop.f32.mrb[26].mxu0  ;;  %v7412_v11 = vpack.c.bf16 %v3922_v41, %v3916_v43  ;;  %v7414_v9 = vpack.c.bf16 %v3935_v51, %v3929_v2  ;;  %v3928_v12 = vld [vmem:[%s13276_s11 + $0x7f0] sm:$0xff]  ;;  %v7192_v7 = vpack.c.bf16 %v3932_v35, %v3926_v27  ;;  %v3965_v5 = vld [vmem:[%s13276_s11 + $0x918] sm:$0xff]  ;;  %v3971_v8 = vld [vmem:[%s13276_s11 + $0x948] sm:$0xff] }
 0x790   :  { %v3643_v3 = vrot.slane %v3451_v54, %v8682_v18  ;;  %v3453_v50 = vpop.f32.mrb[27].mxu0  ;;  %7179 = vmatprep.subr.bf16.mxu1 %v7178_v23  ;;  %7403 = vmatprep.subr.bf16.mxu0 %v7402_v14  ;;  %v3934_v23 = vld [vmem:[%s13276_s11 + $0x820] sm:$0xff]  ;;  %v7418_v1 = vpack.c.bf16 %v3947_v25, %v3941_v0  ;;  %v7426_v63 = vpack.c.bf16 %v3971_v8, %v3965_v5  ;;  %v3981_v43 = vld [vmem:[%s13276_s11 + $0x998] sm:$0xff]  ;;  %v3983_v62 = vld [vmem:[%s13276_s11 + $0x9a8] sm:$0xff] }
 0x791   :  { %v3647_v56 = vrot.slane %v3453_v50, %v8682_v18  ;;  %v7416_v14 = vpack.c.bf16 %v3934_v23, %v3928_v12  ;;  %v3946_v54 = vld [vmem:[%s13276_s11 + $0x880] sm:$0xff]  ;;  %v3956_v50 = vld [vmem:[%s13276_s11 + $0x8d0] sm:$0xff]  ;;  %v3977_v41 = vld [vmem:[%s13276_s11 + $0x978] sm:$0xff] }
 0x792   :  { %v11376_v33 = vadd.f32 %v3643_v3, %v3627_v61  ;;  %v7196_v61 = vpack.c.bf16 %v3944_v39, %v3938_v46  ;;  %v3950_v3 = vld [vmem:[%s13276_s11 + $0x8a0] sm:$0xff]  ;;  %v7430_v51 = vpack.c.bf16 %v3983_v62, %v3977_v41  ;;  %v3987_v27 = vld [vmem:[%s13276_s11 + $0x9c8] sm:$0xff]  ;;  %v3993_v35 = vld [vmem:[%s13276_s11 + $0x9f8] sm:$0xff] }
 0x793   :  { %v3663_v42 = vadd.f32 %v3647_v56, %v3628_v6  ;;  %7181 = vmatpush1.bf16.msra.mxu1 %v7180_v26  ;;  %7405 = vmatpush1.bf16.msra.mxu0 %v7404_v4  ;;  %v3593_v15 = vpop.f32.mrb[28].mxu0  ;;  %v3940_v26 = vld [vmem:[%s13276_s11 + $0x850] sm:$0xff]  ;;  %v3951_v4 = vld [vmem:[%s13276_s11 + $0x8a8] sm:$0xff]  ;;  %v3958_v6 = vld [vmem:[%s13276_s11 + $0x8e0] sm:$0xff]  ;;  %v7200_v32 = vpack.c.bf16 %v3956_v50, %v3950_v3  ;;  %v7210_v0 = vpack.c.bf16 %v3993_v35, %v3987_v27 }
 0x794   :  { %v3659_v36 = vrot.slane %v3593_v15, %v8682_v18  ;;  %7183 = vmatprep.subr.bf16.mxu1 %v7182_v44  ;;  %7407 = vmatprep.subr.bf16.mxu0 %v7406_v24  ;;  %v6164_v57 = vpop.f32.mrb[29].mxu0  ;;  %v3957_v44 = vld [vmem:[%s13276_s11 + $0x8d8] sm:$0xff]  ;;  %v7420_v52 = vpack.c.bf16 %v3946_v54, %v3940_v26  ;;  %v3963_v56 = vld [vmem:[%s13276_s11 + $0x908] sm:$0xff]  ;;  %v3962_v15 = vld [vmem:[%s13276_s11 + $0x900] sm:$0xff]  ;;  %v7212_v26 = vpack.c.bf16 %v3992_v10, %v3986_v60 }
 0x795   :  { %v11404_v17 = vmax.f32 %v3663_v42, 0.0  ;;  %v3953_v24 = vld [vmem:[%s13276_s11 + $0x8b8] sm:$0xff]  ;;  %v7198_v45 = vpack.c.bf16 %v3957_v44, %v3951_v4  ;;  %v7424_v42 = vpack.c.bf16 %v3958_v6, %v3952_v40  ;;  %v3999_v46 = vld [vmem:[%s13276_s11 + $0xa28] sm:$0xff]  ;;  %v3998_v4 = vld [vmem:[%s13276_s11 + $0xa20] sm:$0xff] }
 0x796   :  { %v11415_v37 = vadd.f32 %v3659_v36, %v3631_v49  ;;  %v7422_v22 = vpack.c.bf16 %v3959_v38, %v3953_v24  ;;  %v3970_v49 = vld [vmem:[%s13276_s11 + $0x940] sm:$0xff]  ;;  %v3975_v36 = vld [vmem:[%s13276_s11 + $0x968] sm:$0xff]  ;;  %v4005_v39 = vld [vmem:[%s13276_s11 + $0xa58] sm:$0xff] }
 0x797   :  { %7185 = vmatpush1.bf16.msra.mxu1 %v7184_v16  ;;  %7409 = vmatpush1.bf16.msra.mxu0 %v7408_v34  ;;  %v3968_v16 = vld [vmem:[%s13276_s11 + $0x930] sm:$0xff]  ;;  %v7202_v34 = vpack.c.bf16 %v3969_v31, %v3963_v56  ;;  %v7206_v2 = vpack.c.bf16 %v3981_v43, %v3975_v36  ;;  %v7214_v24 = vpack.c.bf16 %v4005_v39, %v3999_v46  ;;  %v4011_v3 = vld [vmem:[%s13276_s11 + $0xa88] sm:$0xff]  ;;  %v4017_v50 = vld [vmem:[%s13276_s11 + $0xab8] sm:$0xff] }
 0x798   :  { %4513 = vmatprep.mubr.f32.mxu1 %v11404_v17  ;;  %4797 = vmatprep.mubr.f32.mxu0 %v11404_v17  ;;  %v7204_v57 = vpack.c.bf16 %v3968_v16, %v3962_v15  ;;  %v4004_v44 = vld [vmem:[%s13276_s11 + $0xa50] sm:$0xff]  ;;  %v4010_v56 = vld [vmem:[%s13276_s11 + $0xa80] sm:$0xff]  ;;  %v7218_v5 = vpack.c.bf16 %v4017_v50, %v4011_v3  ;;  %v4023_v15 = vld [vmem:[%s13276_s11 + $0xae8] sm:$0xff] }
 0x799   :  { %7187 = vmatprep.subr.bf16.mxu1 %v7186_v29  ;;  %7411 = vmatprep.subr.bf16.mxu0 %v7410_v55  ;;  %v7428_v29 = vpack.c.bf16 %v3970_v49, %v3964_v30  ;;  %v3974_v55 = vld [vmem:[%s13276_s11 + $0x960] sm:$0xff]  ;;  %v7216_v40 = vpack.c.bf16 %v4004_v44, %v3998_v4  ;;  %v4016_v31 = vld [vmem:[%s13276_s11 + $0xab0] sm:$0xff]  ;;  %v4029_v16 = vld [vmem:[%s13276_s11 + $0xb18] sm:$0xff] }
 0x79a   :  { %v7208_v12 = vpack.c.bf16 %v3980_v13, %v3974_v55  ;;  %v7220_v30 = vpack.c.bf16 %v4016_v31, %v4010_v56  ;;  %v4022_v36 = vld [vmem:[%s13276_s11 + $0xae0] sm:$0xff]  ;;  %v4028_v43 = vld [vmem:[%s13276_s11 + $0xb10] sm:$0xff]  ;;  %v7222_v41 = vpack.c.bf16 %v4029_v16, %v4023_v15  ;;  %v4035_v55 = vld [vmem:[%s13276_s11 + $0xb48] sm:$0xff] }
 0x79b   :  { %7189 = vmatpush1.bf16.msra.mxu1 %v7188_v59  ;;  %7413 = vmatpush1.bf16.msra.mxu0 %v7412_v11  ;;  %v3976_v59 = vld [vmem:[%s13276_s11 + $0x970] sm:$0xff]  ;;  %v3982_v11 = vld [vmem:[%s13276_s11 + $0x9a0] sm:$0xff]  ;;  %v4041_v13 = vld [vmem:[%s13276_s11 + $0xb78] sm:$0xff] }
 0x79c   :  { %7191 = vmatprep.subr.bf16.mxu1 %v7190_v58  ;;  %7415 = vmatprep.subr.bf16.mxu0 %v7414_v9  ;;  %v3989_v58 = vld [vmem:[%s13276_s11 + $0x9d8] sm:$0xff]  ;;  %v3995_v9 = vld [vmem:[%s13276_s11 + $0xa08] sm:$0xff]  ;;  %v7432_v23 = vpack.c.bf16 %v3982_v11, %v3976_v59  ;;  %v7224_v59 = vpack.c.bf16 %v4028_v43, %v4022_v36  ;;  %v4034_v27 = vld [vmem:[%s13276_s11 + $0xb40] sm:$0xff] }
 0x79d   :  { %v7434_v25 = vpack.c.bf16 %v3995_v9, %v3989_v58  ;;  %v4040_v35 = vld [vmem:[%s13276_s11 + $0xb70] sm:$0xff]  ;;  %v7226_v58 = vpack.c.bf16 %v4041_v13, %v4035_v55  ;;  %v4047_v60 = vld [vmem:[%s13276_s11 + $0xba8] sm:$0xff]  ;;  %v4053_v10 = vld [vmem:[%s13276_s11 + $0xbd8] sm:$0xff] }
 0x79e   :  { %v4046_v46 = vld [vmem:[%s13276_s11 + $0xba0] sm:$0xff]  ;;  %v4052_v39 = vld [vmem:[%s13276_s11 + $0xbd0] sm:$0xff]  ;;  %v4059_v4 = vld [vmem:[%s13276_s11 + $0xc08] sm:$0xff] }
 0x79f   :  { %7193 = vmatpush1.bf16.msra.mxu1 %v7192_v7  ;;  %7417 = vmatpush1.bf16.msra.mxu0 %v7416_v14  ;;  %v3988_v7 = vld [vmem:[%s13276_s11 + $0x9d0] sm:$0xff]  ;;  %v3994_v14 = vld [vmem:[%s13276_s11 + $0xa00] sm:$0xff]  ;;  %v4065_v44 = vld [vmem:[%s13276_s11 + $0xc38] sm:$0xff] }
 0x7a0   :  { %7195 = vmatprep.subr.bf16.mxu1 %v7194_v47  ;;  %7419 = vmatprep.subr.bf16.mxu0 %v7418_v1  ;;  %v4001_v47 = vld [vmem:[%s13276_s11 + $0xa38] sm:$0xff]  ;;  %v4007_v1 = vld [vmem:[%s13276_s11 + $0xa68] sm:$0xff]  ;;  %v7436_v54 = vpack.c.bf16 %v3994_v14, %v3988_v7  ;;  %v7228_v7 = vpack.c.bf16 %v4040_v35, %v4034_v27  ;;  %v7234_v3 = vpack.c.bf16 %v4065_v44, %v4059_v4  ;;  %v4070_v16 = vld [vmem:[%s13276_s11 + $0xc60] sm:$0xff] }
 0x7a1   :  { %v7438_v38 = vpack.c.bf16 %v4007_v1, %v4001_v47  ;;  %v7230_v47 = vpack.c.bf16 %v4053_v10, %v4047_v60  ;;  %v4071_v56 = vld [vmem:[%s13276_s11 + $0xc68] sm:$0xff]  ;;  %v4077_v31 = vld [vmem:[%s13276_s11 + $0xc98] sm:$0xff]  ;;  %v4078_v36 = vld [vmem:[%s13276_s11 + $0xca0] sm:$0xff] }
 0x7a2   :  { %v4083_v43 = vld [vmem:[%s13276_s11 + $0xcc8] sm:$0xff]  ;;  %v4082_v13 = vld [vmem:[%s13276_s11 + $0xcc0] sm:$0xff]  ;;  %v4101_v35 = vld [vmem:[%s13276_s11 + $0xd58] sm:$0xff] }
 0x7a3   :  { %7197 = vmatpush1.bf16.msra.mxu1 %v7196_v61  ;;  %7421 = vmatpush1.bf16.msra.mxu0 %v7420_v52  ;;  %v4000_v61 = vld [vmem:[%s13276_s11 + $0xa30] sm:$0xff]  ;;  %v4006_v52 = vld [vmem:[%s13276_s11 + $0xa60] sm:$0xff]  ;;  %v4095_v27 = vld [vmem:[%s13276_s11 + $0xd28] sm:$0xff] }
 0x7a4   :  { %7199 = vmatprep.subr.bf16.mxu1 %v7198_v45  ;;  %7423 = vmatprep.subr.bf16.mxu0 %v7422_v22  ;;  %v4013_v45 = vld [vmem:[%s13276_s11 + $0xa98] sm:$0xff]  ;;  %v4019_v22 = vld [vmem:[%s13276_s11 + $0xac8] sm:$0xff]  ;;  %v7440_v6 = vpack.c.bf16 %v4006_v52, %v4000_v61  ;;  %v7232_v61 = vpack.c.bf16 %v4052_v39, %v4046_v46  ;;  %v7246_v60 = vpack.c.bf16 %v4101_v35, %v4095_v27  ;;  %v4094_v10 = vld [vmem:[%s13276_s11 + $0xd20] sm:$0xff] }
 0x7a5   :  { %v7442_v8 = vpack.c.bf16 %v4019_v22, %v4013_v45  ;;  %v4058_v45 = vld [vmem:[%s13276_s11 + $0xc00] sm:$0xff]  ;;  %v4064_v22 = vld [vmem:[%s13276_s11 + $0xc30] sm:$0xff]  ;;  %v4107_v46 = vld [vmem:[%s13276_s11 + $0xd88] sm:$0xff] }
 0x7a6   :  { %v4113_v39 = vld [vmem:[%s13276_s11 + $0xdb8] sm:$0xff]  ;;  %v4106_v44 = vld [vmem:[%s13276_s11 + $0xd80] sm:$0xff] }
 0x7a7   :  { %7201 = vmatpush1.bf16.msra.mxu1 %v7200_v32  ;;  %7425 = vmatpush1.bf16.msra.mxu0 %v7424_v42  ;;  %v4012_v32 = vld [vmem:[%s13276_s11 + $0xa90] sm:$0xff]  ;;  %v4018_v42 = vld [vmem:[%s13276_s11 + $0xac0] sm:$0xff]  ;;  %v7250_v4 = vpack.c.bf16 %v4113_v39, %v4107_v46 }
 0x7a8   :  { %7203 = vmatprep.subr.bf16.mxu1 %v7202_v34  ;;  %7427 = vmatprep.subr.bf16.mxu0 %v7426_v63  ;;  %v4025_v34 = vld [vmem:[%s13276_s11 + $0xaf8] sm:$0xff]  ;;  %v4031_v63 = vld [vmem:[%s13276_s11 + $0xb28] sm:$0xff]  ;;  %v7444_v49 = vpack.c.bf16 %v4018_v42, %v4012_v32  ;;  %v7236_v32 = vpack.c.bf16 %v4064_v22, %v4058_v45  ;;  %v11708_v42 = vmax.f32 %v11376_v33, 0.0  ;;  %v7238_v33 = vpack.c.bf16 %v4077_v31, %v4071_v56  ;;  %v4118_v31 = vld [vmem:[%s13276_s11 + $0xde0] sm:$0xff] }
 0x7a9   :  { %v7446_v62 = vpack.c.bf16 %v4031_v63, %v4025_v34  ;;  %v4076_v34 = vld [vmem:[%s13276_s11 + $0xc90] sm:$0xff]  ;;  %v4121_v45 = vld [vmem:[%s13276_s11 + $0xdf8] sm:$0xff]  ;;  %v4127_v22 = vld [vmem:[%s13276_s11 + $0xe28] sm:$0xff] }
 0x7aa   :  { %v4072_v63 = vld [vmem:[%s13276_s11 + $0xc70] sm:$0xff]  ;;  %v4142_v35 = vld [vmem:[%s13276_s11 + $0xea0] sm:$0xff] }
 0x7ab   :  { %7205 = vmatpush1.bf16.msra.mxu1 %v7204_v57  ;;  %7429 = vmatpush1.bf16.msra.mxu0 %v7428_v29  ;;  %v4024_v57 = vld [vmem:[%s13276_s11 + $0xaf0] sm:$0xff]  ;;  %v4030_v29 = vld [vmem:[%s13276_s11 + $0xb20] sm:$0xff] }
 0x7ac   :  { %7207 = vmatprep.subr.bf16.mxu1 %v7206_v2  ;;  %7431 = vmatprep.subr.bf16.mxu0 %v7430_v51  ;;  %v4037_v2 = vld [vmem:[%s13276_s11 + $0xb58] sm:$0xff]  ;;  %v4043_v51 = vld [vmem:[%s13276_s11 + $0xb88] sm:$0xff]  ;;  %v7448_v11 = vpack.c.bf16 %v4030_v29, %v4024_v57  ;;  %v7240_v57 = vpack.c.bf16 %v4076_v34, %v4070_v16  ;;  %v7464_v29 = vpack.c.bf16 %v4078_v36, %v4072_v63  ;;  %v4154_v39 = vld [vmem:[%s13276_s11 + $0xf00] sm:$0xff] }
 0x7ad   :  { %v7450_v9 = vpack.c.bf16 %v4043_v51, %v4037_v2  ;;  %v4088_v2 = vld [vmem:[%s13276_s11 + $0xcf0] sm:$0xff]  ;;  %v4131_v16 = vld [vmem:[%s13276_s11 + $0xe48] sm:$0xff]  ;;  %v4137_v34 = vld [vmem:[%s13276_s11 + $0xe78] sm:$0xff] }
 0x7ae   :  { %v4084_v51 = vld [vmem:[%s13276_s11 + $0xcd0] sm:$0xff]  ;;  %v4133_v63 = vld [vmem:[%s13276_s11 + $0xe58] sm:$0xff] }
 0x7af   :  { %7209 = vmatpush1.bf16.msra.mxu1 %v7208_v12  ;;  %7433 = vmatpush1.bf16.msra.mxu0 %v7432_v23  ;;  %v4036_v12 = vld [vmem:[%s13276_s11 + $0xb50] sm:$0xff]  ;;  %v4042_v23 = vld [vmem:[%s13276_s11 + $0xb80] sm:$0xff] }
 0x7b0   :  { %7211 = vmatprep.subr.bf16.mxu1 %v7210_v0  ;;  %7435 = vmatprep.subr.bf16.mxu0 %v7434_v25  ;;  %v4049_v0 = vld [vmem:[%s13276_s11 + $0xbb8] sm:$0xff]  ;;  %v4055_v25 = vld [vmem:[%s13276_s11 + $0xbe8] sm:$0xff]  ;;  %v7452_v14 = vpack.c.bf16 %v4042_v23, %v4036_v12  ;;  %v7244_v12 = vpack.c.bf16 %v4088_v2, %v4082_v13 }
 0x7b1   :  { %v7454_v1 = vpack.c.bf16 %v4055_v25, %v4049_v0  ;;  %v4100_v0 = vld [vmem:[%s13276_s11 + $0xd50] sm:$0xff]  ;;  %v4149_v13 = vld [vmem:[%s13276_s11 + $0xed8] sm:$0xff] }
 0x7b2   :  { %v4096_v25 = vld [vmem:[%s13276_s11 + $0xd30] sm:$0xff]  ;;  %v4145_v2 = vld [vmem:[%s13276_s11 + $0xeb8] sm:$0xff] }
 0x7b3   :  { %7213 = vmatpush1.bf16.msra.mxu1 %v7212_v26  ;;  %7437 = vmatpush1.bf16.msra.mxu0 %v7436_v54  ;;  %v4048_v26 = vld [vmem:[%s13276_s11 + $0xbb0] sm:$0xff]  ;;  %v4054_v54 = vld [vmem:[%s13276_s11 + $0xbe0] sm:$0xff] }
 0x7b4   :  { %7215 = vmatprep.subr.bf16.mxu1 %v7214_v24  ;;  %7439 = vmatprep.subr.bf16.mxu0 %v7438_v38  ;;  %v4061_v24 = vld [vmem:[%s13276_s11 + $0xc18] sm:$0xff]  ;;  %v4067_v38 = vld [vmem:[%s13276_s11 + $0xc48] sm:$0xff]  ;;  %v7456_v52 = vpack.c.bf16 %v4054_v54, %v4048_v26  ;;  %v7248_v26 = vpack.c.bf16 %v4100_v0, %v4094_v10 }
 0x7b5   :  { %v7458_v50 = vpack.c.bf16 %v4067_v38, %v4061_v24  ;;  %v4112_v24 = vld [vmem:[%s13276_s11 + $0xdb0] sm:$0xff]  ;;  %v4161_v10 = vld [vmem:[%s13276_s11 + $0xf38] sm:$0xff] }
 0x7b6   :  { %v4108_v38 = vld [vmem:[%s13276_s11 + $0xd90] sm:$0xff]  ;;  %v4157_v0 = vld [vmem:[%s13276_s11 + $0xf18] sm:$0xff] }
 0x7b7   :  { %7217 = vmatpush1.bf16.msra.mxu1 %v7216_v40  ;;  %7441 = vmatpush1.bf16.msra.mxu0 %v7440_v6  ;;  %v4060_v40 = vld [vmem:[%s13276_s11 + $0xc10] sm:$0xff]  ;;  %v4066_v6 = vld [vmem:[%s13276_s11 + $0xc40] sm:$0xff] }
 0x7b8   :  { %7219 = vmatprep.subr.bf16.mxu1 %v7218_v5  ;;  %7443 = vmatprep.subr.bf16.mxu0 %v7442_v8  ;;  %v4073_v5 = vld [vmem:[%s13276_s11 + $0xc78] sm:$0xff]  ;;  %v4079_v8 = vld [vmem:[%s13276_s11 + $0xca8] sm:$0xff]  ;;  %v7460_v15 = vpack.c.bf16 %v4066_v6, %v4060_v40  ;;  %v7252_v40 = vpack.c.bf16 %v4112_v24, %v4106_v44 }
 0x7b9   :  { %v4173_v44 = vld [vmem:[%s13276_s11 + $0xf98] sm:$0xff] }
 0x7ba   :  { %v4169_v24 = vld [vmem:[%s13276_s11 + $0xf78] sm:$0xff] }
 0x7bb   :  { %7221 = vmatpush1.bf16.msra.mxu1 %v7220_v30  ;;  %7445 = vmatpush1.bf16.msra.mxu0 %v7444_v49  ;;  %v11720_v30 = vmax.f32 %v11354_v48, 0.0  ;;  %v7462_v49 = vpack.c.bf16 %v4079_v8, %v4073_v5  ;;  %v4085_v48 = vld [vmem:[%s13276_s11 + $0xcd8] sm:$0xff]  ;;  %v4124_v5 = vld [vmem:[%s13276_s11 + $0xe10] sm:$0xff] }
 0x7bc   :  { %7223 = vmatprep.subr.bf16.mxu1 %v7222_v41  ;;  %7447 = vmatprep.subr.bf16.mxu0 %v7446_v62  ;;  %v4089_v41 = vld [vmem:[%s13276_s11 + $0xcf8] sm:$0xff]  ;;  %v4091_v62 = vld [vmem:[%s13276_s11 + $0xd08] sm:$0xff]  ;;  %v4120_v8 = vld [vmem:[%s13276_s11 + $0xdf0] sm:$0xff] }
 0x7bd   :  { %v7242_v55 = vpack.c.bf16 %v4089_v41, %v4083_v43  ;;  %v7258_v43 = vpack.c.bf16 %v4137_v34, %v4131_v16  ;;  %v4130_v41 = vld [vmem:[%s13276_s11 + $0xe40] sm:$0xff] }
 0x7be   :  { %v4178_v34 = vld [vmem:[%s13276_s11 + $0xfc0] sm:$0xff] }
 0x7bf   :  { %7225 = vmatpush1.bf16.msra.mxu1 %v7224_v59  ;;  %7449 = vmatpush1.bf16.msra.mxu0 %v7448_v11  ;;  %v7466_v59 = vpack.c.bf16 %v4091_v62, %v4085_v48  ;;  %v4090_v11 = vld [vmem:[%s13276_s11 + $0xd00] sm:$0xff]  ;;  %v4136_v48 = vld [vmem:[%s13276_s11 + $0xe70] sm:$0xff] }
 0x7c0   :  { %7227 = vmatprep.subr.bf16.mxu1 %v7226_v58  ;;  %7451 = vmatprep.subr.bf16.mxu0 %v7450_v9  ;;  %v4097_v58 = vld [vmem:[%s13276_s11 + $0xd38] sm:$0xff]  ;;  %v4103_v9 = vld [vmem:[%s13276_s11 + $0xd68] sm:$0xff]  ;;  %v7468_v23 = vpack.c.bf16 %v4090_v11, %v4084_v51  ;;  %v4132_v62 = vld [vmem:[%s13276_s11 + $0xe50] sm:$0xff] }
 0x7c1   :  { %v4151_v51 = vld [vmem:[%s13276_s11 + $0xee8] sm:$0xff] }
 0x7c3   :  { %7229 = vmatpush1.bf16.msra.mxu1 %v7228_v7  ;;  %7453 = vmatpush1.bf16.msra.mxu0 %v7452_v14  ;;  %v7470_v7 = vpack.c.bf16 %v4103_v9, %v4097_v58  ;;  %v4102_v14 = vld [vmem:[%s13276_s11 + $0xd60] sm:$0xff]  ;;  %v4148_v58 = vld [vmem:[%s13276_s11 + $0xed0] sm:$0xff] }
 0x7c4   :  { %7231 = vmatprep.subr.bf16.mxu1 %v7230_v47  ;;  %7455 = vmatprep.subr.bf16.mxu0 %v7454_v1  ;;  %v4109_v47 = vld [vmem:[%s13276_s11 + $0xd98] sm:$0xff]  ;;  %v4115_v1 = vld [vmem:[%s13276_s11 + $0xdc8] sm:$0xff]  ;;  %v7472_v54 = vpack.c.bf16 %v4102_v14, %v4096_v25  ;;  %v4144_v9 = vld [vmem:[%s13276_s11 + $0xeb0] sm:$0xff] }
 0x7c5   :  { %v4163_v25 = vld [vmem:[%s13276_s11 + $0xf48] sm:$0xff] }
 0x7c7   :  { %7233 = vmatpush1.bf16.msra.mxu1 %v7232_v61  ;;  %7457 = vmatpush1.bf16.msra.mxu0 %v7456_v52  ;;  %v7474_v61 = vpack.c.bf16 %v4115_v1, %v4109_v47  ;;  %v4114_v52 = vld [vmem:[%s13276_s11 + $0xdc0] sm:$0xff]  ;;  %v4160_v47 = vld [vmem:[%s13276_s11 + $0xf30] sm:$0xff] }
 0x7c8   :  { %7235 = vmatprep.subr.bf16.mxu1 %v7234_v3  ;;  %7459 = vmatprep.subr.bf16.mxu0 %v7458_v50  ;;  %v4119_v3 = vld [vmem:[%s13276_s11 + $0xde8] sm:$0xff]  ;;  %v4125_v50 = vld [vmem:[%s13276_s11 + $0xe18] sm:$0xff]  ;;  %v7476_v6 = vpack.c.bf16 %v4114_v52, %v4108_v38  ;;  %v4156_v1 = vld [vmem:[%s13276_s11 + $0xf10] sm:$0xff] }
 0x7c9   :  { %v7254_v56 = vpack.c.bf16 %v4125_v50, %v4119_v3  ;;  %v4175_v38 = vld [vmem:[%s13276_s11 + $0xfa8] sm:$0xff]  ;;  %v4166_v50 = vld [vmem:[%s13276_s11 + $0xf60] sm:$0xff] }
 0x7ca   :  { %4514 = vmatmul.mubr.f32.vlgmr.msra.gmra.mrb[32].mxu1 %v11708_v42  ;;  %4798 = vmatmul.mubr.f32.vlgmr.msra.gmra.mrb[30].mxu0 %v11708_v42 }
 0x7cb   :  { %7237 = vmatpush1.bf16.msra.mxu1 %v7236_v32  ;;  %4584 = vmatprep.mubr.f32.mxu1 %v11720_v30  ;;  %v7478_v32 = vpack.c.bf16 %v4127_v22, %v4121_v45  ;;  %v4172_v45 = vld [vmem:[%s13276_s11 + $0xf90] sm:$0xff] }
 0x7cc   :  { %7461 = vmatpush1.bf16.msra.mxu0 %v7460_v15  ;;  %4868 = vmatprep.mubr.f32.mxu0 %v11720_v30  ;;  %v4126_v15 = vld [vmem:[%s13276_s11 + $0xe20] sm:$0xff]  ;;  %v4168_v22 = vld [vmem:[%s13276_s11 + $0xf70] sm:$0xff] }
 0x7cd   :  { %7239 = vmatprep.subr.bf16.mxu1 %v7238_v33  ;;  %7463 = vmatprep.subr.bf16.mxu0 %v7462_v49  ;;  %v4139_v33 = vld [vmem:[%s13276_s11 + $0xe88] sm:$0xff]  ;;  %v7256_v49 = vpack.c.bf16 %v4124_v5, %v4118_v31  ;;  %v7480_v36 = vpack.c.bf16 %v4126_v15, %v4120_v8  ;;  %v4185_v31 = vld [vmem:[%s13276_s11 + $0xff8] sm:$0xff] }
 0x7ce   :  { %v4181_v5 = vld [vmem:[%s13276_s11 + $0xfd8] sm:$0xff]  ;;  %v4187_v8 = vld [vmem:[%s13276_s11 + $0x1008] sm:$0xff] }
 0x7cf   :  { %7241 = vmatpush1.bf16.msra.mxu1 %v7240_v57  ;;  %v7482_v57 = vpack.c.bf16 %v4139_v33, %v4133_v63  ;;  %v4184_v63 = vld [vmem:[%s13276_s11 + $0xff0] sm:$0xff] }
 0x7d0   :  { %7465 = vmatpush1.bf16.msra.mxu0 %v7464_v29  ;;  %7243 = vmatprep.subr.bf16.mxu1 %v7242_v55  ;;  %v4138_v29 = vld [vmem:[%s13276_s11 + $0xe80] sm:$0xff]  ;;  %v4143_v55 = vld [vmem:[%s13276_s11 + $0xea8] sm:$0xff]  ;;  %v4180_v33 = vld [vmem:[%s13276_s11 + $0xfd0] sm:$0xff] }
 0x7d1   :  { %7467 = vmatprep.subr.bf16.mxu0 %v7466_v59  ;;  %v7260_v59 = vpack.c.bf16 %v4136_v48, %v4130_v41  ;;  %v7484_v11 = vpack.c.bf16 %v4138_v29, %v4132_v62  ;;  %v7262_v27 = vpack.c.bf16 %v4149_v13, %v4143_v55  ;;  %v4197_v41 = vld [vmem:[%s13276_s11 + $0x1058] sm:$0xff]  ;;  %v4199_v62 = vld [vmem:[%s13276_s11 + $0x1068] sm:$0xff]  ;;  %v4190_v13 = vld [vmem:[%s13276_s11 + $0x1020] sm:$0xff] }
 0x7d2   :  { %v4193_v48 = vld [vmem:[%s13276_s11 + $0x1038] sm:$0xff] }
 0x7d3   :  { %7245 = vmatpush1.bf16.msra.mxu1 %v7244_v12  ;;  %v7486_v12 = vpack.c.bf16 %v4151_v51, %v4145_v2  ;;  %v4196_v2 = vld [vmem:[%s13276_s11 + $0x1050] sm:$0xff] }
 0x7d4   :  { %7469 = vmatpush1.bf16.msra.mxu0 %v7468_v23  ;;  %7247 = vmatprep.subr.bf16.mxu1 %v7246_v60  ;;  %v4150_v23 = vld [vmem:[%s13276_s11 + $0xee0] sm:$0xff]  ;;  %v4155_v60 = vld [vmem:[%s13276_s11 + $0xf08] sm:$0xff]  ;;  %v4192_v51 = vld [vmem:[%s13276_s11 + $0x1030] sm:$0xff] }
 0x7d5   :  { %7471 = vmatprep.subr.bf16.mxu0 %v7470_v7  ;;  %v7264_v7 = vpack.c.bf16 %v4148_v58, %v4142_v35  ;;  %v7488_v14 = vpack.c.bf16 %v4150_v23, %v4144_v9  ;;  %v7266_v46 = vpack.c.bf16 %v4161_v10, %v4155_v60  ;;  %v4209_v35 = vld [vmem:[%s13276_s11 + $0x10b8] sm:$0xff]  ;;  %v4211_v9 = vld [vmem:[%s13276_s11 + $0x10c8] sm:$0xff]  ;;  %v4202_v10 = vld [vmem:[%s13276_s11 + $0x1080] sm:$0xff] }
 0x7d6   :  { %v4205_v58 = vld [vmem:[%s13276_s11 + $0x1098] sm:$0xff] }
 0x7d7   :  { %7249 = vmatpush1.bf16.msra.mxu1 %v7248_v26  ;;  %v7490_v26 = vpack.c.bf16 %v4163_v25, %v4157_v0  ;;  %v4208_v0 = vld [vmem:[%s13276_s11 + $0x10b0] sm:$0xff] }
 0x7d8   :  { %7473 = vmatpush1.bf16.msra.mxu0 %v7472_v54  ;;  %7251 = vmatprep.subr.bf16.mxu1 %v7250_v4  ;;  %v4162_v54 = vld [vmem:[%s13276_s11 + $0xf40] sm:$0xff]  ;;  %v4167_v4 = vld [vmem:[%s13276_s11 + $0xf68] sm:$0xff]  ;;  %v4204_v25 = vld [vmem:[%s13276_s11 + $0x1090] sm:$0xff] }
 0x7d9   :  { %7475 = vmatprep.subr.bf16.mxu0 %v7474_v61  ;;  %v7268_v61 = vpack.c.bf16 %v4160_v47, %v4154_v39  ;;  %v7492_v52 = vpack.c.bf16 %v4162_v54, %v4156_v1  ;;  %v7270_v3 = vpack.c.bf16 %v4173_v44, %v4167_v4  ;;  %v4221_v39 = vld [vmem:[%s13276_s11 + $0x1118] sm:$0xff]  ;;  %v4223_v1 = vld [vmem:[%s13276_s11 + $0x1128] sm:$0xff]  ;;  %v4214_v44 = vld [vmem:[%s13276_s11 + $0x10e0] sm:$0xff] }
 0x7da   :  { %v4217_v47 = vld [vmem:[%s13276_s11 + $0x10f8] sm:$0xff] }
 0x7db   :  { %7253 = vmatpush1.bf16.msra.mxu1 %v7252_v40  ;;  %v7494_v40 = vpack.c.bf16 %v4175_v38, %v4169_v24  ;;  %v4220_v24 = vld [vmem:[%s13276_s11 + $0x1110] sm:$0xff] }
 0x7dc   :  { %7477 = vmatpush1.bf16.msra.mxu0 %v7476_v6  ;;  %7255 = vmatprep.subr.bf16.mxu1 %v7254_v56  ;;  %v4174_v6 = vld [vmem:[%s13276_s11 + $0xfa0] sm:$0xff]  ;;  %v4179_v56 = vld [vmem:[%s13276_s11 + $0xfc8] sm:$0xff]  ;;  %v4216_v38 = vld [vmem:[%s13276_s11 + $0x10f0] sm:$0xff] }
 0x7dd   :  { %7479 = vmatprep.subr.bf16.mxu0 %v7478_v32  ;;  %v7272_v32 = vpack.c.bf16 %v4172_v45, %v4166_v50  ;;  %v7496_v15 = vpack.c.bf16 %v4174_v6, %v4168_v22  ;;  %v7274_v16 = vpack.c.bf16 %v4185_v31, %v4179_v56  ;;  %v4233_v50 = vld [vmem:[%s13276_s11 + $0x1178] sm:$0xff]  ;;  %v4235_v22 = vld [vmem:[%s13276_s11 + $0x1188] sm:$0xff]  ;;  %v4226_v31 = vld [vmem:[%s13276_s11 + $0x1140] sm:$0xff] }
 0x7de   :  { %v4229_v45 = vld [vmem:[%s13276_s11 + $0x1158] sm:$0xff] }
 0x7df   :  { %7257 = vmatpush1.bf16.msra.mxu1 %v7256_v49  ;;  %v7498_v49 = vpack.c.bf16 %v4187_v8, %v4181_v5  ;;  %v4232_v5 = vld [vmem:[%s13276_s11 + $0x1170] sm:$0xff] }
 0x7e0   :  { %7481 = vmatpush1.bf16.msra.mxu0 %v7480_v36  ;;  %7259 = vmatprep.subr.bf16.mxu1 %v7258_v43  ;;  %v4186_v36 = vld [vmem:[%s13276_s11 + $0x1000] sm:$0xff]  ;;  %v4191_v43 = vld [vmem:[%s13276_s11 + $0x1028] sm:$0xff]  ;;  %v4228_v8 = vld [vmem:[%s13276_s11 + $0x1150] sm:$0xff] }
 0x7e1   :  { %7483 = vmatprep.subr.bf16.mxu0 %v7482_v57  ;;  %v7276_v57 = vpack.c.bf16 %v4184_v63, %v4178_v34  ;;  %v7500_v29 = vpack.c.bf16 %v4186_v36, %v4180_v33  ;;  %v7278_v55 = vpack.c.bf16 %v4197_v41, %v4191_v43  ;;  %v4245_v34 = vld [vmem:[%s13276_s11 + $0x11d8] sm:$0xff]  ;;  %v4247_v33 = vld [vmem:[%s13276_s11 + $0x11e8] sm:$0xff]  ;;  %v4238_v41 = vld [vmem:[%s13276_s11 + $0x11a0] sm:$0xff] }
 0x7e2   :  { %v4241_v63 = vld [vmem:[%s13276_s11 + $0x11b8] sm:$0xff] }
 0x7e3   :  { %7261 = vmatpush1.bf16.msra.mxu1 %v7260_v59  ;;  %v7502_v59 = vpack.c.bf16 %v4199_v62, %v4193_v48  ;;  %v4244_v48 = vld [vmem:[%s13276_s11 + $0x11d0] sm:$0xff] }
 0x7e4   :  { %7485 = vmatpush1.bf16.msra.mxu0 %v7484_v11  ;;  %7263 = vmatprep.subr.bf16.mxu1 %v7262_v27  ;;  %v4198_v11 = vld [vmem:[%s13276_s11 + $0x1060] sm:$0xff]  ;;  %v4203_v27 = vld [vmem:[%s13276_s11 + $0x1088] sm:$0xff]  ;;  %v4240_v62 = vld [vmem:[%s13276_s11 + $0x11b0] sm:$0xff] }
 0x7e5   :  { %7487 = vmatprep.subr.bf16.mxu0 %v7486_v12  ;;  %v7280_v12 = vpack.c.bf16 %v4196_v2, %v4190_v13  ;;  %v7504_v23 = vpack.c.bf16 %v4198_v11, %v4192_v51  ;;  %v7282_v60 = vpack.c.bf16 %v4209_v35, %v4203_v27  ;;  %v4257_v13 = vld [vmem:[%s13276_s11 + $0x1238] sm:$0xff]  ;;  %v4259_v51 = vld [vmem:[%s13276_s11 + $0x1248] sm:$0xff]  ;;  %v4250_v35 = vld [vmem:[%s13276_s11 + $0x1200] sm:$0xff] }
 0x7e6   :  { %v4253_v2 = vld [vmem:[%s13276_s11 + $0x1218] sm:$0xff] }
 0x7e7   :  { %7265 = vmatpush1.bf16.msra.mxu1 %v7264_v7  ;;  %v7506_v7 = vpack.c.bf16 %v4211_v9, %v4205_v58  ;;  %v4256_v58 = vld [vmem:[%s13276_s11 + $0x1230] sm:$0xff] }
 0x7e8   :  { %7489 = vmatpush1.bf16.msra.mxu0 %v7488_v14  ;;  %7267 = vmatprep.subr.bf16.mxu1 %v7266_v46  ;;  %v4210_v14 = vld [vmem:[%s13276_s11 + $0x10c0] sm:$0xff]  ;;  %v4215_v46 = vld [vmem:[%s13276_s11 + $0x10e8] sm:$0xff]  ;;  %v4252_v9 = vld [vmem:[%s13276_s11 + $0x1210] sm:$0xff] }
 0x7e9   :  { %7491 = vmatprep.subr.bf16.mxu0 %v7490_v26  ;;  %v7284_v26 = vpack.c.bf16 %v4208_v0, %v4202_v10  ;;  %v7508_v54 = vpack.c.bf16 %v4210_v14, %v4204_v25  ;;  %v7286_v4 = vpack.c.bf16 %v4221_v39, %v4215_v46  ;;  %v4269_v10 = vld [vmem:[%s13276_s11 + $0x1298] sm:$0xff]  ;;  %v4271_v25 = vld [vmem:[%s13276_s11 + $0x12a8] sm:$0xff]  ;;  %v12102_v14 = vmax.f32 %v11341_v28, 0.0  ;;  %v4270_v28 = vld [vmem:[%s13276_s11 + $0x12a0] sm:$0xff] }
 0x7ea   :  { %v4265_v0 = vld [vmem:[%s13276_s11 + $0x1278] sm:$0xff] }
 0x7eb   :  { %7269 = vmatpush1.bf16.msra.mxu1 %v7268_v61  ;;  %v7510_v61 = vpack.c.bf16 %v4223_v1, %v4217_v47  ;;  %v4262_v47 = vld [vmem:[%s13276_s11 + $0x1260] sm:$0xff]  ;;  %v4268_v1 = vld [vmem:[%s13276_s11 + $0x1290] sm:$0xff] }
 0x7ec   :  { %7493 = vmatpush1.bf16.msra.mxu0 %v7492_v52  ;;  %7271 = vmatprep.subr.bf16.mxu1 %v7270_v3  ;;  %v4222_v52 = vld [vmem:[%s13276_s11 + $0x1120] sm:$0xff]  ;;  %v4227_v3 = vld [vmem:[%s13276_s11 + $0x1148] sm:$0xff] }
 0x7ed   :  { %7495 = vmatprep.subr.bf16.mxu0 %v7494_v40  ;;  %v7288_v40 = vpack.c.bf16 %v4220_v24, %v4214_v44  ;;  %v7512_v6 = vpack.c.bf16 %v4222_v52, %v4216_v38  ;;  %v7290_v56 = vpack.c.bf16 %v4233_v50, %v4227_v3  ;;  %v4281_v44 = vld [vmem:[%s13276_s11 + $0x12f8] sm:$0xff]  ;;  %v4283_v38 = vld [vmem:[%s13276_s11 + $0x1308] sm:$0xff]  ;;  %v4274_v50 = vld [vmem:[%s13276_s11 + $0x12c0] sm:$0xff] }
 0x7ee   :  { %v4277_v24 = vld [vmem:[%s13276_s11 + $0x12d8] sm:$0xff] }
 0x7ef   :  { %7273 = vmatpush1.bf16.msra.mxu1 %v7272_v32  ;;  %v7514_v32 = vpack.c.bf16 %v4235_v22, %v4229_v45  ;;  %v4280_v45 = vld [vmem:[%s13276_s11 + $0x12f0] sm:$0xff] }
 0x7f0   :  { %7497 = vmatpush1.bf16.msra.mxu0 %v7496_v15  ;;  %7275 = vmatprep.subr.bf16.mxu1 %v7274_v16  ;;  %v4234_v15 = vld [vmem:[%s13276_s11 + $0x1180] sm:$0xff]  ;;  %v4239_v16 = vld [vmem:[%s13276_s11 + $0x11a8] sm:$0xff]  ;;  %v4276_v22 = vld [vmem:[%s13276_s11 + $0x12d0] sm:$0xff] }
 0x7f1   :  { %7499 = vmatprep.subr.bf16.mxu0 %v7498_v49  ;;  %v7292_v49 = vpack.c.bf16 %v4232_v5, %v4226_v31  ;;  %v7516_v36 = vpack.c.bf16 %v4234_v15, %v4228_v8  ;;  %v7294_v43 = vpack.c.bf16 %v4245_v34, %v4239_v16  ;;  %v4293_v31 = vld [vmem:[%s13276_s11 + $0x1358] sm:$0xff]  ;;  %v4295_v8 = vld [vmem:[%s13276_s11 + $0x1368] sm:$0xff]  ;;  %v4286_v34 = vld [vmem:[%s13276_s11 + $0x1320] sm:$0xff] }
 0x7f2   :  { %v4289_v5 = vld [vmem:[%s13276_s11 + $0x1338] sm:$0xff] }
 0x7f3   :  { %7277 = vmatpush1.bf16.msra.mxu1 %v7276_v57  ;;  %v7518_v57 = vpack.c.bf16 %v4247_v33, %v4241_v63  ;;  %v4292_v63 = vld [vmem:[%s13276_s11 + $0x1350] sm:$0xff] }
 0x7f4   :  { %7501 = vmatpush1.bf16.msra.mxu0 %v7500_v29  ;;  %7279 = vmatprep.subr.bf16.mxu1 %v7278_v55  ;;  %v4246_v29 = vld [vmem:[%s13276_s11 + $0x11e0] sm:$0xff]  ;;  %v4251_v55 = vld [vmem:[%s13276_s11 + $0x1208] sm:$0xff]  ;;  %v4288_v33 = vld [vmem:[%s13276_s11 + $0x1330] sm:$0xff] }
 0x7f5   :  { %7503 = vmatprep.subr.bf16.mxu0 %v7502_v59  ;;  %v7296_v59 = vpack.c.bf16 %v4244_v48, %v4238_v41  ;;  %v7520_v11 = vpack.c.bf16 %v4246_v29, %v4240_v62  ;;  %v7298_v27 = vpack.c.bf16 %v4257_v13, %v4251_v55  ;;  %v4305_v41 = vld [vmem:[%s13276_s11 + $0x13b8] sm:$0xff]  ;;  %v4307_v62 = vld [vmem:[%s13276_s11 + $0x13c8] sm:$0xff]  ;;  %v4298_v13 = vld [vmem:[%s13276_s11 + $0x1380] sm:$0xff] }
 0x7f6   :  { %v4301_v48 = vld [vmem:[%s13276_s11 + $0x1398] sm:$0xff] }
 0x7f7   :  { %7281 = vmatpush1.bf16.msra.mxu1 %v7280_v12  ;;  %v7522_v12 = vpack.c.bf16 %v4259_v51, %v4253_v2  ;;  %v4304_v2 = vld [vmem:[%s13276_s11 + $0x13b0] sm:$0xff] }
 0x7f8   :  { %7505 = vmatpush1.bf16.msra.mxu0 %v7504_v23  ;;  %7283 = vmatprep.subr.bf16.mxu1 %v7282_v60  ;;  %v4258_v23 = vld [vmem:[%s13276_s11 + $0x1240] sm:$0xff]  ;;  %v4263_v60 = vld [vmem:[%s13276_s11 + $0x1268] sm:$0xff]  ;;  %v4300_v51 = vld [vmem:[%s13276_s11 + $0x1390] sm:$0xff] }
 0x7f9   :  { %7507 = vmatprep.subr.bf16.mxu0 %v7506_v7  ;;  %v7300_v7 = vpack.c.bf16 %v4256_v58, %v4250_v35  ;;  %v7524_v46 = vpack.c.bf16 %v4258_v23, %v4252_v9  ;;  %v7302_v39 = vpack.c.bf16 %v4269_v10, %v4263_v60  ;;  %v4317_v35 = vld [vmem:[%s13276_s11 + $0x1418] sm:$0xff]  ;;  %v4319_v9 = vld [vmem:[%s13276_s11 + $0x1428] sm:$0xff]  ;;  %v4310_v10 = vld [vmem:[%s13276_s11 + $0x13e0] sm:$0xff] }
 0x7fa   :  { %v4313_v58 = vld [vmem:[%s13276_s11 + $0x13f8] sm:$0xff] }
 0x7fb   :  { %7285 = vmatpush1.bf16.msra.mxu1 %v7284_v26  ;;  %v4264_v26 = vld [vmem:[%s13276_s11 + $0x1270] sm:$0xff] }
 0x7fc   :  { %7509 = vmatpush1.bf16.msra.mxu0 %v7508_v54  ;;  %7287 = vmatprep.subr.bf16.mxu1 %v7286_v4  ;;  %v7526_v54 = vpack.c.bf16 %v4271_v25, %v4265_v0  ;;  %v4275_v4 = vld [vmem:[%s13276_s11 + $0x12c8] sm:$0xff]  ;;  %v7528_v52 = vpack.c.bf16 %v4270_v28, %v4264_v26  ;;  %v4316_v0 = vld [vmem:[%s13276_s11 + $0x1410] sm:$0xff] }
 0x7fd   :  { %7511 = vmatprep.subr.bf16.mxu0 %v7510_v61  ;;  %v7304_v61 = vpack.c.bf16 %v4268_v1, %v4262_v47  ;;  %v7306_v3 = vpack.c.bf16 %v4281_v44, %v4275_v4  ;;  %v4312_v25 = vld [vmem:[%s13276_s11 + $0x13f0] sm:$0xff]  ;;  %v4329_v47 = vld [vmem:[%s13276_s11 + $0x1478] sm:$0xff]  ;;  %v4331_v26 = vld [vmem:[%s13276_s11 + $0x1488] sm:$0xff] }
 0x7fe   :  { %v4325_v1 = vld [vmem:[%s13276_s11 + $0x1458] sm:$0xff]  ;;  %v4322_v44 = vld [vmem:[%s13276_s11 + $0x1440] sm:$0xff] }
 0x7ff   :  { %7289 = vmatpush1.bf16.msra.mxu1 %v7288_v40  ;;  %v7530_v40 = vpack.c.bf16 %v4283_v38, %v4277_v24  ;;  %v4328_v24 = vld [vmem:[%s13276_s11 + $0x1470] sm:$0xff] }
 0x800   :  { %7513 = vmatpush1.bf16.msra.mxu0 %v7512_v6  ;;  %7291 = vmatprep.subr.bf16.mxu1 %v7290_v56  ;;  %v4282_v6 = vld [vmem:[%s13276_s11 + $0x1300] sm:$0xff]  ;;  %v4287_v56 = vld [vmem:[%s13276_s11 + $0x1328] sm:$0xff]  ;;  %v4324_v38 = vld [vmem:[%s13276_s11 + $0x1450] sm:$0xff] }
 0x801   :  { %7515 = vmatprep.subr.bf16.mxu0 %v7514_v32  ;;  %v7308_v32 = vpack.c.bf16 %v4280_v45, %v4274_v50  ;;  %v7532_v15 = vpack.c.bf16 %v4282_v6, %v4276_v22  ;;  %v7310_v16 = vpack.c.bf16 %v4293_v31, %v4287_v56  ;;  %v4341_v50 = vld [vmem:[%s13276_s11 + $0x14d8] sm:$0xff]  ;;  %v4343_v22 = vld [vmem:[%s13276_s11 + $0x14e8] sm:$0xff]  ;;  %v4334_v31 = vld [vmem:[%s13276_s11 + $0x14a0] sm:$0xff] }
 0x802   :  { %v4337_v45 = vld [vmem:[%s13276_s11 + $0x14b8] sm:$0xff] }
 0x803   :  { %7293 = vmatpush1.bf16.msra.mxu1 %v7292_v49  ;;  %v7534_v49 = vpack.c.bf16 %v4295_v8, %v4289_v5  ;;  %v4340_v5 = vld [vmem:[%s13276_s11 + $0x14d0] sm:$0xff] }
 0x804   :  { %7517 = vmatpush1.bf16.msra.mxu0 %v7516_v36  ;;  %7295 = vmatprep.subr.bf16.mxu1 %v7294_v43  ;;  %v4294_v36 = vld [vmem:[%s13276_s11 + $0x1360] sm:$0xff]  ;;  %v4299_v43 = vld [vmem:[%s13276_s11 + $0x1388] sm:$0xff]  ;;  %v4336_v8 = vld [vmem:[%s13276_s11 + $0x14b0] sm:$0xff] }
 0x805   :  { %7519 = vmatprep.subr.bf16.mxu0 %v7518_v57  ;;  %v7312_v57 = vpack.c.bf16 %v4292_v63, %v4286_v34  ;;  %v7536_v29 = vpack.c.bf16 %v4294_v36, %v4288_v33  ;;  %v7314_v55 = vpack.c.bf16 %v4305_v41, %v4299_v43  ;;  %v3685_v34 = vld [vmem:[%s13276_s11 + $0x58] sm:$0xff]  ;;  %v7328_v63 = vpack.c.bf16 %v4340_v5, %v4334_v31  ;;  %v3678_v36 = vld [vmem:[%s13276_s11 + $0x20] sm:$0xff]  ;;  %v3684_v43 = vld [vmem:[%s13276_s11 + $0x50] sm:$0xff] }
 0x806   :  { %v3691_v41 = vld [vmem:[%s13276_s11 + $0x88] sm:$0xff]  ;;  %v3781_v31 = vld [vmem:[%s13276_s11 + $0x358] sm:$0xff] }
 0x807   :  { %7297 = vmatpush1.bf16.msra.mxu1 %v7296_v59  ;;  %v7538_v59 = vpack.c.bf16 %v4307_v62, %v4301_v48  ;;  %v3697_v48 = vld [vmem:[%s13276_s11 + $0xb8] sm:$0xff]  ;;  %v7556_v62 = vpack.c.bf16 %v3684_v43, %v3678_v36  ;;  %v3792_v36 = vld [vmem:[%s13276_s11 + $0x3b0] sm:$0xff]  ;;  %v3799_v43 = vld [vmem:[%s13276_s11 + $0x3e8] sm:$0xff] }
 0x808   :  { %7521 = vmatpush1.bf16.msra.mxu0 %v7520_v11  ;;  %7299 = vmatprep.subr.bf16.mxu1 %v7298_v27  ;;  %v4306_v11 = vld [vmem:[%s13276_s11 + $0x13c0] sm:$0xff]  ;;  %v4311_v27 = vld [vmem:[%s13276_s11 + $0x13e8] sm:$0xff] }
 0x809   :  { %7523 = vmatprep.subr.bf16.mxu0 %v7522_v12  ;;  %v7316_v12 = vpack.c.bf16 %v4304_v2, %v4298_v13  ;;  %v7540_v23 = vpack.c.bf16 %v4306_v11, %v4300_v51  ;;  %v7318_v60 = vpack.c.bf16 %v4317_v35, %v4311_v27  ;;  %v3696_v13 = vld [vmem:[%s13276_s11 + $0xb0] sm:$0xff]  ;;  %v3703_v2 = vld [vmem:[%s13276_s11 + $0xe8] sm:$0xff]  ;;  %v3702_v11 = vld [vmem:[%s13276_s11 + $0xe0] sm:$0xff] }
 0x80a   :  { %4585 = vmatmul.mubr.f32.vlgmr.msra.gmra.mrb[32].mxu1 %v12102_v14  ;;  %v3708_v27 = vld [vmem:[%s13276_s11 + $0x110] sm:$0xff]  ;;  %v3715_v35 = vld [vmem:[%s13276_s11 + $0x148] sm:$0xff] }
 0x80b   :  { %4869 = vmatmul.mubr.f32.vlgmr.msra.gmra.mrb[30].mxu0 %v12102_v14  ;;  %7301 = vmatpush1.bf16.msra.mxu1 %v7300_v7  ;;  %v7542_v7 = vpack.c.bf16 %v4319_v9, %v4313_v58  ;;  %v3721_v58 = vld [vmem:[%s13276_s11 + $0x178] sm:$0xff] }
 0x80c   :  { %7525 = vmatpush1.bf16.msra.mxu0 %v7524_v46  ;;  %7303 = vmatprep.subr.bf16.mxu1 %v7302_v39  ;;  %v4318_v46 = vld [vmem:[%s13276_s11 + $0x1420] sm:$0xff]  ;;  %v4323_v39 = vld [vmem:[%s13276_s11 + $0x1448] sm:$0xff]  ;;  %v7566_v9 = vpack.c.bf16 %v3721_v58, %v3715_v35  ;;  %v3829_v35 = vld [vmem:[%s13276_s11 + $0x4d8] sm:$0xff] }
 0x80d   :  { %7527 = vmatprep.subr.bf16.mxu0 %v7526_v54  ;;  %4655 = vmatprep.mubr.f32.mxu1 %v13327_v20  ;;  %v7320_v54 = vpack.c.bf16 %v4316_v0, %v4310_v10  ;;  %v7544_v28 = vpack.c.bf16 %v4318_v46, %v4312_v25  ;;  %v7322_v4 = vpack.c.bf16 %v4329_v47, %v4323_v39  ;;  %v3733_v10 = vld [vmem:[%s13276_s11 + $0x1d8] sm:$0xff]  ;;  %v3732_v46 = vld [vmem:[%s13276_s11 + $0x1d0] sm:$0xff]  ;;  %v3739_v39 = vld [vmem:[%s13276_s11 + $0x208] sm:$0xff] }
 0x80e   :  { %4939 = vmatprep.mubr.f32.mxu0 %v13327_v20  ;;  %v3745_v47 = vld [vmem:[%s13276_s11 + $0x238] sm:$0xff] }
 0x80f   :  { %7305 = vmatpush1.bf16.msra.mxu1 %v7304_v61  ;;  %v7546_v61 = vpack.c.bf16 %v4331_v26, %v4325_v1  ;;  %v7574_v26 = vpack.c.bf16 %v3745_v47, %v3739_v39  ;;  %v3853_v39 = vld [vmem:[%s13276_s11 + $0x598] sm:$0xff] }
 0x810   :  { %7529 = vmatpush1.bf16.msra.mxu0 %v7528_v52  ;;  %7307 = vmatprep.subr.bf16.mxu1 %v7306_v3  ;;  %v4330_v52 = vld [vmem:[%s13276_s11 + $0x1480] sm:$0xff]  ;;  %v4335_v3 = vld [vmem:[%s13276_s11 + $0x14a8] sm:$0xff] }
 0x811   :  { %7531 = vmatprep.subr.bf16.mxu0 %v7530_v40  ;;  %v7324_v40 = vpack.c.bf16 %v4328_v24, %v4322_v44  ;;  %v7548_v6 = vpack.c.bf16 %v4330_v52, %v4324_v38  ;;  %v7326_v56 = vpack.c.bf16 %v4341_v50, %v4335_v3  ;;  %v3757_v44 = vld [vmem:[%s13276_s11 + $0x298] sm:$0xff]  ;;  %v3756_v52 = vld [vmem:[%s13276_s11 + $0x290] sm:$0xff]  ;;  %v3763_v3 = vld [vmem:[%s13276_s11 + $0x2c8] sm:$0xff] }
 0x812   :  { %v3769_v50 = vld [vmem:[%s13276_s11 + $0x2f8] sm:$0xff] }
 0x813   :  { %7309 = vmatpush1.bf16.msra.mxu1 %v7308_v32  ;;  %v7550_v32 = vpack.c.bf16 %v4343_v22, %v4337_v45  ;;  %v7582_v22 = vpack.c.bf16 %v3769_v50, %v3763_v3  ;;  %v3877_v3 = vld [vmem:[%s13276_s11 + $0x658] sm:$0xff]  ;;  %v5252_v50 = vld [vmem:[%s13278_s13 + $0x80] sm:$0xff] }
 0x814   :  { %7533 = vmatpush1.bf16.msra.mxu0 %v7532_v15  ;;  %7311 = vmatprep.subr.bf16.mxu1 %v7310_v16  ;;  %v4342_v15 = vld [vmem:[%s13276_s11 + $0x14e0] sm:$0xff]  ;;  %v3679_v16 = vld [vmem:[%s13276_s11 + $0x28] sm:$0xff] }
 0x815   :  { %7535 = vmatprep.subr.bf16.mxu0 %v7534_v49  ;;  %v7552_v33 = vpack.c.bf16 %v4342_v15, %v4336_v8  ;;  %v7554_v49 = vpack.c.bf16 %v3685_v34, %v3679_v16  ;;  %v3780_v15 = vld [vmem:[%s13276_s11 + $0x350] sm:$0xff]  ;;  %v3787_v16 = vld [vmem:[%s13276_s11 + $0x388] sm:$0xff]  ;;  %v3793_v34 = vld [vmem:[%s13276_s11 + $0x3b8] sm:$0xff] }
 0x817   :  { %7313 = vmatpush1.bf16.msra.mxu1 %v7312_v57  ;;  %v12283_v57 = vmax.f32 %v11415_v37, 0.0  ;;  %v3709_v37 = vld [vmem:[%s13276_s11 + $0x118] sm:$0xff] }
 0x818   :  { %7537 = vmatpush1.bf16.msra.mxu0 %v7536_v29  ;;  %7315 = vmatprep.subr.bf16.mxu1 %v7314_v55  ;;  %v7558_v29 = vpack.c.bf16 %v3697_v48, %v3691_v41  ;;  %v3690_v55 = vld [vmem:[%s13276_s11 + $0x80] sm:$0xff]  ;;  %v3805_v41 = vld [vmem:[%s13276_s11 + $0x418] sm:$0xff] }
 0x819   :  { %7539 = vmatprep.subr.bf16.mxu0 %v7538_v59  ;;  %v7560_v51 = vpack.c.bf16 %v3696_v13, %v3690_v55  ;;  %v7562_v59 = vpack.c.bf16 %v3709_v37, %v3703_v2  ;;  %v3804_v55 = vld [vmem:[%s13276_s11 + $0x410] sm:$0xff]  ;;  %v3811_v13 = vld [vmem:[%s13276_s11 + $0x448] sm:$0xff]  ;;  %v3817_v2 = vld [vmem:[%s13276_s11 + $0x478] sm:$0xff] }
 0x81b   :  { %7317 = vmatpush1.bf16.msra.mxu1 %v7316_v12  ;;  %v3714_v12 = vld [vmem:[%s13276_s11 + $0x140] sm:$0xff] }
 0x81c   :  { %7541 = vmatpush1.bf16.msra.mxu0 %v7540_v23  ;;  %7319 = vmatprep.subr.bf16.mxu1 %v7318_v60  ;;  %v3720_v23 = vld [vmem:[%s13276_s11 + $0x170] sm:$0xff]  ;;  %v3727_v60 = vld [vmem:[%s13276_s11 + $0x1a8] sm:$0xff] }
 0x81d   :  { %7543 = vmatprep.subr.bf16.mxu0 %v7542_v7  ;;  %v7568_v0 = vpack.c.bf16 %v3720_v23, %v3714_v12  ;;  %v7570_v25 = vpack.c.bf16 %v3733_v10, %v3727_v60  ;;  %v3726_v7 = vld [vmem:[%s13276_s11 + $0x1a0] sm:$0xff]  ;;  %v3828_v12 = vld [vmem:[%s13276_s11 + $0x4d0] sm:$0xff]  ;;  %v3835_v23 = vld [vmem:[%s13276_s11 + $0x508] sm:$0xff] }
 0x81e   :  { %v7572_v1 = vpack.c.bf16 %v3732_v46, %v3726_v7  ;;  %v3841_v60 = vld [vmem:[%s13276_s11 + $0x538] sm:$0xff]  ;;  %v3840_v7 = vld [vmem:[%s13276_s11 + $0x530] sm:$0xff]  ;;  %v3847_v46 = vld [vmem:[%s13276_s11 + $0x568] sm:$0xff] }
 0x81f   :  { %7321 = vmatpush1.bf16.msra.mxu1 %v7320_v54  ;;  %v3738_v54 = vld [vmem:[%s13276_s11 + $0x200] sm:$0xff] }
 0x820   :  { %7545 = vmatpush1.bf16.msra.mxu0 %v7544_v28  ;;  %7323 = vmatprep.subr.bf16.mxu1 %v7322_v4  ;;  %v3744_v28 = vld [vmem:[%s13276_s11 + $0x230] sm:$0xff]  ;;  %v3751_v4 = vld [vmem:[%s13276_s11 + $0x268] sm:$0xff] }
 0x821   :  { %7547 = vmatprep.subr.bf16.mxu0 %v7546_v61  ;;  %v7576_v24 = vpack.c.bf16 %v3744_v28, %v3738_v54  ;;  %v7578_v38 = vpack.c.bf16 %v3757_v44, %v3751_v4  ;;  %v3750_v61 = vld [vmem:[%s13276_s11 + $0x260] sm:$0xff]  ;;  %v3852_v54 = vld [vmem:[%s13276_s11 + $0x590] sm:$0xff]  ;;  %v3859_v28 = vld [vmem:[%s13276_s11 + $0x5c8] sm:$0xff] }
 0x822   :  { %v7580_v45 = vpack.c.bf16 %v3756_v52, %v3750_v61  ;;  %v3865_v4 = vld [vmem:[%s13276_s11 + $0x5f8] sm:$0xff]  ;;  %v3864_v61 = vld [vmem:[%s13276_s11 + $0x5f0] sm:$0xff]  ;;  %v3871_v52 = vld [vmem:[%s13276_s11 + $0x628] sm:$0xff] }
 0x823   :  { %7325 = vmatpush1.bf16.msra.mxu1 %v7324_v40  ;;  %v3762_v40 = vld [vmem:[%s13276_s11 + $0x2c0] sm:$0xff] }
 0x824   :  { %7549 = vmatpush1.bf16.msra.mxu0 %v7548_v6  ;;  %7327 = vmatprep.subr.bf16.mxu1 %v7326_v56  ;;  %v3768_v6 = vld [vmem:[%s13276_s11 + $0x2f0] sm:$0xff]  ;;  %v3775_v56 = vld [vmem:[%s13276_s11 + $0x328] sm:$0xff] }
 0x825   :  { %7551 = vmatprep.subr.bf16.mxu0 %v7550_v32  ;;  %v7584_v5 = vpack.c.bf16 %v3768_v6, %v3762_v40  ;;  %v7586_v8 = vpack.c.bf16 %v3781_v31, %v3775_v56  ;;  %v3774_v32 = vld [vmem:[%s13276_s11 + $0x320] sm:$0xff]  ;;  %v5237_v6 = vld [vmem:[%s13278_s13 + $0x8] sm:$0xff] }
 0x826   :  { %v5236_v40 = vld [vmem:[%s13278_s13] sm:$0xff] }
 0x827   :  { %7329 = vmatpush1.bf16.msra.mxu1 %v7328_v63  ;;  %v7588_v63 = vpack.c.bf16 %v3780_v15, %v3774_v32  ;;  %v7780_v31 = vpack.c.bf16 %v5237_v6, %v5236_v40  ;;  %v3876_v32 = vld [vmem:[%s13276_s11 + $0x650] sm:$0xff]  ;;  %v3883_v15 = vld [vmem:[%s13276_s11 + $0x688] sm:$0xff]  ;;  %v5263_v6 = vld [vmem:[%s13278_s13 + $0xd8] sm:$0xff] }
 0x828   :  { %7553 = vmatpush1.bf16.msra.mxu0 %v7552_v33  ;;  %7555 = vmatprep.subr.bf16.mxu1 %v7554_v49  ;;  %v7590_v33 = vpack.c.bf16 %v3793_v34, %v3787_v16  ;;  %v3786_v49 = vld [vmem:[%s13276_s11 + $0x380] sm:$0xff]  ;;  %v3889_v16 = vld [vmem:[%s13276_s11 + $0x6b8] sm:$0xff]  ;;  %v5254_v34 = vld [vmem:[%s13278_s13 + $0x90] sm:$0xff] }
 0x829   :  { %v7592_v48 = vpack.c.bf16 %v3792_v36, %v3786_v49  ;;  %v5238_v49 = vld [vmem:[%s13278_s13 + $0x10] sm:$0xff]  ;;  %v5239_v36 = vld [vmem:[%s13278_s13 + $0x18] sm:$0xff] }
 0x82a   :  { %4656 = vmatmul.mubr.f32.vlgmr.msra.gmra.mrb[32].mxu1 %v12283_v57  ;;  %v5262_v40 = vld [vmem:[%s13278_s13 + $0xd0] sm:$0xff] }
 0x82b   :  { %4940 = vmatmul.mubr.f32.vlgmr.msra.gmra.mrb[30].mxu0 %v12283_v57  ;;  %7557 = vmatpush1.bf16.msra.mxu1 %v7556_v62  ;;  %v7594_v62 = vpack.c.bf16 %v3805_v41, %v3799_v43  ;;  %v7784_v41 = vpack.c.bf16 %v5239_v36, %v5238_v49  ;;  %v5264_v49 = vld [vmem:[%s13278_s13 + $0xe0] sm:$0xff]  ;;  %v5265_v36 = vld [vmem:[%s13278_s13 + $0xe8] sm:$0xff] }
 0x82c   :  { %5010 = vmatprep.mubr.f32.mxu1 %v11284_v19  ;;  %7559 = vmatprep.subr.bf16.mxu1 %v7558_v29  ;;  %v7564_v19 = vpack.c.bf16 %v3708_v27, %v3702_v11  ;;  %v3798_v29 = vld [vmem:[%s13276_s11 + $0x3e0] sm:$0xff]  ;;  %v3816_v11 = vld [vmem:[%s13276_s11 + $0x470] sm:$0xff]  ;;  %v3823_v27 = vld [vmem:[%s13276_s11 + $0x4a8] sm:$0xff] }
 0x82d   :  { %v7596_v37 = vpack.c.bf16 %v3804_v55, %v3798_v29  ;;  %v3888_v29 = vld [vmem:[%s13276_s11 + $0x6b0] sm:$0xff]  ;;  %v3895_v55 = vld [vmem:[%s13276_s11 + $0x6e8] sm:$0xff] }
 0x82f   :  { %7561 = vmatpush1.bf16.msra.mxu1 %v7560_v51  ;;  %v7598_v51 = vpack.c.bf16 %v3817_v2, %v3811_v13  ;;  %v3901_v13 = vld [vmem:[%s13276_s11 + $0x718] sm:$0xff]  ;;  %v5256_v2 = vld [vmem:[%s13278_s13 + $0xa0] sm:$0xff] }
 0x830   :  { %7563 = vmatprep.subr.bf16.mxu1 %v7562_v59  ;;  %v3810_v59 = vld [vmem:[%s13276_s11 + $0x440] sm:$0xff] }
 0x831   :  { %v7600_v58 = vpack.c.bf16 %v3816_v11, %v3810_v59  ;;  %v5241_v59 = vld [vmem:[%s13278_s13 + $0x28] sm:$0xff] }
 0x833   :  { %7565 = vmatpush1.bf16.msra.mxu1 %v7564_v19  ;;  %v7602_v19 = vpack.c.bf16 %v3829_v35, %v3823_v27 }
 0x834   :  { %7567 = vmatprep.subr.bf16.mxu1 %v7566_v9  ;;  %v3822_v9 = vld [vmem:[%s13276_s11 + $0x4a0] sm:$0xff] }
 0x835   :  { %v7604_v10 = vpack.c.bf16 %v3828_v12, %v3822_v9  ;;  %v3907_v9 = vld [vmem:[%s13276_s11 + $0x748] sm:$0xff]  ;;  %v5258_v12 = vld [vmem:[%s13278_s13 + $0xb0] sm:$0xff] }
 0x837   :  { %7569 = vmatpush1.bf16.msra.mxu1 %v7568_v0  ;;  %v7606_v0 = vpack.c.bf16 %v3841_v60, %v3835_v23  ;;  %v5259_v23 = vld [vmem:[%s13278_s13 + $0xb8] sm:$0xff] }
 0x838   :  { %7571 = vmatprep.subr.bf16.mxu1 %v7570_v25  ;;  %v3834_v25 = vld [vmem:[%s13276_s11 + $0x500] sm:$0xff]  ;;  %v7790_v60 = vpack.c.bf16 %v5259_v23, %v5258_v12  ;;  %v3960_v12 = vld [vmem:[%s13276_s11 + $0x8f0] sm:$0xff]  ;;  %v3967_v23 = vld [vmem:[%s13276_s11 + $0x928] sm:$0xff] }
 0x839   :  { %v7608_v47 = vpack.c.bf16 %v3840_v7, %v3834_v25 }
 0x83b   :  { %7573 = vmatpush1.bf16.msra.mxu1 %v7572_v1  ;;  %v7610_v1 = vpack.c.bf16 %v3853_v39, %v3847_v46  ;;  %v3906_v39 = vld [vmem:[%s13276_s11 + $0x740] sm:$0xff] }
 0x83c   :  { %7575 = vmatprep.subr.bf16.mxu1 %v7574_v26  ;;  %v3846_v26 = vld [vmem:[%s13276_s11 + $0x560] sm:$0xff] }
 0x83d   :  { %v7612_v44 = vpack.c.bf16 %v3852_v54, %v3846_v26  ;;  %v3925_v26 = vld [vmem:[%s13276_s11 + $0x7d8] sm:$0xff]  ;;  %v5260_v54 = vld [vmem:[%s13278_s13 + $0xc0] sm:$0xff] }
 0x83f   :  { %7577 = vmatpush1.bf16.msra.mxu1 %v7576_v24  ;;  %v7614_v24 = vpack.c.bf16 %v3865_v4, %v3859_v28  ;;  %v5261_v28 = vld [vmem:[%s13278_s13 + $0xc8] sm:$0xff] }
 0x840   :  { %7579 = vmatprep.subr.bf16.mxu1 %v7578_v38  ;;  %v3858_v38 = vld [vmem:[%s13276_s11 + $0x5c0] sm:$0xff]  ;;  %v7794_v4 = vpack.c.bf16 %v5261_v28, %v5260_v54 }
 0x841   :  { %v7616_v56 = vpack.c.bf16 %v3864_v61, %v3858_v38 }
 0x843   :  { %7581 = vmatpush1.bf16.msra.mxu1 %v7580_v45  ;;  %v5253_v45 = vld [vmem:[%s13278_s13 + $0x88] sm:$0xff] }
 0x844   :  { %7583 = vmatprep.subr.bf16.mxu1 %v7582_v22  ;;  %v7778_v22 = vpack.c.bf16 %v5253_v45, %v5252_v50  ;;  %v3924_v50 = vld [vmem:[%s13276_s11 + $0x7d0] sm:$0xff]  ;;  %v3931_v45 = vld [vmem:[%s13276_s11 + $0x808] sm:$0xff] }
 0x846   :  { %7779 = vmatprep.subr.bf16.mxu0 %v7778_v22  ;;  %v3937_v22 = vld [vmem:[%s13276_s11 + $0x838] sm:$0xff] }
 0x847   :  { %7585 = vmatpush1.bf16.msra.mxu1 %v7584_v5  ;;  %v7618_v5 = vpack.c.bf16 %v3877_v3, %v3871_v52  ;;  %7781 = vmatpush3.bf16.msra.mxu0 %v7780_v31  ;;  %v3918_v3 = vld [vmem:[%s13276_s11 + $0x7a0] sm:$0xff]  ;;  %v5246_v31 = vld [vmem:[%s13278_s13 + $0x50] sm:$0xff] }
 0x848   :  { %7587 = vmatprep.subr.bf16.mxu1 %v7586_v8  ;;  %v3870_v8 = vld [vmem:[%s13276_s11 + $0x620] sm:$0xff] }
 0x849   :  { %v7620_v43 = vpack.c.bf16 %v3876_v32, %v3870_v8  ;;  %v7636_v8 = vpack.c.bf16 %v3924_v50, %v3918_v3  ;;  %v3990_v3 = vld [vmem:[%s13276_s11 + $0x9e0] sm:$0xff]  ;;  %v3996_v50 = vld [vmem:[%s13276_s11 + $0xa10] sm:$0xff] }
 0x84b   :  { %7589 = vmatpush1.bf16.msra.mxu1 %v7588_v63  ;;  %v5255_v63 = vld [vmem:[%s13278_s13 + $0x98] sm:$0xff] }
 0x84c   :  { %7591 = vmatprep.subr.bf16.mxu1 %v7590_v33  ;;  %v7782_v33 = vpack.c.bf16 %v5255_v63, %v5254_v34  ;;  %v3936_v34 = vld [vmem:[%s13276_s11 + $0x830] sm:$0xff]  ;;  %v3943_v63 = vld [vmem:[%s13276_s11 + $0x868] sm:$0xff] }
 0x84e   :  { %7783 = vmatprep.subr.bf16.mxu0 %v7782_v33  ;;  %v3949_v33 = vld [vmem:[%s13276_s11 + $0x898] sm:$0xff] }
 0x84f   :  { %7593 = vmatpush1.bf16.msra.mxu1 %v7592_v48  ;;  %v7622_v48 = vpack.c.bf16 %v3889_v16, %v3883_v15  ;;  %7785 = vmatpush3.bf16.msra.mxu0 %v7784_v41  ;;  %v7638_v15 = vpack.c.bf16 %v3937_v22, %v3931_v45  ;;  %v3930_v16 = vld [vmem:[%s13276_s11 + $0x800] sm:$0xff]  ;;  %v4003_v45 = vld [vmem:[%s13276_s11 + $0xa48] sm:$0xff]  ;;  %v4009_v22 = vld [vmem:[%s13276_s11 + $0xa78] sm:$0xff] }
 0x850   :  { %7595 = vmatprep.subr.bf16.mxu1 %v7594_v62  ;;  %v3882_v62 = vld [vmem:[%s13276_s11 + $0x680] sm:$0xff] }
 0x851   :  { %v7624_v11 = vpack.c.bf16 %v3888_v29, %v3882_v62  ;;  %v5248_v41 = vld [vmem:[%s13278_s13 + $0x60] sm:$0xff]  ;;  %v7640_v62 = vpack.c.bf16 %v3936_v34, %v3930_v16  ;;  %v4020_v34 = vld [vmem:[%s13276_s11 + $0xad0] sm:$0xff] }
 0x852   :  { %v4014_v16 = vld [vmem:[%s13276_s11 + $0xaa0] sm:$0xff] }
 0x853   :  { %7597 = vmatpush1.bf16.msra.mxu1 %v7596_v37  ;;  %v5257_v37 = vld [vmem:[%s13278_s13 + $0xa8] sm:$0xff] }
 0x854   :  { %7599 = vmatprep.subr.bf16.mxu1 %v7598_v51  ;;  %v5240_v51 = vld [vmem:[%s13278_s13 + $0x20] sm:$0xff]  ;;  %v7786_v27 = vpack.c.bf16 %v5257_v37, %v5256_v2  ;;  %v3948_v2 = vld [vmem:[%s13276_s11 + $0x890] sm:$0xff]  ;;  %v3955_v37 = vld [vmem:[%s13276_s11 + $0x8c8] sm:$0xff] }
 0x855   :  { %v7788_v35 = vpack.c.bf16 %v5241_v59, %v5240_v51  ;;  %v3961_v51 = vld [vmem:[%s13276_s11 + $0x8f8] sm:$0xff]  ;;  %v5266_v59 = vld [vmem:[%s13278_s13 + $0xf0] sm:$0xff] }
 0x856   :  { %7787 = vmatprep.subr.bf16.mxu0 %v7786_v27  ;;  %v5250_v27 = vld [vmem:[%s13278_s13 + $0x70] sm:$0xff] }
 0x857   :  { %7601 = vmatpush1.bf16.msra.mxu1 %v7600_v58  ;;  %v3894_v58 = vld [vmem:[%s13276_s11 + $0x6e0] sm:$0xff]  ;;  %7789 = vmatpush3.bf16.msra.mxu0 %v7788_v35  ;;  %v5251_v35 = vld [vmem:[%s13278_s13 + $0x78] sm:$0xff] }
 0x858   :  { %7603 = vmatprep.subr.bf16.mxu1 %v7602_v19  ;;  %v3900_v19 = vld [vmem:[%s13276_s11 + $0x710] sm:$0xff]  ;;  %7791 = vmatprep.subr.bf16.mxu0 %v7790_v60  ;;  %v3973_v60 = vld [vmem:[%s13276_s11 + $0x958] sm:$0xff] }
 0x859   :  { %v7628_v25 = vpack.c.bf16 %v3900_v19, %v3894_v58  ;;  %v7808_v19 = vpack.c.bf16 %v5251_v35, %v5250_v27  ;;  %v4050_v27 = vld [vmem:[%s13276_s11 + $0xbc0] sm:$0xff]  ;;  %v4056_v35 = vld [vmem:[%s13276_s11 + $0xbf0] sm:$0xff] }
 0x85b   :  { %7605 = vmatpush1.bf16.msra.mxu1 %v7604_v10  ;;  %v5242_v10 = vld [vmem:[%s13278_s13 + $0x30] sm:$0xff] }
 0x85c   :  { %7607 = vmatprep.subr.bf16.mxu1 %v7606_v0  ;;  %v5243_v0 = vld [vmem:[%s13278_s13 + $0x38] sm:$0xff] }
 0x85d   :  { %v7792_v7 = vpack.c.bf16 %v5243_v0, %v5242_v10  ;;  %v5284_v10 = vld [vmem:[%s13278_s13 + $0x180] sm:$0xff]  ;;  %v5285_v0 = vld [vmem:[%s13278_s13 + $0x188] sm:$0xff] }
 0x85f   :  { %7609 = vmatpush1.bf16.msra.mxu1 %v7608_v47  ;;  %v3912_v47 = vld [vmem:[%s13276_s11 + $0x770] sm:$0xff]  ;;  %7793 = vmatpush3.bf16.msra.mxu0 %v7792_v7  ;;  %v7810_v7 = vpack.c.bf16 %v5285_v0, %v5284_v10 }
 0x860   :  { %7611 = vmatprep.subr.bf16.mxu1 %v7610_v1  ;;  %v3919_v1 = vld [vmem:[%s13276_s11 + $0x7a8] sm:$0xff]  ;;  %v7632_v38 = vpack.c.bf16 %v3912_v47, %v3906_v39  ;;  %7795 = vmatprep.subr.bf16.mxu0 %v7794_v4  ;;  %v3966_v39 = vld [vmem:[%s13276_s11 + $0x920] sm:$0xff]  ;;  %v3972_v47 = vld [vmem:[%s13276_s11 + $0x950] sm:$0xff] }
 0x861   :  { %v7634_v52 = vpack.c.bf16 %v3925_v26, %v3919_v1  ;;  %v3979_v1 = vld [vmem:[%s13276_s11 + $0x988] sm:$0xff]  ;;  %v3985_v26 = vld [vmem:[%s13276_s11 + $0x9b8] sm:$0xff]  ;;  %v7652_v54 = vpack.c.bf16 %v3972_v47, %v3966_v39  ;;  %v3978_v4 = vld [vmem:[%s13276_s11 + $0x980] sm:$0xff] }
 0x862   :  { %v7654_v28 = vpack.c.bf16 %v3985_v26, %v3979_v1  ;;  %v4093_v39 = vld [vmem:[%s13276_s11 + $0xd18] sm:$0xff]  ;;  %v4086_v26 = vld [vmem:[%s13276_s11 + $0xce0] sm:$0xff] }
 0x863   :  { %7613 = vmatpush1.bf16.msra.mxu1 %v7612_v44  ;;  %v5244_v44 = vld [vmem:[%s13278_s13 + $0x40] sm:$0xff] }
 0x864   :  { %7615 = vmatprep.subr.bf16.mxu1 %v7614_v24  ;;  %v5245_v24 = vld [vmem:[%s13278_s13 + $0x48] sm:$0xff] }
 0x865   :  { %v7796_v61 = vpack.c.bf16 %v5245_v24, %v5244_v44  ;;  %v3984_v44 = vld [vmem:[%s13276_s11 + $0x9b0] sm:$0xff]  ;;  %v3991_v24 = vld [vmem:[%s13276_s11 + $0x9e8] sm:$0xff] }
 0x867   :  { %7617 = vmatpush1.bf16.msra.mxu1 %v7616_v56  ;;  %7797 = vmatpush3.bf16.msra.mxu0 %v7796_v61  ;;  %v7798_v56 = vpack.c.bf16 %v5263_v6, %v5262_v40  ;;  %v7656_v61 = vpack.c.bf16 %v3984_v44, %v3978_v4  ;;  %v7660_v40 = vpack.c.bf16 %v3996_v50, %v3990_v3  ;;  %v4098_v44 = vld [vmem:[%s13276_s11 + $0xd40] sm:$0xff] }
 0x868   :  { %7619 = vmatprep.subr.bf16.mxu1 %v7618_v5  ;;  %v5247_v5 = vld [vmem:[%s13278_s13 + $0x58] sm:$0xff]  ;;  %v7662_v6 = vpack.c.bf16 %v4009_v22, %v4003_v45  ;;  %v4110_v50 = vld [vmem:[%s13276_s11 + $0xda0] sm:$0xff]  ;;  %v4116_v45 = vld [vmem:[%s13276_s11 + $0xdd0] sm:$0xff] }
 0x869   :  { %v7800_v32 = vpack.c.bf16 %v5247_v5, %v5246_v31  ;;  %7799 = vmatprep.subr.bf16.mxu0 %v7798_v56  ;;  %v4002_v56 = vld [vmem:[%s13276_s11 + $0xa40] sm:$0xff]  ;;  %v4008_v31 = vld [vmem:[%s13276_s11 + $0xa70] sm:$0xff]  ;;  %v4015_v5 = vld [vmem:[%s13276_s11 + $0xaa8] sm:$0xff] }
 0x86a   :  { %5011 = vmatmul.mubr.f32.vlgmr.msra.gmra.mrb[34].mxu1 %v11297_v53  ;;  %v7626_v53 = vpack.c.bf16 %v3901_v13, %v3895_v55  ;;  %v7642_v55 = vpack.c.bf16 %v3949_v33, %v3943_v63  ;;  %v3942_v13 = vld [vmem:[%s13276_s11 + $0x860] sm:$0xff]  ;;  %v4027_v63 = vld [vmem:[%s13276_s11 + $0xb08] sm:$0xff]  ;;  %v4033_v33 = vld [vmem:[%s13276_s11 + $0xb38] sm:$0xff] }
 0x86b   :  { %7621 = vmatpush1.bf16.msra.mxu1 %v7620_v43  ;;  %5081 = vmatprep.mubr.f32.mxu1 %v11404_v17  ;;  %v3913_v17 = vld [vmem:[%s13276_s11 + $0x778] sm:$0xff]  ;;  %v7802_v43 = vpack.c.bf16 %v5265_v36, %v5264_v49  ;;  %v7668_v49 = vpack.c.bf16 %v4020_v34, %v4014_v16  ;;  %v7670_v36 = vpack.c.bf16 %v4033_v33, %v4027_v63  ;;  %v4123_v22 = vld [vmem:[%s13276_s11 + $0xe08] sm:$0xff]  ;;  %v4134_v34 = vld [vmem:[%s13276_s11 + $0xe60] sm:$0xff] }
 0x86c   :  { %7623 = vmatprep.subr.bf16.mxu1 %v7622_v48  ;;  %v7630_v46 = vpack.c.bf16 %v3913_v17, %v3907_v9  ;;  %7801 = vmatpush3.bf16.msra.mxu0 %v7800_v32  ;;  %v5249_v48 = vld [vmem:[%s13278_s13 + $0x68] sm:$0xff]  ;;  %v7646_v9 = vpack.c.bf16 %v3961_v51, %v3955_v37  ;;  %v3954_v17 = vld [vmem:[%s13276_s11 + $0x8c0] sm:$0xff]  ;;  %v7664_v32 = vpack.c.bf16 %v4008_v31, %v4002_v56  ;;  %v4057_v51 = vld [vmem:[%s13276_s11 + $0xbf8] sm:$0xff] }
 0x86d   :  { %v7804_v29 = vpack.c.bf16 %v5249_v48, %v5248_v41  ;;  %7803 = vmatprep.subr.bf16.mxu0 %v7802_v43  ;;  %v4026_v43 = vld [vmem:[%s13276_s11 + $0xb00] sm:$0xff]  ;;  %v4032_v41 = vld [vmem:[%s13276_s11 + $0xb30] sm:$0xff]  ;;  %v4039_v48 = vld [vmem:[%s13276_s11 + $0xb68] sm:$0xff] }
 0x86e   :  { %v4051_v37 = vld [vmem:[%s13276_s11 + $0xbc8] sm:$0xff]  ;;  %v4122_v31 = vld [vmem:[%s13276_s11 + $0xe00] sm:$0xff]  ;;  %v4140_v63 = vld [vmem:[%s13276_s11 + $0xe90] sm:$0xff] }
 0x86f   :  { %7625 = vmatpush1.bf16.msra.mxu1 %v7624_v11  ;;  %v5267_v11 = vld [vmem:[%s13278_s13 + $0xf8] sm:$0xff]  ;;  %v4147_v33 = vld [vmem:[%s13276_s11 + $0xec8] sm:$0xff] }
 0x870   :  { %7627 = vmatprep.subr.bf16.mxu1 %v7626_v53  ;;  %7805 = vmatpush3.bf16.msra.mxu0 %v7804_v29  ;;  %v7644_v53 = vpack.c.bf16 %v3948_v2, %v3942_v13  ;;  %v7806_v58 = vpack.c.bf16 %v5267_v11, %v5266_v59  ;;  %v7672_v29 = vpack.c.bf16 %v4032_v41, %v4026_v43  ;;  %v4038_v13 = vld [vmem:[%s13276_s11 + $0xb60] sm:$0xff]  ;;  %v4044_v2 = vld [vmem:[%s13276_s11 + $0xb90] sm:$0xff] }
 0x871   :  { %v7676_v59 = vpack.c.bf16 %v4044_v2, %v4038_v13  ;;  %v7678_v11 = vpack.c.bf16 %v4057_v51, %v4051_v37  ;;  %v4146_v41 = vld [vmem:[%s13276_s11 + $0xec0] sm:$0xff]  ;;  %v4164_v37 = vld [vmem:[%s13276_s11 + $0xf50] sm:$0xff]  ;;  %v4171_v51 = vld [vmem:[%s13276_s11 + $0xf88] sm:$0xff] }
 0x872   :  { %7807 = vmatprep.subr.bf16.mxu0 %v7806_v58  ;;  %v4069_v58 = vld [vmem:[%s13276_s11 + $0xc58] sm:$0xff]  ;;  %v4158_v2 = vld [vmem:[%s13276_s11 + $0xf20] sm:$0xff] }
 0x873   :  { %7629 = vmatpush1.bf16.msra.mxu1 %v7628_v25  ;;  %v7648_v25 = vpack.c.bf16 %v3960_v12, %v3954_v17  ;;  %v4062_v17 = vld [vmem:[%s13276_s11 + $0xc20] sm:$0xff]  ;;  %v4068_v12 = vld [vmem:[%s13276_s11 + $0xc50] sm:$0xff] }
 0x874   :  { %7631 = vmatprep.subr.bf16.mxu1 %v7630_v46  ;;  %7809 = vmatpush3.bf16.msra.mxu0 %v7808_v19  ;;  %v7650_v46 = vpack.c.bf16 %v3973_v60, %v3967_v23  ;;  %v7680_v19 = vpack.c.bf16 %v4056_v35, %v4050_v27  ;;  %v4075_v23 = vld [vmem:[%s13276_s11 + $0xc88] sm:$0xff]  ;;  %v4081_v60 = vld [vmem:[%s13276_s11 + $0xcb8] sm:$0xff]  ;;  %v7684_v10 = vpack.c.bf16 %v4068_v12, %v4062_v17  ;;  %v4170_v35 = vld [vmem:[%s13276_s11 + $0xf80] sm:$0xff] }
 0x875   :  { %7811 = vmatprep.subr.bf16.mxu0 %v7810_v7  ;;  %v7686_v0 = vpack.c.bf16 %v4081_v60, %v4075_v23  ;;  %v4080_v7 = vld [vmem:[%s13276_s11 + $0xcb0] sm:$0xff]  ;;  %v4182_v12 = vld [vmem:[%s13276_s11 + $0xfe0] sm:$0xff]  ;;  %v4195_v60 = vld [vmem:[%s13276_s11 + $0x1048] sm:$0xff] }
 0x876   :  { %v4188_v23 = vld [vmem:[%s13276_s11 + $0x1010] sm:$0xff] }
 0x877   :  { %7633 = vmatpush1.bf16.msra.mxu1 %v7632_v38  ;;  %v3997_v38 = vld [vmem:[%s13276_s11 + $0xa18] sm:$0xff] }
 0x878   :  { %7635 = vmatprep.subr.bf16.mxu1 %v7634_v52  ;;  %v7658_v52 = vpack.c.bf16 %v3997_v38, %v3991_v24  ;;  %v4104_v24 = vld [vmem:[%s13276_s11 + $0xd70] sm:$0xff]  ;;  %v4111_v38 = vld [vmem:[%s13276_s11 + $0xda8] sm:$0xff] }
 0x87b   :  { %7637 = vmatpush1.bf16.msra.mxu1 %v7636_v8  ;;  %v4021_v8 = vld [vmem:[%s13276_s11 + $0xad8] sm:$0xff] }
 0x87c   :  { %7639 = vmatprep.subr.bf16.mxu1 %v7638_v15  ;;  %v7666_v15 = vpack.c.bf16 %v4021_v8, %v4015_v5  ;;  %v4128_v5 = vld [vmem:[%s13276_s11 + $0xe30] sm:$0xff]  ;;  %v4135_v8 = vld [vmem:[%s13276_s11 + $0xe68] sm:$0xff] }
 0x87f   :  { %7641 = vmatpush1.bf16.msra.mxu1 %v7640_v62  ;;  %v4045_v62 = vld [vmem:[%s13276_s11 + $0xb98] sm:$0xff] }
 0x880   :  { %7643 = vmatprep.subr.bf16.mxu1 %v7642_v55  ;;  %v7674_v55 = vpack.c.bf16 %v4045_v62, %v4039_v48  ;;  %v4152_v48 = vld [vmem:[%s13276_s11 + $0xef0] sm:$0xff]  ;;  %v4159_v62 = vld [vmem:[%s13276_s11 + $0xf28] sm:$0xff] }
 0x883   :  { %7645 = vmatpush1.bf16.msra.mxu1 %v7644_v53  ;;  %v4063_v53 = vld [vmem:[%s13276_s11 + $0xc28] sm:$0xff] }
 0x884   :  { %7647 = vmatprep.subr.bf16.mxu1 %v7646_v9  ;;  %v7682_v9 = vpack.c.bf16 %v4069_v58, %v4063_v53  ;;  %v4176_v53 = vld [vmem:[%s13276_s11 + $0xfb0] sm:$0xff]  ;;  %v4183_v58 = vld [vmem:[%s13276_s11 + $0xfe8] sm:$0xff] }
 0x887   :  { %7649 = vmatpush1.bf16.msra.mxu1 %v7648_v25  ;;  %v4074_v25 = vld [vmem:[%s13276_s11 + $0xc80] sm:$0xff] }
 0x888   :  { %7651 = vmatprep.subr.bf16.mxu1 %v7650_v46  ;;  %v4087_v46 = vld [vmem:[%s13276_s11 + $0xce8] sm:$0xff]  ;;  %v7688_v47 = vpack.c.bf16 %v4080_v7, %v4074_v25  ;;  %v4194_v7 = vld [vmem:[%s13276_s11 + $0x1040] sm:$0xff] }
 0x889   :  { %v7690_v1 = vpack.c.bf16 %v4093_v39, %v4087_v46  ;;  %v4200_v46 = vld [vmem:[%s13276_s11 + $0x1070] sm:$0xff]  ;;  %v4207_v39 = vld [vmem:[%s13276_s11 + $0x10a8] sm:$0xff] }
 0x88b   :  { %7653 = vmatpush1.bf16.msra.mxu1 %v7652_v54  ;;  %v4092_v54 = vld [vmem:[%s13276_s11 + $0xd10] sm:$0xff] }
 0x88c   :  { %7655 = vmatprep.subr.bf16.mxu1 %v7654_v28  ;;  %v4099_v28 = vld [vmem:[%s13276_s11 + $0xd48] sm:$0xff] }
 0x88f   :  { %7657 = vmatpush1.bf16.msra.mxu1 %v7656_v61  ;;  %v4117_v61 = vld [vmem:[%s13276_s11 + $0xdd8] sm:$0xff] }
 0x890   :  { %7659 = vmatprep.subr.bf16.mxu1 %v7658_v52  ;;  %v7696_v52 = vpack.c.bf16 %v4104_v24, %v4098_v44  ;;  %v7698_v3 = vpack.c.bf16 %v4117_v61, %v4111_v38  ;;  %v4218_v24 = vld [vmem:[%s13276_s11 + $0x1100] sm:$0xff]  ;;  %v4224_v38 = vld [vmem:[%s13276_s11 + $0x1130] sm:$0xff]  ;;  %v4231_v61 = vld [vmem:[%s13276_s11 + $0x1168] sm:$0xff] }
 0x893   :  { %7661 = vmatpush1.bf16.msra.mxu1 %v7660_v40  ;;  %v4129_v40 = vld [vmem:[%s13276_s11 + $0xe38] sm:$0xff] }
 0x894   :  { %7663 = vmatprep.subr.bf16.mxu1 %v7662_v6  ;;  %v7700_v6 = vpack.c.bf16 %v4116_v45, %v4110_v50  ;;  %v7702_v56 = vpack.c.bf16 %v4129_v40, %v4123_v22  ;;  %v4230_v45 = vld [vmem:[%s13276_s11 + $0x1160] sm:$0xff]  ;;  %v4236_v22 = vld [vmem:[%s13276_s11 + $0x1190] sm:$0xff]  ;;  %v4243_v40 = vld [vmem:[%s13276_s11 + $0x11c8] sm:$0xff] }
 0x897   :  { %7665 = vmatpush1.bf16.msra.mxu1 %v7664_v32  ;;  %v4141_v32 = vld [vmem:[%s13276_s11 + $0xe98] sm:$0xff] }
 0x898   :  { %7667 = vmatprep.subr.bf16.mxu1 %v7666_v15  ;;  %v7704_v15 = vpack.c.bf16 %v4128_v5, %v4122_v31  ;;  %v7706_v16 = vpack.c.bf16 %v4141_v32, %v4135_v8  ;;  %v4242_v5 = vld [vmem:[%s13276_s11 + $0x11c0] sm:$0xff]  ;;  %v4248_v8 = vld [vmem:[%s13276_s11 + $0x11f0] sm:$0xff]  ;;  %v4255_v32 = vld [vmem:[%s13276_s11 + $0x1228] sm:$0xff] }
 0x89b   :  { %7669 = vmatpush1.bf16.msra.mxu1 %v7668_v49  ;;  %v4153_v49 = vld [vmem:[%s13276_s11 + $0xef8] sm:$0xff] }
 0x89c   :  { %7671 = vmatprep.subr.bf16.mxu1 %v7670_v36  ;;  %v7708_v36 = vpack.c.bf16 %v4140_v63, %v4134_v34  ;;  %v7710_v43 = vpack.c.bf16 %v4153_v49, %v4147_v33  ;;  %v4254_v63 = vld [vmem:[%s13276_s11 + $0x1220] sm:$0xff]  ;;  %v4260_v33 = vld [vmem:[%s13276_s11 + $0x1250] sm:$0xff]  ;;  %v4267_v49 = vld [vmem:[%s13276_s11 + $0x1288] sm:$0xff] }
 0x89f   :  { %7673 = vmatpush1.bf16.msra.mxu1 %v7672_v29  ;;  %v4165_v29 = vld [vmem:[%s13276_s11 + $0xf58] sm:$0xff] }
 0x8a0   :  { %7675 = vmatprep.subr.bf16.mxu1 %v7674_v55  ;;  %v7712_v55 = vpack.c.bf16 %v4152_v48, %v4146_v41  ;;  %v7714_v13 = vpack.c.bf16 %v4165_v29, %v4159_v62  ;;  %v4266_v48 = vld [vmem:[%s13276_s11 + $0x1280] sm:$0xff]  ;;  %v4272_v62 = vld [vmem:[%s13276_s11 + $0x12b0] sm:$0xff]  ;;  %v4279_v29 = vld [vmem:[%s13276_s11 + $0x12e8] sm:$0xff] }
 0x8a3   :  { %7677 = vmatpush1.bf16.msra.mxu1 %v7676_v59  ;;  %v4177_v59 = vld [vmem:[%s13276_s11 + $0xfb8] sm:$0xff] }
 0x8a4   :  { %7679 = vmatprep.subr.bf16.mxu1 %v7678_v11  ;;  %v7716_v11 = vpack.c.bf16 %v4164_v37, %v4158_v2  ;;  %v7718_v27 = vpack.c.bf16 %v4177_v59, %v4171_v51  ;;  %v4278_v37 = vld [vmem:[%s13276_s11 + $0x12e0] sm:$0xff]  ;;  %v4284_v51 = vld [vmem:[%s13276_s11 + $0x1310] sm:$0xff]  ;;  %v4291_v59 = vld [vmem:[%s13276_s11 + $0x1348] sm:$0xff] }
 0x8a7   :  { %7681 = vmatpush1.bf16.msra.mxu1 %v7680_v19  ;;  %v4189_v19 = vld [vmem:[%s13276_s11 + $0x1018] sm:$0xff] }
 0x8a8   :  { %7683 = vmatprep.subr.bf16.mxu1 %v7682_v9  ;;  %v7720_v9 = vpack.c.bf16 %v4176_v53, %v4170_v35  ;;  %v7722_v17 = vpack.c.bf16 %v4189_v19, %v4183_v58  ;;  %v4296_v35 = vld [vmem:[%s13276_s11 + $0x1370] sm:$0xff]  ;;  %v4303_v53 = vld [vmem:[%s13276_s11 + $0x13a8] sm:$0xff]  ;;  %v4309_v58 = vld [vmem:[%s13276_s11 + $0x13d8] sm:$0xff] }
 0x8aa   :  { %5082 = vmatmul.mubr.f32.vlgmr.msra.gmra.mrb[34].mxu1 %v11708_v42  ;;  %v4105_v42 = vld [vmem:[%s13276_s11 + $0xd78] sm:$0xff] }
 0x8ab   :  { %7685 = vmatpush1.bf16.msra.mxu1 %v7684_v10  ;;  %5152 = vmatprep.mubr.f32.mxu1 %v11720_v30  ;;  %v7692_v30 = vpack.c.bf16 %v4092_v54, %v4086_v26  ;;  %v7694_v4 = vpack.c.bf16 %v4105_v42, %v4099_v28  ;;  %v4201_v10 = vld [vmem:[%s13276_s11 + $0x1078] sm:$0xff]  ;;  %v4206_v54 = vld [vmem:[%s13276_s11 + $0x10a0] sm:$0xff]  ;;  %v4212_v28 = vld [vmem:[%s13276_s11 + $0x10d0] sm:$0xff] }
 0x8ac   :  { %7687 = vmatprep.subr.bf16.mxu1 %v7686_v0  ;;  %v7724_v0 = vpack.c.bf16 %v4188_v23, %v4182_v12  ;;  %v7726_v25 = vpack.c.bf16 %v4201_v10, %v4195_v60  ;;  %v4219_v42 = vld [vmem:[%s13276_s11 + $0x1108] sm:$0xff]  ;;  %v4308_v12 = vld [vmem:[%s13276_s11 + $0x13d0] sm:$0xff]  ;;  %v4321_v60 = vld [vmem:[%s13276_s11 + $0x1438] sm:$0xff] }
 0x8ad   :  { %v4315_v23 = vld [vmem:[%s13276_s11 + $0x1408] sm:$0xff] }
 0x8af   :  { %7689 = vmatpush1.bf16.msra.mxu1 %v7688_v47  ;;  %v4213_v47 = vld [vmem:[%s13276_s11 + $0x10d8] sm:$0xff] }
 0x8b0   :  { %7691 = vmatprep.subr.bf16.mxu1 %v7690_v1  ;;  %v7728_v1 = vpack.c.bf16 %v4200_v46, %v4194_v7  ;;  %v7730_v26 = vpack.c.bf16 %v4213_v47, %v4207_v39  ;;  %v4314_v7 = vld [vmem:[%s13276_s11 + $0x1400] sm:$0xff]  ;;  %v4320_v46 = vld [vmem:[%s13276_s11 + $0x1430] sm:$0xff]  ;;  %v4327_v39 = vld [vmem:[%s13276_s11 + $0x1468] sm:$0xff] }
 0x8b1   :  { %v4333_v47 = vld [vmem:[%s13276_s11 + $0x1498] sm:$0xff] }
 0x8b3   :  { %7693 = vmatpush1.bf16.msra.mxu1 %v7692_v30  ;;  %v4225_v30 = vld [vmem:[%s13276_s11 + $0x1138] sm:$0xff] }
 0x8b4   :  { %7695 = vmatprep.subr.bf16.mxu1 %v7694_v4  ;;  %v7732_v4 = vpack.c.bf16 %v4212_v28, %v4206_v54  ;;  %v7734_v44 = vpack.c.bf16 %v4225_v30, %v4219_v42  ;;  %v7768_v28 = vpack.c.bf16 %v4320_v46, %v4314_v7  ;;  %v13366_v42 = vld [vmem:[#allocation5_spill] sm:$0xff]  ;;  %v5296_v7 = vld [vmem:[%s13278_s13 + $0x1e0] sm:$0xff]  ;;  %v5297_v46 = vld [vmem:[%s13278_s13 + $0x1e8] sm:$0xff] }
 0x8b7   :  { %7697 = vmatpush1.bf16.msra.mxu1 %v7696_v52  ;;  %v4237_v52 = vld [vmem:[%s13276_s11 + $0x1198] sm:$0xff] }
 0x8b8   :  { %7699 = vmatprep.subr.bf16.mxu1 %v7698_v3  ;;  %v7736_v3 = vpack.c.bf16 %v4224_v38, %v4218_v24  ;;  %v7738_v50 = vpack.c.bf16 %v4237_v52, %v4231_v61  ;;  %v4332_v24 = vld [vmem:[%s13276_s11 + $0x1490] sm:$0xff]  ;;  %v4345_v61 = vld [vmem:[%s13276_s11 + $0x14f8] sm:$0xff] }
 0x8bb   :  { %7701 = vmatpush1.bf16.msra.mxu1 %v7700_v6  ;;  %v4249_v6 = vld [vmem:[%s13276_s11 + $0x11f8] sm:$0xff] }
 0x8bc   :  { %7703 = vmatprep.subr.bf16.mxu1 %v7702_v56  ;;  %v7740_v56 = vpack.c.bf16 %v4236_v22, %v4230_v45  ;;  %v7742_v31 = vpack.c.bf16 %v4249_v6, %v4243_v40  ;;  %v5268_v45 = vld [vmem:[%s13278_s13 + $0x100] sm:$0xff]  ;;  %v5269_v22 = vld [vmem:[%s13278_s13 + $0x108] sm:$0xff] }
 0x8bf   :  { %7705 = vmatpush1.bf16.msra.mxu1 %v7704_v15  ;;  %v4261_v15 = vld [vmem:[%s13276_s11 + $0x1258] sm:$0xff] }
 0x8c0   :  { %7707 = vmatprep.subr.bf16.mxu1 %v7706_v16  ;;  %v7744_v16 = vpack.c.bf16 %v4248_v8, %v4242_v5  ;;  %v7746_v34 = vpack.c.bf16 %v4261_v15, %v4255_v32  ;;  %v5287_v5 = vld [vmem:[%s13278_s13 + $0x198] sm:$0xff]  ;;  %v4338_v15 = vld [vmem:[%s13276_s11 + $0x14c0] sm:$0xff] }
 0x8c3   :  { %7709 = vmatpush1.bf16.msra.mxu1 %v7708_v36  ;;  %v4273_v36 = vld [vmem:[%s13276_s11 + $0x12b8] sm:$0xff] }
 0x8c4   :  { %7711 = vmatprep.subr.bf16.mxu1 %v7710_v43  ;;  %v7748_v43 = vpack.c.bf16 %v4260_v33, %v4254_v63  ;;  %v7750_v41 = vpack.c.bf16 %v4273_v36, %v4267_v49  ;;  %v7812_v63 = vpack.c.bf16 %v5269_v22, %v5268_v45  ;;  %v5270_v36 = vld [vmem:[%s13278_s13 + $0x110] sm:$0xff] }
 0x8c7   :  { %7713 = vmatpush1.bf16.msra.mxu1 %v7712_v55  ;;  %v4285_v55 = vld [vmem:[%s13276_s11 + $0x1318] sm:$0xff] }
 0x8c8   :  { %7715 = vmatprep.subr.bf16.mxu1 %v7714_v13  ;;  %v7752_v13 = vpack.c.bf16 %v4272_v62, %v4266_v48  ;;  %v7754_v2 = vpack.c.bf16 %v4285_v55, %v4279_v29  ;;  %v5288_v62 = vld [vmem:[%s13278_s13 + $0x1a0] sm:$0xff]  ;;  %v5289_v29 = vld [vmem:[%s13278_s13 + $0x1a8] sm:$0xff] }
 0x8cb   :  { %7717 = vmatpush1.bf16.msra.mxu1 %v7716_v11 }
 0x8cc   :  { %7719 = vmatprep.subr.bf16.mxu1 %v7718_v27  ;;  %v4290_v27 = vld [vmem:[%s13276_s11 + $0x1340] sm:$0xff] }
 0x8cd   :  { %v7760_v19 = vpack.c.bf16 %v4296_v35, %v4290_v27  ;;  %v5275_v27 = vld [vmem:[%s13278_s13 + $0x138] sm:$0xff]  ;;  %v5292_v35 = vld [vmem:[%s13278_s13 + $0x1c0] sm:$0xff] }
 0x8cf   :  { %7721 = vmatpush1.bf16.msra.mxu1 %v7720_v9  ;;  %v7762_v9 = vpack.c.bf16 %v4309_v58, %v4303_v53  ;;  %v5293_v53 = vld [vmem:[%s13278_s13 + $0x1c8] sm:$0xff] }
 0x8d0   :  { %7723 = vmatprep.subr.bf16.mxu1 %v7722_v17  ;;  %v4302_v17 = vld [vmem:[%s13276_s11 + $0x13a0] sm:$0xff]  ;;  %v7826_v58 = vpack.c.bf16 %v5293_v53, %v5292_v35  ;;  %v5322_v35 = vld [vmem:[%s13278_s13 + $0x2b0] sm:$0xff]  ;;  %v5323_v53 = vld [vmem:[%s13278_s13 + $0x2b8] sm:$0xff] }
 0x8d1   :  { %v7764_v10 = vpack.c.bf16 %v4308_v12, %v4302_v17  ;;  %v5294_v17 = vld [vmem:[%s13278_s13 + $0x1d0] sm:$0xff]  ;;  %v5295_v12 = vld [vmem:[%s13278_s13 + $0x1d8] sm:$0xff] }
 0x8d3   :  { %7725 = vmatpush1.bf16.msra.mxu1 %v7724_v0  ;;  %v13023_v0 = vld [vmem:[%s13279_s12] sm:$0x3f] }
 0x8d4   :  { %7727 = vmatprep.subr.bf16.mxu1 %v7726_v25  ;;  %v7766_v25 = vpack.c.bf16 %v4321_v60, %v4315_v23  ;;  %v4363_v30 = vrot.slane %v13023_v0, %v13366_v42  ;;  %v7830_v60 = vpack.c.bf16 %v5295_v12, %v5294_v17  ;;  %v5326_v17 = vld [vmem:[%s13278_s13 + $0x2d0] sm:$0xff]  ;;  %v5327_v12 = vld [vmem:[%s13278_s13 + $0x2d8] sm:$0xff] }
 0x8d7   :  { %7729 = vmatpush1.bf16.msra.mxu1 %v7728_v1  ;;  %v4351_v1 = vrot.slane %v13023_v0, %v8682_v18  ;;  %v4339_v18 = vld [vmem:[%s13276_s11 + $0x14c8] sm:$0xff] }
 0x8d8   :  { %7731 = vmatprep.subr.bf16.mxu1 %v7730_v26  ;;  %v13365_v26 = vld [vmem:[#allocation4_spill] sm:$0xff]  ;;  %v7774_v32 = vpack.c.bf16 %v4345_v61, %v4339_v18 }
 0x8d9   :  { %v4355_v54 = vrot.slane %v13023_v0, %v13365_v26  ;;  %v5281_v26 = vld [vmem:[%s13278_s13 + $0x168] sm:$0xff] }
 0x8db   :  { %7733 = vmatpush1.bf16.msra.mxu1 %v7732_v4  ;;  %v7770_v4 = vpack.c.bf16 %v4333_v47, %v4327_v39  ;;  %v7834_v47 = vpack.c.bf16 %v5297_v46, %v5296_v7  ;;  %v13368_v7 = vld [vmem:[#allocation6_spill] sm:$0xff] }
 0x8dc   :  { %7735 = vmatprep.subr.bf16.mxu1 %v7734_v44  ;;  %v4326_v44 = vld [vmem:[%s13276_s11 + $0x1460] sm:$0xff]  ;;  %v4367_v46 = vrot.slane %v13023_v0, %v13368_v7 }
 0x8df   :  { %7737 = vmatpush1.bf16.msra.mxu1 %v7736_v3 }
 0x8e0   :  { %7739 = vmatprep.subr.bf16.mxu1 %v7738_v50 }
 0x8e3   :  { %7741 = vmatpush1.bf16.msra.mxu1 %v7740_v56  ;;  %v7772_v56 = vpack.c.bf16 %v4332_v24, %v4326_v44  ;;  %v5282_v24 = vld [vmem:[%s13278_s13 + $0x170] sm:$0xff] }
 0x8e4   :  { %7743 = vmatprep.subr.bf16.mxu1 %v7742_v31  ;;  %v5286_v31 = vld [vmem:[%s13278_s13 + $0x190] sm:$0xff] }
 0x8e5   :  { %v7814_v49 = vpack.c.bf16 %v5287_v5, %v5286_v31  ;;  %v5305_v31 = vld [vmem:[%s13278_s13 + $0x228] sm:$0xff] }
 0x8e7   :  { %7745 = vmatpush1.bf16.msra.mxu1 %v7744_v16  ;;  %v4344_v16 = vld [vmem:[%s13276_s11 + $0x14f0] sm:$0xff] }
 0x8e8   :  { %7747 = vmatprep.subr.bf16.mxu1 %v7746_v34  ;;  %v7776_v48 = vpack.c.bf16 %v4344_v16, %v4338_v15  ;;  %v5308_v16 = vld [vmem:[%s13278_s13 + $0x240] sm:$0xff] }
 0x8ea   :  { %5153 = vmatmul.mubr.f32.vlgmr.msra.gmra.mrb[34].mxu1 %v12102_v14  ;;  %v4297_v14 = vld [vmem:[%s13276_s11 + $0x1378] sm:$0xff] }
 0x8eb   :  { %7749 = vmatpush1.bf16.msra.mxu1 %v7748_v43  ;;  %5223 = vmatprep.mubr.f32.mxu1 %v13327_v20  ;;  %v7756_v20 = vpack.c.bf16 %v4284_v51, %v4278_v37  ;;  %v7758_v11 = vpack.c.bf16 %v4297_v14, %v4291_v59  ;;  %v5271_v43 = vld [vmem:[%s13278_s13 + $0x118] sm:$0xff]  ;;  %v5273_v37 = vld [vmem:[%s13278_s13 + $0x128] sm:$0xff]  ;;  %v5290_v51 = vld [vmem:[%s13278_s13 + $0x1b0] sm:$0xff] }
 0x8ec   :  { %7751 = vmatprep.subr.bf16.mxu1 %v7750_v41  ;;  %v7816_v55 = vpack.c.bf16 %v5271_v43, %v5270_v36  ;;  %v5291_v59 = vld [vmem:[%s13278_s13 + $0x1b8] sm:$0xff]  ;;  %v5312_v43 = vld [vmem:[%s13278_s13 + $0x260] sm:$0xff] }
 0x8ef   :  { %7753 = vmatpush1.bf16.msra.mxu1 %v7752_v13  ;;  %v7818_v13 = vpack.c.bf16 %v5289_v29, %v5288_v62  ;;  %v5314_v62 = vld [vmem:[%s13278_s13 + $0x270] sm:$0xff]  ;;  %v5315_v29 = vld [vmem:[%s13278_s13 + $0x278] sm:$0xff] }
 0x8f0   :  { %7755 = vmatprep.subr.bf16.mxu1 %v7754_v2  ;;  %v5272_v2 = vld [vmem:[%s13278_s13 + $0x120] sm:$0xff] }
 0x8f1   :  { %v7820_v14 = vpack.c.bf16 %v5273_v37, %v5272_v2  ;;  %v5317_v2 = vld [vmem:[%s13278_s13 + $0x288] sm:$0xff] }
 0x8f3   :  { %7757 = vmatpush1.bf16.msra.mxu1 %v7756_v20  ;;  %v7822_v20 = vpack.c.bf16 %v5291_v59, %v5290_v51  ;;  %v5318_v51 = vld [vmem:[%s13278_s13 + $0x290] sm:$0xff]  ;;  %v5319_v59 = vld [vmem:[%s13278_s13 + $0x298] sm:$0xff] }
 0x8f4   :  { %7759 = vmatprep.subr.bf16.mxu1 %v7758_v11  ;;  %v5274_v11 = vld [vmem:[%s13278_s13 + $0x130] sm:$0xff] }
 0x8f7   :  { %7761 = vmatpush1.bf16.msra.mxu1 %v7760_v19  ;;  %v5276_v19 = vld [vmem:[%s13278_s13 + $0x140] sm:$0xff] }
 0x8f8   :  { %7763 = vmatprep.subr.bf16.mxu1 %v7762_v9  ;;  %v5277_v9 = vld [vmem:[%s13278_s13 + $0x148] sm:$0xff] }
 0x8f9   :  { %v7828_v23 = vpack.c.bf16 %v5277_v9, %v5276_v19  ;;  %v5325_v19 = vld [vmem:[%s13278_s13 + $0x2c8] sm:$0xff] }
 0x8fb   :  { %7765 = vmatpush1.bf16.msra.mxu1 %v7764_v10  ;;  %v5278_v10 = vld [vmem:[%s13278_s13 + $0x150] sm:$0xff] }
 0x8fc   :  { %7767 = vmatprep.subr.bf16.mxu1 %v7766_v25  ;;  %v5279_v25 = vld [vmem:[%s13278_s13 + $0x158] sm:$0xff] }
 0x8fd   :  { %v4657_v38 = vpop.f32.mrb[32].mxu1  ;;  %v7832_v39 = vpack.c.bf16 %v5279_v25, %v5278_v10 }
 0x8fe   :  { %v7892_v52 = vadd.f32 %v4657_v38, %v4351_v1  ;;  %v13055_v3 = vpop.f32.mrb[30].mxu0  ;;  %v4659_v50 = vpop.f32.mrb[33].mxu1  ;;  %v5280_v1 = vld [vmem:[%s13278_s13 + $0x160] sm:$0xff]  ;;  %v5283_v38 = vld [vmem:[%s13278_s13 + $0x178] sm:$0xff] }
 0x8ff   :  { %v7893_v40 = vadd.f32 %v4659_v50, %v4355_v54  ;;  %v4943_v6 = vpop.f32.mrb[31].mxu0  ;;  %7769 = vmatpush1.bf16.msra.mxu1 %v7768_v28  ;;  %v5298_v54 = vld [vmem:[%s13278_s13 + $0x1f0] sm:$0xff]  ;;  %v5299_v28 = vld [vmem:[%s13278_s13 + $0x1f8] sm:$0xff]  ;;  %v7836_v42 = vpack.c.bf16 %v5281_v26, %v5280_v1  ;;  %v7840_v18 = vpack.c.bf16 %v5283_v38, %v5282_v24  ;;  %v5301_v50 = vld [vmem:[%s13278_s13 + $0x208] sm:$0xff] }
 0x900   :  { %v7895_v8 = vadd.f32 %v4943_v6, %v4363_v30  ;;  %7771 = vmatprep.subr.bf16.mxu1 %v7770_v4  ;;  %v5230_v33 = vmax.f32 %v7892_v52, 0.0  ;;  %v13367_v30 = vld [vmem:[#allocation3_spill] sm:$0xff]  ;;  %v7838_v44 = vpack.c.bf16 %v5299_v28, %v5298_v54  ;;  %v5300_v52 = vld [vmem:[%s13278_s13 + $0x200] sm:$0xff] }
 0x901   :  { %v5231_v34 = vmax.f32 %v7893_v40, 0.0  ;;  %v4359_v4 = vrot.slane %v13023_v0, %v13367_v30  ;;  %v7843_v45 = vpack.c.bf16 %v5301_v50, %v5300_v52  ;;  %v5302_v40 = vld [vmem:[%s13278_s13 + $0x210] sm:$0xff] }
 0x902   :  { %v5233_v41 = vmax.f32 %v7895_v8, 0.0  ;;  %v5306_v8 = vld [vmem:[%s13278_s13 + $0x230] sm:$0xff] }
 0x903   :  { %7773 = vmatpush1.bf16.msra.mxu1 %v7772_v56  ;;  %5403 = vmatprep.mubr.f32.mxu0 %v5231_v34  ;;  %v7894_v61 = vadd.f32 %v13055_v3, %v4359_v4  ;;  %v5303_v3 = vld [vmem:[%s13278_s13 + $0x218] sm:$0xff]  ;;  %v5304_v56 = vld [vmem:[%s13278_s13 + $0x220] sm:$0xff]  ;;  %v5309_v34 = vld [vmem:[%s13278_s13 + $0x248] sm:$0xff] }
 0x904   :  { %5404 = vmatmul.mubr.f32.vlgmr.msra.gmra.mrb[32].mxu0 %v5230_v33  ;;  %7775 = vmatprep.subr.bf16.mxu1 %v7774_v32  ;;  %v7846_v6 = vpack.c.bf16 %v5303_v3, %v5302_v40  ;;  %v7849_v5 = vpack.c.bf16 %v5305_v31, %v5304_v56  ;;  %v5307_v32 = vld [vmem:[%s13278_s13 + $0x238] sm:$0xff]  ;;  %v5310_v33 = vld [vmem:[%s13278_s13 + $0x250] sm:$0xff]  ;;  %v5568_v4 = vld [vmem:[%s13280_s14] ss:$0 sm:$0xff] }
 0x905   :  { %7813 = vmatpush3.bf16.msra.mxu0 %v7812_v63  ;;  %5473 = vmatprep.mubr.f32.mxu0 %v5233_v41  ;;  %v5232_v22 = vmax.f32 %v7894_v61, 0.0  ;;  %v7852_v15 = vpack.c.bf16 %v5307_v32, %v5306_v8  ;;  %v7855_v63 = vpack.c.bf16 %v5309_v34, %v5308_v16  ;;  %v5313_v41 = vld [vmem:[%s13278_s13 + $0x268] sm:$0xff] }
 0x906   :  { %7815 = vmatprep.subr.bf16.mxu0 %v7814_v49  ;;  %v5311_v49 = vld [vmem:[%s13278_s13 + $0x258] sm:$0xff] }
 0x907   :  { %7777 = vmatpush1.bf16.msra.mxu1 %v7776_v48  ;;  %v7858_v36 = vpack.c.bf16 %v5311_v49, %v5310_v33  ;;  %v7861_v48 = vpack.c.bf16 %v5313_v41, %v5312_v43 }
 0x909   :  { %7817 = vmatpush3.bf16.msra.mxu0 %v7816_v55  ;;  %v7864_v55 = vpack.c.bf16 %v5315_v29, %v5314_v62 }
 0x90a   :  { %5224 = vmatmul.mubr.f32.vlgmr.msra.gmra.mrb[34].mxu1 %v12283_v57  ;;  %7819 = vmatprep.subr.bf16.mxu0 %v7818_v13  ;;  %v7824_v57 = vpack.c.bf16 %v5275_v27, %v5274_v11  ;;  %v5316_v13 = vld [vmem:[%s13278_s13 + $0x280] sm:$0xff]  ;;  %v5321_v11 = vld [vmem:[%s13278_s13 + $0x2a8] sm:$0xff] }
 0x90b   :  { %v7867_v37 = vpack.c.bf16 %v5317_v2, %v5316_v13 }
 0x90d   :  { %7821 = vmatpush3.bf16.msra.mxu0 %v7820_v14  ;;  %v7870_v14 = vpack.c.bf16 %v5319_v59, %v5318_v51 }
 0x90e   :  { %7823 = vmatprep.subr.bf16.mxu0 %v7822_v20  ;;  %v5320_v20 = vld [vmem:[%s13278_s13 + $0x2a0] sm:$0xff] }
 0x90f   :  { %v7873_v27 = vpack.c.bf16 %v5321_v11, %v5320_v20 }
 0x911   :  { %7825 = vmatpush3.bf16.msra.mxu0 %v7824_v57  ;;  %v7876_v57 = vpack.c.bf16 %v5323_v53, %v5322_v35 }
 0x912   :  { %7827 = vmatprep.subr.bf16.mxu0 %v7826_v58  ;;  %v5324_v58 = vld [vmem:[%s13278_s13 + $0x2c0] sm:$0xff] }
 0x913   :  { %v7879_v9 = vpack.c.bf16 %v5325_v19, %v5324_v58 }
 0x915   :  { %7829 = vmatpush3.bf16.msra.mxu0 %v7828_v23  ;;  %v7882_v23 = vpack.c.bf16 %v5327_v12, %v5326_v17 }
 0x916   :  { %7831 = vmatprep.subr.bf16.mxu0 %v7830_v60 }
 0x919   :  { %7833 = vmatpush3.bf16.msra.mxu0 %v7832_v39  ;;  %v13369_v39 = vld [vmem:[#allocation2_spill] sm:$0xff] }
 0x91a   :  { %7835 = vmatprep.subr.bf16.mxu0 %v7834_v47  ;;  %v13370_v47 = vsub.s32 5, %v13369_v39 }
 0x91d   :  { %7837 = vmatpush3.bf16.msra.mxu0 %v7836_v42 }
 0x91e   :  { %7839 = vmatprep.subr.bf16.mxu0 %v7838_v44 }
 0x921   :  { %7841 = vmatpush3.bf16.msra.mxu0 %v7840_v18 }
 0x922   :  { %7842 = vmatprep.subr.bf16.mxu0 %v13328_v21 }
 0x924   :  { %5474 = vmatmul.mubr.f32.vlgmr.msra.gmra.mrb[34].mxu0 %v5232_v22 }
 0x925   :  { %7844 = vmatpush1.bf16.msra.mxu0 %v7843_v45 }
 0x926   :  { %7845 = vmatprep.subr.bf16.mxu0 %v13328_v21 }
 0x929   :  { %7847 = vmatpush1.bf16.msra.mxu0 %v7846_v6 }
 0x92a   :  { %7848 = vmatprep.subr.bf16.mxu0 %v13328_v21 }
 0x92d   :  { %7850 = vmatpush1.bf16.msra.mxu0 %v7849_v5 }
 0x92e   :  { %7851 = vmatprep.subr.bf16.mxu0 %v13328_v21 }
 0x931   :  { %7853 = vmatpush1.bf16.msra.mxu0 %v7852_v15 }
 0x932   :  { %7854 = vmatprep.subr.bf16.mxu0 %v13328_v21 }
 0x935   :  { %7856 = vmatpush1.bf16.msra.mxu0 %v7855_v63 }
 0x936   :  { %7857 = vmatprep.subr.bf16.mxu0 %v13328_v21 }
 0x939   :  { %7859 = vmatpush1.bf16.msra.mxu0 %v7858_v36 }
 0x93a   :  { %7860 = vmatprep.subr.bf16.mxu0 %v13328_v21 }
 0x93d   :  { %7862 = vmatpush1.bf16.msra.mxu0 %v7861_v48 }
 0x93e   :  { %7863 = vmatprep.subr.bf16.mxu0 %v13328_v21 }
 0x941   :  { %7865 = vmatpush1.bf16.msra.mxu0 %v7864_v55 }
 0x942   :  { %7866 = vmatprep.subr.bf16.mxu0 %v13328_v21 }
 0x945   :  { %7868 = vmatpush1.bf16.msra.mxu0 %v7867_v37 }
 0x946   :  { %7869 = vmatprep.subr.bf16.mxu0 %v13328_v21 }
 0x949   :  { %7871 = vmatpush1.bf16.msra.mxu0 %v7870_v14 }
 0x94a   :  { %7872 = vmatprep.subr.bf16.mxu0 %v13328_v21 }
 0x94d   :  { %7874 = vmatpush1.bf16.msra.mxu0 %v7873_v27 }
 0x94e   :  { %7875 = vmatprep.subr.bf16.mxu0 %v13328_v21 }
 0x951   :  { %7877 = vmatpush1.bf16.msra.mxu0 %v7876_v57 }
 0x952   :  { %7878 = vmatprep.subr.bf16.mxu0 %v13328_v21 }
 0x955   :  { %7880 = vmatpush1.bf16.msra.mxu0 %v7879_v9 }
 0x956   :  { %7881 = vmatprep.subr.bf16.mxu0 %v13328_v21  ;;  %v4371_v21 = vrot.slane %v13023_v0, %v13370_v47 }
 0x959   :  { %7883 = vmatpush1.bf16.msra.mxu0 %v7882_v23 }
 0x9d7   :  { %v5961_v60 = vpop.f32.mrb[32].mxu0 }
 0x9d8   :  { %v5962_v10 = vpop.f32.mrb[33].mxu0 }
 0x9d9   :  { %v5963_v25 = vadd.f32 %v5962_v10, %v5961_v60 }
 0x9db   :  { %v5406_v38 = vadd.f32 %v5963_v25, %v5568_v4 }
 0x9dd   :  { %v5225_v1 = vpop.f32.mrb[34].mxu1 }
 0x9de   :  { %v7896_v26 = vadd.f32 %v5225_v1, %v4367_v46  ;;  %v5227_v54 = vpop.f32.mrb[35].mxu1 }
 0x9df   :  { %v7897_v28 = vadd.f32 %v5227_v54, %v4371_v21 }
 0x9e0   :  { %v5234_v30 = vmax.f32 %v7896_v26, 0.0 }
 0x9e1   :  { %v5235_v42 = vmax.f32 %v7897_v28, 0.0 }
 0x9e3   :  { %5569 = vmatprep.mubr.msk.f32.mxu0 %vm5335_vm4, %v5235_v42 }
 0x9e4   :  { %5544 = vmatmul.mubr.f32.vlgmr.msra.gmra.mrb[36].mxu0 %v5234_v30 }
 0x9f7   :  { %v5996_v44 = vpop.f32.mrb[34].mxu0 }
 0x9f8   :  { %v5997_v24 = vpop.f32.mrb[35].mxu0 }
 0x9f9   :  { %v5998_v18 = vadd.f32 %v5997_v24, %v5996_v44 }
 0x9fb   :  { %v5476_v61 = vadd.f32 %v5998_v18, %v5406_v38 }
 0xab7   :  { %v5545_v52 = vpop.f32.mrb[36].mxu0 }
 0xab8   :  { %v5546_v0 = vadd.f32 %v5545_v52, %v5476_v61  ;;  %v5547_v50 = vpop.f32.mrb[37].mxu0 }
 0xaba   :  { %5549 = vst [vmem:[%s13281_s15] sm:$0x3] %v5546_v0 }

</bundles_post_ra>
